<compile_context>
chip_gen: v7x
topology: tpu7x:2x2x1
jax: 0.10.0
libtpu: 0.0.40
codegen_flags: <defaults>
</compile_context>

<pallas_src>
import numpy as np
import jax
import jax.numpy as jnp
from jax.experimental import pallas as pl
from jax.experimental.pallas import tpu as pltpu

# ----------------------------- configuration --------------------------------
IN_CHANNELS = 4
IN_SIZE = 16                   # per-image row span of the (B*H, W*C) layout
CHANNELS = [8, 16, 16, 16]     # 4 units -> spatial 16 -> 8 -> 4 -> 2 -> 1
NUM_COLUMNS = 2                # fractal block depth = 2 ** (num_columns - 1)
NUM_CLASSES = 10
BATCH = 2
BN_EPS = 1e-5
OUT_LANES = 128                # lane-dense kernel output; host slices :NUM_CLASSES

_VMEM = pl.BlockSpec(memory_space=pltpu.MemorySpace.VMEM)

# The fused kernel specializes the num_columns == 2 fractal structure:
# level 0 = one conv (unit input), level 1 = two convs (level-0 out, unit input).
assert NUM_COLUMNS == 2


# ------------------------------ unit metadata --------------------------------
def make_unit_specs():
    specs = []
    cin = IN_CHANNELS
    size = IN_SIZE
    for u, cout in enumerate(CHANNELS):
        ls = 1 if u == 0 else 2          # lane stride of the unit input blocks
        s_row = 2 ** u                   # row stride of the unit's valid rows
        specs.append(dict(W=size, H=size, cin=cin, cout=cout, ls=ls,
                          s_row=s_row, L_in=size * ls * cin, L_mid=size * cout))
        cin = cout
        size //= 2
    assert size * 2 == 2                 # final spatial size is 1x1
    return specs


# ------------------------- host-side weight folding --------------------------
def _banded(w_eff, w_sp, lane_stride):
    """Fold a (3,3,cin,cout) conv weight into a (3*L_in, W*cout) banded matmul
    operand for the lane layout where input spatial column wi lives at lane
    block lane_stride*wi (block width cin) and output column wo at block wo
    (block width cout).  kw taps and W-axis zero padding are encoded in the
    band structure; kh bands are stacked along rows (matching the lhs concat).
    """
    _, _, cin, cout = w_eff.shape
    l_in = w_sp * lane_stride * cin
    big = np.zeros((3, l_in, w_sp * cout), np.float32)
    for kh in range(3):
        for kw in range(3):
            for wo in range(w_sp):
                wi = wo + kw - 1
                if 0 <= wi < w_sp:
                    r0 = lane_stride * wi * cin
                    big[kh, r0:r0 + cin, wo * cout:(wo + 1) * cout] = w_eff[kh, kw]
    return big.reshape(3 * l_in, w_sp * cout)


def _fold_conv_bn(key, cin, cout, join_scale):
    """Synthetic Conv2d(kaiming_uniform) + BatchNorm(eval) folded into an
    effective weight/bias; join_scale folds the eval-mode mean-join factor."""
    key, k1, k2, k3, k4, k5 = jax.random.split(key, 6)
    fan_in = cin * 9
    bound = (6.0 / fan_in) ** 0.5                      # kaiming_uniform_
    w = jax.random.uniform(k1, (3, 3, cin, cout), jnp.float32, -bound, bound)
    gamma = jax.random.uniform(k2, (cout,), jnp.float32, 0.5, 1.5)
    beta = 0.1 * jax.random.normal(k3, (cout,), jnp.float32)
    rmean = 0.1 * jax.random.normal(k4, (cout,), jnp.float32)
    rvar = jax.random.uniform(k5, (cout,), jnp.float32, 0.5, 1.5)
    scale = gamma / jnp.sqrt(rvar + BN_EPS)
    w_eff = (w * scale) * join_scale
    b_eff = (beta - rmean * scale) * join_scale
    return key, np.asarray(w_eff), np.asarray(b_eff)


def build_params(key, unit_specs):
    convs = []                                         # order: per unit L0, L1a, L1b
    for spec in unit_specs:
        w_sp, cin, cout, ls = spec['W'], spec['cin'], spec['cout'], spec['ls']
        # level 0: unit input -> cout (join of a single column -> scale 1)
        key, w_eff, b_eff = _fold_conv_bn(key, cin, cout, 1.0)
        convs.append(dict(mat=_banded(w_eff, w_sp, ls), bias=np.tile(b_eff, w_sp)))
        # level 1, column 0: level-0 output -> cout (mean join of 2 -> scale 0.5)
        key, w_eff, b_eff = _fold_conv_bn(key, cout, cout, 0.5)
        convs.append(dict(mat=_banded(w_eff, w_sp, 1), bias=np.tile(b_eff, w_sp)))
        # level 1, column 1: unit input -> cout (scale 0.5)
        key, w_eff, b_eff = _fold_conv_bn(key, cin, cout, 0.5)
        convs.append(dict(mat=_banded(w_eff, w_sp, ls), bias=np.tile(b_eff, w_sp)))
    c_last = unit_specs[-1]['cout']
    key, kw, kb = jax.random.split(key, 3)
    bound = 1.0 / (c_last ** 0.5)
    fc_w = np.asarray(jax.random.uniform(kw, (c_last, NUM_CLASSES),
                                         jnp.float32, -bound, bound))
    fc_b = np.asarray(jax.random.uniform(kb, (NUM_CLASSES,),
                                         jnp.float32, -bound, bound))
    return convs, fc_w, fc_b


def pack_params(convs, fc_w, fc_b, c_last):
    """Pack all parameters into 2 lane-padded slabs (2 entry DMAs)."""
    meta, blocks, off = [], [], 0
    for conv in convs:
        k, n = conv['mat'].shape
        blk = np.zeros((k, OUT_LANES), np.float32)
        blk[:, :n] = conv['mat']
        blocks.append(blk)
        meta.append((off, k, n))
        off += k                                       # every K is a multiple of 16
    wslab = jnp.asarray(np.concatenate(blocks, axis=0), dtype=jnp.bfloat16)
    mslab = np.zeros((32, OUT_LANES), np.float32)
    for i, conv in enumerate(convs):                   # rows 0..11: conv bias rows
        mslab[i, :conv['bias'].shape[0]] = conv['bias']
    mslab[12, :NUM_CLASSES] = fc_b                     # row 12: fc bias
    mslab[16:16 + c_last, :NUM_CLASSES] = fc_w         # rows 16..31: fc weight
    return wslab, jnp.asarray(mslab), meta


# ------------------------------ fused kernel ---------------------------------
def build_kernel(unit_specs, conv_meta, batch):
    c_last = unit_specs[-1]['cout']

    def kernel(x_ref, w_ref, m_ref, o_ref):
        # --- in-register shift helpers (static slice + concat, no VMEM staging)
        def rows_down(x, s):        # out[r] = x[r - s]; first s rows zero
            pad = jnp.zeros((s, x.shape[1]), x.dtype)
            return jnp.concatenate([pad, x[:x.shape[0] - s, :]], axis=0)

        def rows_up(x, s):          # out[r] = x[r + s]; last s rows zero
            pad = jnp.zeros((s, x.shape[1]), x.dtype)
            return jnp.concatenate([x[s:, :], pad], axis=0)

        def lanes_up(x, c):         # out[:, l] = x[:, l + c]; last c lanes zero
            pad = jnp.zeros((x.shape[0], c), x.dtype)
            return jnp.concatenate([x[:, c:], pad], axis=1)

        def conv_bn_relu(src, ci, s_row, h_sp):
            """3x3 conv (pad=1) + folded BN/join + ReLU == one MXU matmul.
            src: (R, L) f32 value; rows of image b live at [b*IN_SIZE, ...);
            valid spatial row h at physical offset h*s_row."""
            off, k, n = conv_meta[ci]
            rid = jax.lax.broadcasted_iota(jnp.int32, src.shape, 0) % IN_SIZE
            top = jnp.where(rid == 0, 0.0, rows_down(src, s_row))            # row ho-1
            bot = jnp.where(rid == (h_sp - 1) * s_row, 0.0, rows_up(src, s_row))  # ho+1
            lhs = jnp.concatenate([top, src, bot], axis=1).astype(jnp.bfloat16)
            w = w_ref[off:off + k, :n]                                       # bf16
            b = m_ref[ci:ci + 1, :n]                                         # f32
            y = jnp.dot(lhs, w, preferred_element_type=jnp.float32)
            return jnp.maximum(y + b, 0.0)                                   # (R, n)

        act = x_ref[...]                      # (B*16, 64) f32, unit-0 input
        ci = 0
        for spec in unit_specs:
            s, h_sp, cout = spec['s_row'], spec['H'], spec['cout']
            # ---- fractal block (num_columns = 2) ----
            y0 = conv_bn_relu(act, ci, s, h_sp); ci += 1        # level 0
            j1 = conv_bn_relu(y0, ci, s, h_sp); ci += 1         # level 1, col 0
            j2 = conv_bn_relu(act, ci, s, h_sp); ci += 1        # level 1, col 1
            joined = j1 + j2                  # mean-join (1/2 folded into weights)
            # ---- 2x2 max-pool, stride 2 (row-shift max + lane-shift max) ----
            # Result stays "wide": valid rows at stride 2*s, valid lane blocks
            # (width cout) at even positions; the next unit's banded weights and
            # the host-side output slice read only the valid positions.
            pooled_r = jnp.maximum(joined, rows_up(joined, s))
            act = jnp.maximum(pooled_r, lanes_up(pooled_r, cout))

        # ---- final Linear: valid features are lanes 0..c_last-1 of the valid
        # rows; compute logits for all rows (lane-dense full-width store) and
        # let the host slice out rows 0, IN_SIZE, ... ----
        feats = act[:, :c_last].astype(jnp.bfloat16)             # (R, 16)
        fcw = m_ref[16:16 + c_last, :].astype(jnp.bfloat16)      # (16, 128)
        fcb = m_ref[12:13, :]                                    # (1, 128)
        o_ref[...] = jnp.dot(feats, fcw, preferred_element_type=jnp.float32) + fcb

    return kernel


def make_forward(unit_specs, wslab, mslab, conv_meta, batch):
    kernel = build_kernel(unit_specs, conv_meta, batch)
    rows = batch * IN_SIZE
    fused = pl.pallas_call(
        kernel,
        out_shape=jax.ShapeDtypeStruct((rows, OUT_LANES), jnp.float32),
        in_specs=[_VMEM, _VMEM, _VMEM],
        out_specs=_VMEM,
        compiler_params=pltpu.CompilerParams(vmem_limit_bytes=32 * 1024 * 1024),
    )

    def forward(x_nchw):
        # NCHW -> NHWC -> lane-dense 2-D layout (B*H, W*C); everything else
        # (convs, BN, ReLU, joins, pools, FC) runs inside the fused kernel.
        x = jnp.transpose(x_nchw, (0, 2, 3, 1)).astype(jnp.float32)
        b, h, w, c = x.shape
        x2d = x.reshape(b * h, w * c)
        out = fused(x2d, wslab, mslab)
        # Valid logits live at physical row b*IN_SIZE (wide row layout) and the
        # first NUM_CLASSES lanes of the lane-dense output slab.
        return out[::IN_SIZE, :NUM_CLASSES]

    return forward


# ----------------------------------- main -------------------------------------
if __name__ == "__main__":
    key = jax.random.PRNGKey(0)
    kx, kp = jax.random.split(key)
    x = jax.random.normal(kx, (BATCH, IN_CHANNELS, IN_SIZE, IN_SIZE), jnp.float32)

    unit_specs = make_unit_specs()
    convs, fc_w, fc_b = build_params(kp, unit_specs)
    wslab, mslab, conv_meta = pack_params(convs, fc_w, fc_b, unit_specs[-1]['cout'])

    forward = jax.jit(make_forward(unit_specs, wslab, mslab, conv_meta, BATCH))
    out = forward(x)
    jax.block_until_ready(out)
    assert out.shape == (BATCH, NUM_CLASSES), out.shape
    assert out.dtype == jnp.float32
    assert bool(jnp.all(jnp.isfinite(out)))
    print("KERNEL_OK")
</pallas_src>

<mosaic_0001>
module attributes {stable_mosaic.version = 11 : i64} {
  func.func @kernel(%arg0: memref<32x64xf32, #tpu.memory_space<vmem>>, %arg1: memref<3360x128xbf16, #tpu.memory_space<vmem>>, %arg2: memref<32x128xf32, #tpu.memory_space<vmem>>, %arg3: memref<32x128xf32, #tpu.memory_space<vmem>>) attributes {dimension_semantics = [], scalar_prefetch = 0 : i64, scratch_operands = 0 : i64, tpu.core_type = #tpu.core_type<tc>} {
    %c0 = arith.constant 0 : index
    %c0_0 = arith.constant 0 : index
    %0 = vector.load %arg0[%c0, %c0_0] : memref<32x64xf32, #tpu.memory_space<vmem>>, vector<32x64xf32>
    %1 = tpu.iota {dimensions = array<i32: 0>} : vector<32x64xi32>
    %c16_i32 = arith.constant 16 : i32
    %c0_i32 = arith.constant 0 : i32
    %2 = arith.cmpi eq, %c16_i32, %c0_i32 : i32
    %c1_i32 = arith.constant 1 : i32
    %3 = arith.select %2, %c1_i32, %c16_i32 : i32
    %4 = vector.broadcast %3 : i32 to vector<32x64xi32>
    %5 = arith.remsi %1, %4 : vector<32x64xi32>
    %c0_i32_1 = arith.constant 0 : i32
    %6 = vector.broadcast %c0_i32_1 : i32 to vector<32x64xi32>
    %7 = arith.cmpi ne, %5, %6 : vector<32x64xi32>
    %c0_i32_2 = arith.constant 0 : i32
    %8 = vector.broadcast %c0_i32_2 : i32 to vector<32x64xi32>
    %9 = arith.cmpi slt, %5, %8 : vector<32x64xi32>
    %c0_i32_3 = arith.constant 0 : i32
    %10 = arith.cmpi slt, %3, %c0_i32_3 : i32
    %11 = vector.broadcast %10 : i1 to vector<32x64xi1>
    %12 = vector.broadcast %11 : vector<32x64xi1> to vector<32x64xi1>
    %13 = arith.xori %9, %12 : vector<32x64xi1>
    %14 = arith.andi %13, %7 : vector<32x64xi1>
    %15 = vector.broadcast %3 : i32 to vector<32x64xi32>
    %16 = arith.addi %5, %15 : vector<32x64xi32>
    %17 = arith.select %14, %16, %5 : vector<32x64xi1>, vector<32x64xi32>
    %c0_i32_4 = arith.constant 0 : i32
    %18 = vector.broadcast %c0_i32_4 : i32 to vector<32x64xi32>
    %19 = arith.cmpi eq, %17, %18 : vector<32x64xi32>
    %cst = arith.constant 0.000000e+00 : f32
    %20 = vector.broadcast %cst : f32 to vector<1x64xf32>
    %21 = vector.extract_strided_slice %0 {offsets = [0, 0], sizes = [31, 64], strides = [1, 1]} : vector<32x64xf32> to vector<31x64xf32>
    %22 = tpu.concatenate %20, %21 in 0 : vector<1x64xf32>, vector<31x64xf32> -> vector<32x64xf32>
    %cst_5 = arith.constant 0.000000e+00 : f32
    %23 = vector.broadcast %cst_5 : f32 to vector<32x64xf32>
    %24 = arith.select %19, %23, %22 : vector<32x64xi1>, vector<32x64xf32>
    %c15_i32 = arith.constant 15 : i32
    %25 = vector.broadcast %c15_i32 : i32 to vector<32x64xi32>
    %26 = arith.cmpi eq, %17, %25 : vector<32x64xi32>
    %cst_6 = arith.constant 0.000000e+00 : f32
    %27 = vector.broadcast %cst_6 : f32 to vector<1x64xf32>
    %28 = vector.extract_strided_slice %0 {offsets = [1, 0], sizes = [31, 64], strides = [1, 1]} : vector<32x64xf32> to vector<31x64xf32>
    %29 = tpu.concatenate %28, %27 in 0 : vector<31x64xf32>, vector<1x64xf32> -> vector<32x64xf32>
    %cst_7 = arith.constant 0.000000e+00 : f32
    %30 = vector.broadcast %cst_7 : f32 to vector<32x64xf32>
    %31 = arith.select %26, %30, %29 : vector<32x64xi1>, vector<32x64xf32>
    %32 = tpu.concatenate %24, %0, %31 in 1 : vector<32x64xf32>, vector<32x64xf32>, vector<32x64xf32> -> vector<32x192xf32>
    %33 = arith.truncf %32 : vector<32x192xf32> to vector<32x192xbf16>
    %c0_8 = arith.constant 0 : index
    %c0_9 = arith.constant 0 : index
    %34 = vector.load %arg1[%c0_8, %c0_9] : memref<3360x128xbf16, #tpu.memory_space<vmem>>, vector<192x128xbf16>
    %c0_10 = arith.constant 0 : index
    %c0_11 = arith.constant 0 : index
    %35 = vector.load %arg2[%c0_10, %c0_11] : memref<32x128xf32, #tpu.memory_space<vmem>>, vector<1x128xf32>
    %cst_12 = arith.constant dense<0.000000e+00> : vector<32x128xf32>
    %36 = tpu.matmul %33, %34, %cst_12 {dimension_numbers = #tpu.dot_dimension_numbers<[1], [0], [0], [1], [0, 0, 1, 1], [], []>} : vector<32x192xbf16>, vector<192x128xbf16>, vector<32x128xf32> -> vector<32x128xf32>
    %37 = vector.broadcast %35 : vector<1x128xf32> to vector<32x128xf32>
    %38 = arith.addf %36, %37 : vector<32x128xf32>
    %cst_13 = arith.constant 0.000000e+00 : f32
    %39 = vector.broadcast %cst_13 : f32 to vector<32x128xf32>
    %40 = arith.maximumf %38, %39 : vector<32x128xf32>
    %41 = tpu.iota {dimensions = array<i32: 0>} : vector<32x128xi32>
    %c16_i32_14 = arith.constant 16 : i32
    %c0_i32_15 = arith.constant 0 : i32
    %42 = arith.cmpi eq, %c16_i32_14, %c0_i32_15 : i32
    %c1_i32_16 = arith.constant 1 : i32
    %43 = arith.select %42, %c1_i32_16, %c16_i32_14 : i32
    %44 = vector.broadcast %43 : i32 to vector<32x128xi32>
    %45 = arith.remsi %41, %44 : vector<32x128xi32>
    %c0_i32_17 = arith.constant 0 : i32
    %46 = vector.broadcast %c0_i32_17 : i32 to vector<32x128xi32>
    %47 = arith.cmpi ne, %45, %46 : vector<32x128xi32>
    %c0_i32_18 = arith.constant 0 : i32
    %48 = vector.broadcast %c0_i32_18 : i32 to vector<32x128xi32>
    %49 = arith.cmpi slt, %45, %48 : vector<32x128xi32>
    %c0_i32_19 = arith.constant 0 : i32
    %50 = arith.cmpi slt, %43, %c0_i32_19 : i32
    %51 = vector.broadcast %50 : i1 to vector<32x128xi1>
    %52 = vector.broadcast %51 : vector<32x128xi1> to vector<32x128xi1>
    %53 = arith.xori %49, %52 : vector<32x128xi1>
    %54 = arith.andi %53, %47 : vector<32x128xi1>
    %55 = vector.broadcast %43 : i32 to vector<32x128xi32>
    %56 = arith.addi %45, %55 : vector<32x128xi32>
    %57 = arith.select %54, %56, %45 : vector<32x128xi1>, vector<32x128xi32>
    %c0_i32_20 = arith.constant 0 : i32
    %58 = vector.broadcast %c0_i32_20 : i32 to vector<32x128xi32>
    %59 = arith.cmpi eq, %57, %58 : vector<32x128xi32>
    %cst_21 = arith.constant 0.000000e+00 : f32
    %60 = vector.broadcast %cst_21 : f32 to vector<1x128xf32>
    %61 = vector.extract_strided_slice %40 {offsets = [0, 0], sizes = [31, 128], strides = [1, 1]} : vector<32x128xf32> to vector<31x128xf32>
    %62 = tpu.concatenate %60, %61 in 0 : vector<1x128xf32>, vector<31x128xf32> -> vector<32x128xf32>
    %cst_22 = arith.constant 0.000000e+00 : f32
    %63 = vector.broadcast %cst_22 : f32 to vector<32x128xf32>
    %64 = arith.select %59, %63, %62 : vector<32x128xi1>, vector<32x128xf32>
    %c15_i32_23 = arith.constant 15 : i32
    %65 = vector.broadcast %c15_i32_23 : i32 to vector<32x128xi32>
    %66 = arith.cmpi eq, %57, %65 : vector<32x128xi32>
    %cst_24 = arith.constant 0.000000e+00 : f32
    %67 = vector.broadcast %cst_24 : f32 to vector<1x128xf32>
    %68 = vector.extract_strided_slice %40 {offsets = [1, 0], sizes = [31, 128], strides = [1, 1]} : vector<32x128xf32> to vector<31x128xf32>
    %69 = tpu.concatenate %68, %67 in 0 : vector<31x128xf32>, vector<1x128xf32> -> vector<32x128xf32>
    %cst_25 = arith.constant 0.000000e+00 : f32
    %70 = vector.broadcast %cst_25 : f32 to vector<32x128xf32>
    %71 = arith.select %66, %70, %69 : vector<32x128xi1>, vector<32x128xf32>
    %72 = tpu.concatenate %64, %40, %71 in 1 : vector<32x128xf32>, vector<32x128xf32>, vector<32x128xf32> -> vector<32x384xf32>
    %73 = arith.truncf %72 : vector<32x384xf32> to vector<32x384xbf16>
    %c192 = arith.constant 192 : index
    %c0_26 = arith.constant 0 : index
    %74 = vector.load %arg1[%c192, %c0_26] : memref<3360x128xbf16, #tpu.memory_space<vmem>>, vector<384x128xbf16>
    %c1 = arith.constant 1 : index
    %c0_27 = arith.constant 0 : index
    %75 = vector.load %arg2[%c1, %c0_27] : memref<32x128xf32, #tpu.memory_space<vmem>>, vector<1x128xf32>
    %cst_28 = arith.constant dense<0.000000e+00> : vector<32x128xf32>
    %76 = tpu.matmul %73, %74, %cst_28 {dimension_numbers = #tpu.dot_dimension_numbers<[1], [0], [0], [1], [0, 0, 1, 1], [], []>} : vector<32x384xbf16>, vector<384x128xbf16>, vector<32x128xf32> -> vector<32x128xf32>
    %77 = vector.broadcast %75 : vector<1x128xf32> to vector<32x128xf32>
    %78 = arith.addf %76, %77 : vector<32x128xf32>
    %cst_29 = arith.constant 0.000000e+00 : f32
    %79 = vector.broadcast %cst_29 : f32 to vector<32x128xf32>
    %80 = arith.maximumf %78, %79 : vector<32x128xf32>
    %81 = tpu.iota {dimensions = array<i32: 0>} : vector<32x64xi32>
    %c16_i32_30 = arith.constant 16 : i32
    %c0_i32_31 = arith.constant 0 : i32
    %82 = arith.cmpi eq, %c16_i32_30, %c0_i32_31 : i32
    %c1_i32_32 = arith.constant 1 : i32
    %83 = arith.select %82, %c1_i32_32, %c16_i32_30 : i32
    %84 = vector.broadcast %83 : i32 to vector<32x64xi32>
    %85 = arith.remsi %81, %84 : vector<32x64xi32>
    %c0_i32_33 = arith.constant 0 : i32
    %86 = vector.broadcast %c0_i32_33 : i32 to vector<32x64xi32>
    %87 = arith.cmpi ne, %85, %86 : vector<32x64xi32>
    %c0_i32_34 = arith.constant 0 : i32
    %88 = vector.broadcast %c0_i32_34 : i32 to vector<32x64xi32>
    %89 = arith.cmpi slt, %85, %88 : vector<32x64xi32>
    %c0_i32_35 = arith.constant 0 : i32
    %90 = arith.cmpi slt, %83, %c0_i32_35 : i32
    %91 = vector.broadcast %90 : i1 to vector<32x64xi1>
    %92 = vector.broadcast %91 : vector<32x64xi1> to vector<32x64xi1>
    %93 = arith.xori %89, %92 : vector<32x64xi1>
    %94 = arith.andi %93, %87 : vector<32x64xi1>
    %95 = vector.broadcast %83 : i32 to vector<32x64xi32>
    %96 = arith.addi %85, %95 : vector<32x64xi32>
    %97 = arith.select %94, %96, %85 : vector<32x64xi1>, vector<32x64xi32>
    %c0_i32_36 = arith.constant 0 : i32
    %98 = vector.broadcast %c0_i32_36 : i32 to vector<32x64xi32>
    %99 = arith.cmpi eq, %97, %98 : vector<32x64xi32>
    %cst_37 = arith.constant 0.000000e+00 : f32
    %100 = vector.broadcast %cst_37 : f32 to vector<1x64xf32>
    %101 = vector.extract_strided_slice %0 {offsets = [0, 0], sizes = [31, 64], strides = [1, 1]} : vector<32x64xf32> to vector<31x64xf32>
    %102 = tpu.concatenate %100, %101 in 0 : vector<1x64xf32>, vector<31x64xf32> -> vector<32x64xf32>
    %cst_38 = arith.constant 0.000000e+00 : f32
    %103 = vector.broadcast %cst_38 : f32 to vector<32x64xf32>
    %104 = arith.select %99, %103, %102 : vector<32x64xi1>, vector<32x64xf32>
    %c15_i32_39 = arith.constant 15 : i32
    %105 = vector.broadcast %c15_i32_39 : i32 to vector<32x64xi32>
    %106 = arith.cmpi eq, %97, %105 : vector<32x64xi32>
    %cst_40 = arith.constant 0.000000e+00 : f32
    %107 = vector.broadcast %cst_40 : f32 to vector<1x64xf32>
    %108 = vector.extract_strided_slice %0 {offsets = [1, 0], sizes = [31, 64], strides = [1, 1]} : vector<32x64xf32> to vector<31x64xf32>
    %109 = tpu.concatenate %108, %107 in 0 : vector<31x64xf32>, vector<1x64xf32> -> vector<32x64xf32>
    %cst_41 = arith.constant 0.000000e+00 : f32
    %110 = vector.broadcast %cst_41 : f32 to vector<32x64xf32>
    %111 = arith.select %106, %110, %109 : vector<32x64xi1>, vector<32x64xf32>
    %112 = tpu.concatenate %104, %0, %111 in 1 : vector<32x64xf32>, vector<32x64xf32>, vector<32x64xf32> -> vector<32x192xf32>
    %113 = arith.truncf %112 : vector<32x192xf32> to vector<32x192xbf16>
    %c576 = arith.constant 576 : index
    %c0_42 = arith.constant 0 : index
    %114 = vector.load %arg1[%c576, %c0_42] : memref<3360x128xbf16, #tpu.memory_space<vmem>>, vector<192x128xbf16>
    %c2 = arith.constant 2 : index
    %c0_43 = arith.constant 0 : index
    %115 = vector.load %arg2[%c2, %c0_43] : memref<32x128xf32, #tpu.memory_space<vmem>>, vector<1x128xf32>
    %cst_44 = arith.constant dense<0.000000e+00> : vector<32x128xf32>
    %116 = tpu.matmul %113, %114, %cst_44 {dimension_numbers = #tpu.dot_dimension_numbers<[1], [0], [0], [1], [0, 0, 1, 1], [], []>} : vector<32x192xbf16>, vector<192x128xbf16>, vector<32x128xf32> -> vector<32x128xf32>
    %117 = vector.broadcast %115 : vector<1x128xf32> to vector<32x128xf32>
    %118 = arith.addf %116, %117 : vector<32x128xf32>
    %cst_45 = arith.constant 0.000000e+00 : f32
    %119 = vector.broadcast %cst_45 : f32 to vector<32x128xf32>
    %120 = arith.maximumf %118, %119 : vector<32x128xf32>
    %121 = arith.addf %80, %120 : vector<32x128xf32>
    %cst_46 = arith.constant 0.000000e+00 : f32
    %122 = vector.broadcast %cst_46 : f32 to vector<1x128xf32>
    %123 = vector.extract_strided_slice %121 {offsets = [1, 0], sizes = [31, 128], strides = [1, 1]} : vector<32x128xf32> to vector<31x128xf32>
    %124 = tpu.concatenate %123, %122 in 0 : vector<31x128xf32>, vector<1x128xf32> -> vector<32x128xf32>
    %125 = arith.maximumf %121, %124 : vector<32x128xf32>
    %cst_47 = arith.constant 0.000000e+00 : f32
    %126 = vector.broadcast %cst_47 : f32 to vector<32x8xf32>
    %127 = vector.extract_strided_slice %125 {offsets = [0, 8], sizes = [32, 120], strides = [1, 1]} : vector<32x128xf32> to vector<32x120xf32>
    %128 = tpu.concatenate %127, %126 in 1 : vector<32x120xf32>, vector<32x8xf32> -> vector<32x128xf32>
    %129 = arith.maximumf %125, %128 : vector<32x128xf32>
    %130 = tpu.iota {dimensions = array<i32: 0>} : vector<32x128xi32>
    %c16_i32_48 = arith.constant 16 : i32
    %c0_i32_49 = arith.constant 0 : i32
    %131 = arith.cmpi eq, %c16_i32_48, %c0_i32_49 : i32
    %c1_i32_50 = arith.constant 1 : i32
    %132 = arith.select %131, %c1_i32_50, %c16_i32_48 : i32
    %133 = vector.broadcast %132 : i32 to vector<32x128xi32>
    %134 = arith.remsi %130, %133 : vector<32x128xi32>
    %c0_i32_51 = arith.constant 0 : i32
    %135 = vector.broadcast %c0_i32_51 : i32 to vector<32x128xi32>
    %136 = arith.cmpi ne, %134, %135 : vector<32x128xi32>
    %c0_i32_52 = arith.constant 0 : i32
    %137 = vector.broadcast %c0_i32_52 : i32 to vector<32x128xi32>
    %138 = arith.cmpi slt, %134, %137 : vector<32x128xi32>
    %c0_i32_53 = arith.constant 0 : i32
    %139 = arith.cmpi slt, %132, %c0_i32_53 : i32
    %140 = vector.broadcast %139 : i1 to vector<32x128xi1>
    %141 = vector.broadcast %140 : vector<32x128xi1> to vector<32x128xi1>
    %142 = arith.xori %138, %141 : vector<32x128xi1>
    %143 = arith.andi %142, %136 : vector<32x128xi1>
    %144 = vector.broadcast %132 : i32 to vector<32x128xi32>
    %145 = arith.addi %134, %144 : vector<32x128xi32>
    %146 = arith.select %143, %145, %134 : vector<32x128xi1>, vector<32x128xi32>
    %c0_i32_54 = arith.constant 0 : i32
    %147 = vector.broadcast %c0_i32_54 : i32 to vector<32x128xi32>
    %148 = arith.cmpi eq, %146, %147 : vector<32x128xi32>
    %cst_55 = arith.constant 0.000000e+00 : f32
    %149 = vector.broadcast %cst_55 : f32 to vector<2x128xf32>
    %150 = vector.extract_strided_slice %129 {offsets = [0, 0], sizes = [30, 128], strides = [1, 1]} : vector<32x128xf32> to vector<30x128xf32>
    %151 = tpu.concatenate %149, %150 in 0 : vector<2x128xf32>, vector<30x128xf32> -> vector<32x128xf32>
    %cst_56 = arith.constant 0.000000e+00 : f32
    %152 = vector.broadcast %cst_56 : f32 to vector<32x128xf32>
    %153 = arith.select %148, %152, %151 : vector<32x128xi1>, vector<32x128xf32>
    %c14_i32 = arith.constant 14 : i32
    %154 = vector.broadcast %c14_i32 : i32 to vector<32x128xi32>
    %155 = arith.cmpi eq, %146, %154 : vector<32x128xi32>
    %cst_57 = arith.constant 0.000000e+00 : f32
    %156 = vector.broadcast %cst_57 : f32 to vector<2x128xf32>
    %157 = vector.extract_strided_slice %129 {offsets = [2, 0], sizes = [30, 128], strides = [1, 1]} : vector<32x128xf32> to vector<30x128xf32>
    %158 = tpu.concatenate %157, %156 in 0 : vector<30x128xf32>, vector<2x128xf32> -> vector<32x128xf32>
    %cst_58 = arith.constant 0.000000e+00 : f32
    %159 = vector.broadcast %cst_58 : f32 to vector<32x128xf32>
    %160 = arith.select %155, %159, %158 : vector<32x128xi1>, vector<32x128xf32>
    %161 = tpu.concatenate %153, %129, %160 in 1 : vector<32x128xf32>, vector<32x128xf32>, vector<32x128xf32> -> vector<32x384xf32>
    %162 = arith.truncf %161 : vector<32x384xf32> to vector<32x384xbf16>
    %c768 = arith.constant 768 : index
    %c0_59 = arith.constant 0 : index
    %163 = vector.load %arg1[%c768, %c0_59] : memref<3360x128xbf16, #tpu.memory_space<vmem>>, vector<384x128xbf16>
    %c3 = arith.constant 3 : index
    %c0_60 = arith.constant 0 : index
    %164 = vector.load %arg2[%c3, %c0_60] : memref<32x128xf32, #tpu.memory_space<vmem>>, vector<1x128xf32>
    %cst_61 = arith.constant dense<0.000000e+00> : vector<32x128xf32>
    %165 = tpu.matmul %162, %163, %cst_61 {dimension_numbers = #tpu.dot_dimension_numbers<[1], [0], [0], [1], [0, 0, 1, 1], [], []>} : vector<32x384xbf16>, vector<384x128xbf16>, vector<32x128xf32> -> vector<32x128xf32>
    %166 = vector.broadcast %164 : vector<1x128xf32> to vector<32x128xf32>
    %167 = arith.addf %165, %166 : vector<32x128xf32>
    %cst_62 = arith.constant 0.000000e+00 : f32
    %168 = vector.broadcast %cst_62 : f32 to vector<32x128xf32>
    %169 = arith.maximumf %167, %168 : vector<32x128xf32>
    %170 = tpu.iota {dimensions = array<i32: 0>} : vector<32x128xi32>
    %c16_i32_63 = arith.constant 16 : i32
    %c0_i32_64 = arith.constant 0 : i32
    %171 = arith.cmpi eq, %c16_i32_63, %c0_i32_64 : i32
    %c1_i32_65 = arith.constant 1 : i32
    %172 = arith.select %171, %c1_i32_65, %c16_i32_63 : i32
    %173 = vector.broadcast %172 : i32 to vector<32x128xi32>
    %174 = arith.remsi %170, %173 : vector<32x128xi32>
    %c0_i32_66 = arith.constant 0 : i32
    %175 = vector.broadcast %c0_i32_66 : i32 to vector<32x128xi32>
    %176 = arith.cmpi ne, %174, %175 : vector<32x128xi32>
    %c0_i32_67 = arith.constant 0 : i32
    %177 = vector.broadcast %c0_i32_67 : i32 to vector<32x128xi32>
    %178 = arith.cmpi slt, %174, %177 : vector<32x128xi32>
    %c0_i32_68 = arith.constant 0 : i32
    %179 = arith.cmpi slt, %172, %c0_i32_68 : i32
    %180 = vector.broadcast %179 : i1 to vector<32x128xi1>
    %181 = vector.broadcast %180 : vector<32x128xi1> to vector<32x128xi1>
    %182 = arith.xori %178, %181 : vector<32x128xi1>
    %183 = arith.andi %182, %176 : vector<32x128xi1>
    %184 = vector.broadcast %172 : i32 to vector<32x128xi32>
    %185 = arith.addi %174, %184 : vector<32x128xi32>
    %186 = arith.select %183, %185, %174 : vector<32x128xi1>, vector<32x128xi32>
    %c0_i32_69 = arith.constant 0 : i32
    %187 = vector.broadcast %c0_i32_69 : i32 to vector<32x128xi32>
    %188 = arith.cmpi eq, %186, %187 : vector<32x128xi32>
    %cst_70 = arith.constant 0.000000e+00 : f32
    %189 = vector.broadcast %cst_70 : f32 to vector<2x128xf32>
    %190 = vector.extract_strided_slice %169 {offsets = [0, 0], sizes = [30, 128], strides = [1, 1]} : vector<32x128xf32> to vector<30x128xf32>
    %191 = tpu.concatenate %189, %190 in 0 : vector<2x128xf32>, vector<30x128xf32> -> vector<32x128xf32>
    %cst_71 = arith.constant 0.000000e+00 : f32
    %192 = vector.broadcast %cst_71 : f32 to vector<32x128xf32>
    %193 = arith.select %188, %192, %191 : vector<32x128xi1>, vector<32x128xf32>
    %c14_i32_72 = arith.constant 14 : i32
    %194 = vector.broadcast %c14_i32_72 : i32 to vector<32x128xi32>
    %195 = arith.cmpi eq, %186, %194 : vector<32x128xi32>
    %cst_73 = arith.constant 0.000000e+00 : f32
    %196 = vector.broadcast %cst_73 : f32 to vector<2x128xf32>
    %197 = vector.extract_strided_slice %169 {offsets = [2, 0], sizes = [30, 128], strides = [1, 1]} : vector<32x128xf32> to vector<30x128xf32>
    %198 = tpu.concatenate %197, %196 in 0 : vector<30x128xf32>, vector<2x128xf32> -> vector<32x128xf32>
    %cst_74 = arith.constant 0.000000e+00 : f32
    %199 = vector.broadcast %cst_74 : f32 to vector<32x128xf32>
    %200 = arith.select %195, %199, %198 : vector<32x128xi1>, vector<32x128xf32>
    %201 = tpu.concatenate %193, %169, %200 in 1 : vector<32x128xf32>, vector<32x128xf32>, vector<32x128xf32> -> vector<32x384xf32>
    %202 = arith.truncf %201 : vector<32x384xf32> to vector<32x384xbf16>
    %c1152 = arith.constant 1152 : index
    %c0_75 = arith.constant 0 : index
    %203 = vector.load %arg1[%c1152, %c0_75] : memref<3360x128xbf16, #tpu.memory_space<vmem>>, vector<384x128xbf16>
    %c4 = arith.constant 4 : index
    %c0_76 = arith.constant 0 : index
    %204 = vector.load %arg2[%c4, %c0_76] : memref<32x128xf32, #tpu.memory_space<vmem>>, vector<1x128xf32>
    %cst_77 = arith.constant dense<0.000000e+00> : vector<32x128xf32>
    %205 = tpu.matmul %202, %203, %cst_77 {dimension_numbers = #tpu.dot_dimension_numbers<[1], [0], [0], [1], [0, 0, 1, 1], [], []>} : vector<32x384xbf16>, vector<384x128xbf16>, vector<32x128xf32> -> vector<32x128xf32>
    %206 = vector.broadcast %204 : vector<1x128xf32> to vector<32x128xf32>
    %207 = arith.addf %205, %206 : vector<32x128xf32>
    %cst_78 = arith.constant 0.000000e+00 : f32
    %208 = vector.broadcast %cst_78 : f32 to vector<32x128xf32>
    %209 = arith.maximumf %207, %208 : vector<32x128xf32>
    %210 = tpu.iota {dimensions = array<i32: 0>} : vector<32x128xi32>
    %c16_i32_79 = arith.constant 16 : i32
    %c0_i32_80 = arith.constant 0 : i32
    %211 = arith.cmpi eq, %c16_i32_79, %c0_i32_80 : i32
    %c1_i32_81 = arith.constant 1 : i32
    %212 = arith.select %211, %c1_i32_81, %c16_i32_79 : i32
    %213 = vector.broadcast %212 : i32 to vector<32x128xi32>
    %214 = arith.remsi %210, %213 : vector<32x128xi32>
    %c0_i32_82 = arith.constant 0 : i32
    %215 = vector.broadcast %c0_i32_82 : i32 to vector<32x128xi32>
    %216 = arith.cmpi ne, %214, %215 : vector<32x128xi32>
    %c0_i32_83 = arith.constant 0 : i32
    %217 = vector.broadcast %c0_i32_83 : i32 to vector<32x128xi32>
    %218 = arith.cmpi slt, %214, %217 : vector<32x128xi32>
    %c0_i32_84 = arith.constant 0 : i32
    %219 = arith.cmpi slt, %212, %c0_i32_84 : i32
    %220 = vector.broadcast %219 : i1 to vector<32x128xi1>
    %221 = vector.broadcast %220 : vector<32x128xi1> to vector<32x128xi1>
    %222 = arith.xori %218, %221 : vector<32x128xi1>
    %223 = arith.andi %222, %216 : vector<32x128xi1>
    %224 = vector.broadcast %212 : i32 to vector<32x128xi32>
    %225 = arith.addi %214, %224 : vector<32x128xi32>
    %226 = arith.select %223, %225, %214 : vector<32x128xi1>, vector<32x128xi32>
    %c0_i32_85 = arith.constant 0 : i32
    %227 = vector.broadcast %c0_i32_85 : i32 to vector<32x128xi32>
    %228 = arith.cmpi eq, %226, %227 : vector<32x128xi32>
    %cst_86 = arith.constant 0.000000e+00 : f32
    %229 = vector.broadcast %cst_86 : f32 to vector<2x128xf32>
    %230 = vector.extract_strided_slice %129 {offsets = [0, 0], sizes = [30, 128], strides = [1, 1]} : vector<32x128xf32> to vector<30x128xf32>
    %231 = tpu.concatenate %229, %230 in 0 : vector<2x128xf32>, vector<30x128xf32> -> vector<32x128xf32>
    %cst_87 = arith.constant 0.000000e+00 : f32
    %232 = vector.broadcast %cst_87 : f32 to vector<32x128xf32>
    %233 = arith.select %228, %232, %231 : vector<32x128xi1>, vector<32x128xf32>
    %c14_i32_88 = arith.constant 14 : i32
    %234 = vector.broadcast %c14_i32_88 : i32 to vector<32x128xi32>
    %235 = arith.cmpi eq, %226, %234 : vector<32x128xi32>
    %cst_89 = arith.constant 0.000000e+00 : f32
    %236 = vector.broadcast %cst_89 : f32 to vector<2x128xf32>
    %237 = vector.extract_strided_slice %129 {offsets = [2, 0], sizes = [30, 128], strides = [1, 1]} : vector<32x128xf32> to vector<30x128xf32>
    %238 = tpu.concatenate %237, %236 in 0 : vector<30x128xf32>, vector<2x128xf32> -> vector<32x128xf32>
    %cst_90 = arith.constant 0.000000e+00 : f32
    %239 = vector.broadcast %cst_90 : f32 to vector<32x128xf32>
    %240 = arith.select %235, %239, %238 : vector<32x128xi1>, vector<32x128xf32>
    %241 = tpu.concatenate %233, %129, %240 in 1 : vector<32x128xf32>, vector<32x128xf32>, vector<32x128xf32> -> vector<32x384xf32>
    %242 = arith.truncf %241 : vector<32x384xf32> to vector<32x384xbf16>
    %c1536 = arith.constant 1536 : index
    %c0_91 = arith.constant 0 : index
    %243 = vector.load %arg1[%c1536, %c0_91] : memref<3360x128xbf16, #tpu.memory_space<vmem>>, vector<384x128xbf16>
    %c5 = arith.constant 5 : index
    %c0_92 = arith.constant 0 : index
    %244 = vector.load %arg2[%c5, %c0_92] : memref<32x128xf32, #tpu.memory_space<vmem>>, vector<1x128xf32>
    %cst_93 = arith.constant dense<0.000000e+00> : vector<32x128xf32>
    %245 = tpu.matmul %242, %243, %cst_93 {dimension_numbers = #tpu.dot_dimension_numbers<[1], [0], [0], [1], [0, 0, 1, 1], [], []>} : vector<32x384xbf16>, vector<384x128xbf16>, vector<32x128xf32> -> vector<32x128xf32>
    %246 = vector.broadcast %244 : vector<1x128xf32> to vector<32x128xf32>
    %247 = arith.addf %245, %246 : vector<32x128xf32>
    %cst_94 = arith.constant 0.000000e+00 : f32
    %248 = vector.broadcast %cst_94 : f32 to vector<32x128xf32>
    %249 = arith.maximumf %247, %248 : vector<32x128xf32>
    %250 = arith.addf %209, %249 : vector<32x128xf32>
    %cst_95 = arith.constant 0.000000e+00 : f32
    %251 = vector.broadcast %cst_95 : f32 to vector<2x128xf32>
    %252 = vector.extract_strided_slice %250 {offsets = [2, 0], sizes = [30, 128], strides = [1, 1]} : vector<32x128xf32> to vector<30x128xf32>
    %253 = tpu.concatenate %252, %251 in 0 : vector<30x128xf32>, vector<2x128xf32> -> vector<32x128xf32>
    %254 = arith.maximumf %250, %253 : vector<32x128xf32>
    %cst_96 = arith.constant 0.000000e+00 : f32
    %255 = vector.broadcast %cst_96 : f32 to vector<32x16xf32>
    %256 = vector.extract_strided_slice %254 {offsets = [0, 16], sizes = [32, 112], strides = [1, 1]} : vector<32x128xf32> to vector<32x112xf32>
    %257 = tpu.concatenate %256, %255 in 1 : vector<32x112xf32>, vector<32x16xf32> -> vector<32x128xf32>
    %258 = arith.maximumf %254, %257 : vector<32x128xf32>
    %259 = tpu.iota {dimensions = array<i32: 0>} : vector<32x128xi32>
    %c16_i32_97 = arith.constant 16 : i32
    %c0_i32_98 = arith.constant 0 : i32
    %260 = arith.cmpi eq, %c16_i32_97, %c0_i32_98 : i32
    %c1_i32_99 = arith.constant 1 : i32
    %261 = arith.select %260, %c1_i32_99, %c16_i32_97 : i32
    %262 = vector.broadcast %261 : i32 to vector<32x128xi32>
    %263 = arith.remsi %259, %262 : vector<32x128xi32>
    %c0_i32_100 = arith.constant 0 : i32
    %264 = vector.broadcast %c0_i32_100 : i32 to vector<32x128xi32>
    %265 = arith.cmpi ne, %263, %264 : vector<32x128xi32>
    %c0_i32_101 = arith.constant 0 : i32
    %266 = vector.broadcast %c0_i32_101 : i32 to vector<32x128xi32>
    %267 = arith.cmpi slt, %263, %266 : vector<32x128xi32>
    %c0_i32_102 = arith.constant 0 : i32
    %268 = arith.cmpi slt, %261, %c0_i32_102 : i32
    %269 = vector.broadcast %268 : i1 to vector<32x128xi1>
    %270 = vector.broadcast %269 : vector<32x128xi1> to vector<32x128xi1>
    %271 = arith.xori %267, %270 : vector<32x128xi1>
    %272 = arith.andi %271, %265 : vector<32x128xi1>
    %273 = vector.broadcast %261 : i32 to vector<32x128xi32>
    %274 = arith.addi %263, %273 : vector<32x128xi32>
    %275 = arith.select %272, %274, %263 : vector<32x128xi1>, vector<32x128xi32>
    %c0_i32_103 = arith.constant 0 : i32
    %276 = vector.broadcast %c0_i32_103 : i32 to vector<32x128xi32>
    %277 = arith.cmpi eq, %275, %276 : vector<32x128xi32>
    %cst_104 = arith.constant 0.000000e+00 : f32
    %278 = vector.broadcast %cst_104 : f32 to vector<4x128xf32>
    %279 = vector.extract_strided_slice %258 {offsets = [0, 0], sizes = [28, 128], strides = [1, 1]} : vector<32x128xf32> to vector<28x128xf32>
    %280 = tpu.concatenate %278, %279 in 0 : vector<4x128xf32>, vector<28x128xf32> -> vector<32x128xf32>
    %cst_105 = arith.constant 0.000000e+00 : f32
    %281 = vector.broadcast %cst_105 : f32 to vector<32x128xf32>
    %282 = arith.select %277, %281, %280 : vector<32x128xi1>, vector<32x128xf32>
    %c12_i32 = arith.constant 12 : i32
    %283 = vector.broadcast %c12_i32 : i32 to vector<32x128xi32>
    %284 = arith.cmpi eq, %275, %283 : vector<32x128xi32>
    %cst_106 = arith.constant 0.000000e+00 : f32
    %285 = vector.broadcast %cst_106 : f32 to vector<4x128xf32>
    %286 = vector.extract_strided_slice %258 {offsets = [4, 0], sizes = [28, 128], strides = [1, 1]} : vector<32x128xf32> to vector<28x128xf32>
    %287 = tpu.concatenate %286, %285 in 0 : vector<28x128xf32>, vector<4x128xf32> -> vector<32x128xf32>
    %cst_107 = arith.constant 0.000000e+00 : f32
    %288 = vector.broadcast %cst_107 : f32 to vector<32x128xf32>
    %289 = arith.select %284, %288, %287 : vector<32x128xi1>, vector<32x128xf32>
    %290 = tpu.concatenate %282, %258, %289 in 1 : vector<32x128xf32>, vector<32x128xf32>, vector<32x128xf32> -> vector<32x384xf32>
    %291 = arith.truncf %290 : vector<32x384xf32> to vector<32x384xbf16>
    %c1920 = arith.constant 1920 : index
    %c0_108 = arith.constant 0 : index
    %292 = vector.load %arg1[%c1920, %c0_108] : memref<3360x128xbf16, #tpu.memory_space<vmem>>, vector<384x64xbf16>
    %c6 = arith.constant 6 : index
    %c0_109 = arith.constant 0 : index
    %293 = vector.load %arg2[%c6, %c0_109] : memref<32x128xf32, #tpu.memory_space<vmem>>, vector<1x64xf32>
    %cst_110 = arith.constant dense<0.000000e+00> : vector<32x64xf32>
    %294 = tpu.matmul %291, %292, %cst_110 {dimension_numbers = #tpu.dot_dimension_numbers<[1], [0], [0], [1], [0, 0, 1, 1], [], []>} : vector<32x384xbf16>, vector<384x64xbf16>, vector<32x64xf32> -> vector<32x64xf32>
    %295 = vector.broadcast %293 : vector<1x64xf32> to vector<32x64xf32>
    %296 = arith.addf %294, %295 : vector<32x64xf32>
    %cst_111 = arith.constant 0.000000e+00 : f32
    %297 = vector.broadcast %cst_111 : f32 to vector<32x64xf32>
    %298 = arith.maximumf %296, %297 : vector<32x64xf32>
    %299 = tpu.iota {dimensions = array<i32: 0>} : vector<32x64xi32>
    %c16_i32_112 = arith.constant 16 : i32
    %c0_i32_113 = arith.constant 0 : i32
    %300 = arith.cmpi eq, %c16_i32_112, %c0_i32_113 : i32
    %c1_i32_114 = arith.constant 1 : i32
    %301 = arith.select %300, %c1_i32_114, %c16_i32_112 : i32
    %302 = vector.broadcast %301 : i32 to vector<32x64xi32>
    %303 = arith.remsi %299, %302 : vector<32x64xi32>
    %c0_i32_115 = arith.constant 0 : i32
    %304 = vector.broadcast %c0_i32_115 : i32 to vector<32x64xi32>
    %305 = arith.cmpi ne, %303, %304 : vector<32x64xi32>
    %c0_i32_116 = arith.constant 0 : i32
    %306 = vector.broadcast %c0_i32_116 : i32 to vector<32x64xi32>
    %307 = arith.cmpi slt, %303, %306 : vector<32x64xi32>
    %c0_i32_117 = arith.constant 0 : i32
    %308 = arith.cmpi slt, %301, %c0_i32_117 : i32
    %309 = vector.broadcast %308 : i1 to vector<32x64xi1>
    %310 = vector.broadcast %309 : vector<32x64xi1> to vector<32x64xi1>
    %311 = arith.xori %307, %310 : vector<32x64xi1>
    %312 = arith.andi %311, %305 : vector<32x64xi1>
    %313 = vector.broadcast %301 : i32 to vector<32x64xi32>
    %314 = arith.addi %303, %313 : vector<32x64xi32>
    %315 = arith.select %312, %314, %303 : vector<32x64xi1>, vector<32x64xi32>
    %c0_i32_118 = arith.constant 0 : i32
    %316 = vector.broadcast %c0_i32_118 : i32 to vector<32x64xi32>
    %317 = arith.cmpi eq, %315, %316 : vector<32x64xi32>
    %cst_119 = arith.constant 0.000000e+00 : f32
    %318 = vector.broadcast %cst_119 : f32 to vector<4x64xf32>
    %319 = vector.extract_strided_slice %298 {offsets = [0, 0], sizes = [28, 64], strides = [1, 1]} : vector<32x64xf32> to vector<28x64xf32>
    %320 = tpu.concatenate %318, %319 in 0 : vector<4x64xf32>, vector<28x64xf32> -> vector<32x64xf32>
    %cst_120 = arith.constant 0.000000e+00 : f32
    %321 = vector.broadcast %cst_120 : f32 to vector<32x64xf32>
    %322 = arith.select %317, %321, %320 : vector<32x64xi1>, vector<32x64xf32>
    %c12_i32_121 = arith.constant 12 : i32
    %323 = vector.broadcast %c12_i32_121 : i32 to vector<32x64xi32>
    %324 = arith.cmpi eq, %315, %323 : vector<32x64xi32>
    %cst_122 = arith.constant 0.000000e+00 : f32
    %325 = vector.broadcast %cst_122 : f32 to vector<4x64xf32>
    %326 = vector.extract_strided_slice %298 {offsets = [4, 0], sizes = [28, 64], strides = [1, 1]} : vector<32x64xf32> to vector<28x64xf32>
    %327 = tpu.concatenate %326, %325 in 0 : vector<28x64xf32>, vector<4x64xf32> -> vector<32x64xf32>
    %cst_123 = arith.constant 0.000000e+00 : f32
    %328 = vector.broadcast %cst_123 : f32 to vector<32x64xf32>
    %329 = arith.select %324, %328, %327 : vector<32x64xi1>, vector<32x64xf32>
    %330 = tpu.concatenate %322, %298, %329 in 1 : vector<32x64xf32>, vector<32x64xf32>, vector<32x64xf32> -> vector<32x192xf32>
    %331 = arith.truncf %330 : vector<32x192xf32> to vector<32x192xbf16>
    %c2304 = arith.constant 2304 : index
    %c0_124 = arith.constant 0 : index
    %332 = vector.load %arg1[%c2304, %c0_124] : memref<3360x128xbf16, #tpu.memory_space<vmem>>, vector<192x64xbf16>
    %c7 = arith.constant 7 : index
    %c0_125 = arith.constant 0 : index
    %333 = vector.load %arg2[%c7, %c0_125] : memref<32x128xf32, #tpu.memory_space<vmem>>, vector<1x64xf32>
    %cst_126 = arith.constant dense<0.000000e+00> : vector<32x64xf32>
    %334 = tpu.matmul %331, %332, %cst_126 {dimension_numbers = #tpu.dot_dimension_numbers<[1], [0], [0], [1], [0, 0, 1, 1], [], []>} : vector<32x192xbf16>, vector<192x64xbf16>, vector<32x64xf32> -> vector<32x64xf32>
    %335 = vector.broadcast %333 : vector<1x64xf32> to vector<32x64xf32>
    %336 = arith.addf %334, %335 : vector<32x64xf32>
    %cst_127 = arith.constant 0.000000e+00 : f32
    %337 = vector.broadcast %cst_127 : f32 to vector<32x64xf32>
    %338 = arith.maximumf %336, %337 : vector<32x64xf32>
    %339 = tpu.iota {dimensions = array<i32: 0>} : vector<32x128xi32>
    %c16_i32_128 = arith.constant 16 : i32
    %c0_i32_129 = arith.constant 0 : i32
    %340 = arith.cmpi eq, %c16_i32_128, %c0_i32_129 : i32
    %c1_i32_130 = arith.constant 1 : i32
    %341 = arith.select %340, %c1_i32_130, %c16_i32_128 : i32
    %342 = vector.broadcast %341 : i32 to vector<32x128xi32>
    %343 = arith.remsi %339, %342 : vector<32x128xi32>
    %c0_i32_131 = arith.constant 0 : i32
    %344 = vector.broadcast %c0_i32_131 : i32 to vector<32x128xi32>
    %345 = arith.cmpi ne, %343, %344 : vector<32x128xi32>
    %c0_i32_132 = arith.constant 0 : i32
    %346 = vector.broadcast %c0_i32_132 : i32 to vector<32x128xi32>
    %347 = arith.cmpi slt, %343, %346 : vector<32x128xi32>
    %c0_i32_133 = arith.constant 0 : i32
    %348 = arith.cmpi slt, %341, %c0_i32_133 : i32
    %349 = vector.broadcast %348 : i1 to vector<32x128xi1>
    %350 = vector.broadcast %349 : vector<32x128xi1> to vector<32x128xi1>
    %351 = arith.xori %347, %350 : vector<32x128xi1>
    %352 = arith.andi %351, %345 : vector<32x128xi1>
    %353 = vector.broadcast %341 : i32 to vector<32x128xi32>
    %354 = arith.addi %343, %353 : vector<32x128xi32>
    %355 = arith.select %352, %354, %343 : vector<32x128xi1>, vector<32x128xi32>
    %c0_i32_134 = arith.constant 0 : i32
    %356 = vector.broadcast %c0_i32_134 : i32 to vector<32x128xi32>
    %357 = arith.cmpi eq, %355, %356 : vector<32x128xi32>
    %cst_135 = arith.constant 0.000000e+00 : f32
    %358 = vector.broadcast %cst_135 : f32 to vector<4x128xf32>
    %359 = vector.extract_strided_slice %258 {offsets = [0, 0], sizes = [28, 128], strides = [1, 1]} : vector<32x128xf32> to vector<28x128xf32>
    %360 = tpu.concatenate %358, %359 in 0 : vector<4x128xf32>, vector<28x128xf32> -> vector<32x128xf32>
    %cst_136 = arith.constant 0.000000e+00 : f32
    %361 = vector.broadcast %cst_136 : f32 to vector<32x128xf32>
    %362 = arith.select %357, %361, %360 : vector<32x128xi1>, vector<32x128xf32>
    %c12_i32_137 = arith.constant 12 : i32
    %363 = vector.broadcast %c12_i32_137 : i32 to vector<32x128xi32>
    %364 = arith.cmpi eq, %355, %363 : vector<32x128xi32>
    %cst_138 = arith.constant 0.000000e+00 : f32
    %365 = vector.broadcast %cst_138 : f32 to vector<4x128xf32>
    %366 = vector.extract_strided_slice %258 {offsets = [4, 0], sizes = [28, 128], strides = [1, 1]} : vector<32x128xf32> to vector<28x128xf32>
    %367 = tpu.concatenate %366, %365 in 0 : vector<28x128xf32>, vector<4x128xf32> -> vector<32x128xf32>
    %cst_139 = arith.constant 0.000000e+00 : f32
    %368 = vector.broadcast %cst_139 : f32 to vector<32x128xf32>
    %369 = arith.select %364, %368, %367 : vector<32x128xi1>, vector<32x128xf32>
    %370 = tpu.concatenate %362, %258, %369 in 1 : vector<32x128xf32>, vector<32x128xf32>, vector<32x128xf32> -> vector<32x384xf32>
    %371 = arith.truncf %370 : vector<32x384xf32> to vector<32x384xbf16>
    %c2496 = arith.constant 2496 : index
    %c0_140 = arith.constant 0 : index
    %372 = vector.load %arg1[%c2496, %c0_140] : memref<3360x128xbf16, #tpu.memory_space<vmem>>, vector<384x64xbf16>
    %c8 = arith.constant 8 : index
    %c0_141 = arith.constant 0 : index
    %373 = vector.load %arg2[%c8, %c0_141] : memref<32x128xf32, #tpu.memory_space<vmem>>, vector<1x64xf32>
    %cst_142 = arith.constant dense<0.000000e+00> : vector<32x64xf32>
    %374 = tpu.matmul %371, %372, %cst_142 {dimension_numbers = #tpu.dot_dimension_numbers<[1], [0], [0], [1], [0, 0, 1, 1], [], []>} : vector<32x384xbf16>, vector<384x64xbf16>, vector<32x64xf32> -> vector<32x64xf32>
    %375 = vector.broadcast %373 : vector<1x64xf32> to vector<32x64xf32>
    %376 = arith.addf %374, %375 : vector<32x64xf32>
    %cst_143 = arith.constant 0.000000e+00 : f32
    %377 = vector.broadcast %cst_143 : f32 to vector<32x64xf32>
    %378 = arith.maximumf %376, %377 : vector<32x64xf32>
    %379 = arith.addf %338, %378 : vector<32x64xf32>
    %cst_144 = arith.constant 0.000000e+00 : f32
    %380 = vector.broadcast %cst_144 : f32 to vector<4x64xf32>
    %381 = vector.extract_strided_slice %379 {offsets = [4, 0], sizes = [28, 64], strides = [1, 1]} : vector<32x64xf32> to vector<28x64xf32>
    %382 = tpu.concatenate %381, %380 in 0 : vector<28x64xf32>, vector<4x64xf32> -> vector<32x64xf32>
    %383 = arith.maximumf %379, %382 : vector<32x64xf32>
    %cst_145 = arith.constant 0.000000e+00 : f32
    %384 = vector.broadcast %cst_145 : f32 to vector<32x16xf32>
    %385 = vector.extract_strided_slice %383 {offsets = [0, 16], sizes = [32, 48], strides = [1, 1]} : vector<32x64xf32> to vector<32x48xf32>
    %386 = tpu.concatenate %385, %384 in 1 : vector<32x48xf32>, vector<32x16xf32> -> vector<32x64xf32>
    %387 = arith.maximumf %383, %386 : vector<32x64xf32>
    %388 = tpu.iota {dimensions = array<i32: 0>} : vector<32x64xi32>
    %c16_i32_146 = arith.constant 16 : i32
    %c0_i32_147 = arith.constant 0 : i32
    %389 = arith.cmpi eq, %c16_i32_146, %c0_i32_147 : i32
    %c1_i32_148 = arith.constant 1 : i32
    %390 = arith.select %389, %c1_i32_148, %c16_i32_146 : i32
    %391 = vector.broadcast %390 : i32 to vector<32x64xi32>
    %392 = arith.remsi %388, %391 : vector<32x64xi32>
    %c0_i32_149 = arith.constant 0 : i32
    %393 = vector.broadcast %c0_i32_149 : i32 to vector<32x64xi32>
    %394 = arith.cmpi ne, %392, %393 : vector<32x64xi32>
    %c0_i32_150 = arith.constant 0 : i32
    %395 = vector.broadcast %c0_i32_150 : i32 to vector<32x64xi32>
    %396 = arith.cmpi slt, %392, %395 : vector<32x64xi32>
    %c0_i32_151 = arith.constant 0 : i32
    %397 = arith.cmpi slt, %390, %c0_i32_151 : i32
    %398 = vector.broadcast %397 : i1 to vector<32x64xi1>
    %399 = vector.broadcast %398 : vector<32x64xi1> to vector<32x64xi1>
    %400 = arith.xori %396, %399 : vector<32x64xi1>
    %401 = arith.andi %400, %394 : vector<32x64xi1>
    %402 = vector.broadcast %390 : i32 to vector<32x64xi32>
    %403 = arith.addi %392, %402 : vector<32x64xi32>
    %404 = arith.select %401, %403, %392 : vector<32x64xi1>, vector<32x64xi32>
    %c0_i32_152 = arith.constant 0 : i32
    %405 = vector.broadcast %c0_i32_152 : i32 to vector<32x64xi32>
    %406 = arith.cmpi eq, %404, %405 : vector<32x64xi32>
    %cst_153 = arith.constant 0.000000e+00 : f32
    %407 = vector.broadcast %cst_153 : f32 to vector<8x64xf32>
    %408 = vector.extract_strided_slice %387 {offsets = [0, 0], sizes = [24, 64], strides = [1, 1]} : vector<32x64xf32> to vector<24x64xf32>
    %409 = tpu.concatenate %407, %408 in 0 : vector<8x64xf32>, vector<24x64xf32> -> vector<32x64xf32>
    %cst_154 = arith.constant 0.000000e+00 : f32
    %410 = vector.broadcast %cst_154 : f32 to vector<32x64xf32>
    %411 = arith.select %406, %410, %409 : vector<32x64xi1>, vector<32x64xf32>
    %c8_i32 = arith.constant 8 : i32
    %412 = vector.broadcast %c8_i32 : i32 to vector<32x64xi32>
    %413 = arith.cmpi eq, %404, %412 : vector<32x64xi32>
    %cst_155 = arith.constant 0.000000e+00 : f32
    %414 = vector.broadcast %cst_155 : f32 to vector<8x64xf32>
    %415 = vector.extract_strided_slice %387 {offsets = [8, 0], sizes = [24, 64], strides = [1, 1]} : vector<32x64xf32> to vector<24x64xf32>
    %416 = tpu.concatenate %415, %414 in 0 : vector<24x64xf32>, vector<8x64xf32> -> vector<32x64xf32>
    %cst_156 = arith.constant 0.000000e+00 : f32
    %417 = vector.broadcast %cst_156 : f32 to vector<32x64xf32>
    %418 = arith.select %413, %417, %416 : vector<32x64xi1>, vector<32x64xf32>
    %419 = tpu.concatenate %411, %387, %418 in 1 : vector<32x64xf32>, vector<32x64xf32>, vector<32x64xf32> -> vector<32x192xf32>
    %420 = arith.truncf %419 : vector<32x192xf32> to vector<32x192xbf16>
    %c2880 = arith.constant 2880 : index
    %c0_157 = arith.constant 0 : index
    %421 = vector.load %arg1[%c2880, %c0_157] : memref<3360x128xbf16, #tpu.memory_space<vmem>>, vector<192x32xbf16>
    %c9 = arith.constant 9 : index
    %c0_158 = arith.constant 0 : index
    %422 = vector.load %arg2[%c9, %c0_158] : memref<32x128xf32, #tpu.memory_space<vmem>>, vector<1x32xf32>
    %cst_159 = arith.constant dense<0.000000e+00> : vector<32x32xf32>
    %423 = tpu.matmul %420, %421, %cst_159 {dimension_numbers = #tpu.dot_dimension_numbers<[1], [0], [0], [1], [0, 0, 1, 1], [], []>} : vector<32x192xbf16>, vector<192x32xbf16>, vector<32x32xf32> -> vector<32x32xf32>
    %424 = vector.broadcast %422 : vector<1x32xf32> to vector<32x32xf32>
    %425 = arith.addf %423, %424 : vector<32x32xf32>
    %cst_160 = arith.constant 0.000000e+00 : f32
    %426 = vector.broadcast %cst_160 : f32 to vector<32x32xf32>
    %427 = arith.maximumf %425, %426 : vector<32x32xf32>
    %428 = tpu.iota {dimensions = array<i32: 0>} : vector<32x32xi32>
    %c16_i32_161 = arith.constant 16 : i32
    %c0_i32_162 = arith.constant 0 : i32
    %429 = arith.cmpi eq, %c16_i32_161, %c0_i32_162 : i32
    %c1_i32_163 = arith.constant 1 : i32
    %430 = arith.select %429, %c1_i32_163, %c16_i32_161 : i32
    %431 = vector.broadcast %430 : i32 to vector<32x32xi32>
    %432 = arith.remsi %428, %431 : vector<32x32xi32>
    %c0_i32_164 = arith.constant 0 : i32
    %433 = vector.broadcast %c0_i32_164 : i32 to vector<32x32xi32>
    %434 = arith.cmpi ne, %432, %433 : vector<32x32xi32>
    %c0_i32_165 = arith.constant 0 : i32
    %435 = vector.broadcast %c0_i32_165 : i32 to vector<32x32xi32>
    %436 = arith.cmpi slt, %432, %435 : vector<32x32xi32>
    %c0_i32_166 = arith.constant 0 : i32
    %437 = arith.cmpi slt, %430, %c0_i32_166 : i32
    %438 = vector.broadcast %437 : i1 to vector<32x32xi1>
    %439 = vector.broadcast %438 : vector<32x32xi1> to vector<32x32xi1>
    %440 = arith.xori %436, %439 : vector<32x32xi1>
    %441 = arith.andi %440, %434 : vector<32x32xi1>
    %442 = vector.broadcast %430 : i32 to vector<32x32xi32>
    %443 = arith.addi %432, %442 : vector<32x32xi32>
    %444 = arith.select %441, %443, %432 : vector<32x32xi1>, vector<32x32xi32>
    %c0_i32_167 = arith.constant 0 : i32
    %445 = vector.broadcast %c0_i32_167 : i32 to vector<32x32xi32>
    %446 = arith.cmpi eq, %444, %445 : vector<32x32xi32>
    %cst_168 = arith.constant 0.000000e+00 : f32
    %447 = vector.broadcast %cst_168 : f32 to vector<8x32xf32>
    %448 = vector.extract_strided_slice %427 {offsets = [0, 0], sizes = [24, 32], strides = [1, 1]} : vector<32x32xf32> to vector<24x32xf32>
    %449 = tpu.concatenate %447, %448 in 0 : vector<8x32xf32>, vector<24x32xf32> -> vector<32x32xf32>
    %cst_169 = arith.constant 0.000000e+00 : f32
    %450 = vector.broadcast %cst_169 : f32 to vector<32x32xf32>
    %451 = arith.select %446, %450, %449 : vector<32x32xi1>, vector<32x32xf32>
    %c8_i32_170 = arith.constant 8 : i32
    %452 = vector.broadcast %c8_i32_170 : i32 to vector<32x32xi32>
    %453 = arith.cmpi eq, %444, %452 : vector<32x32xi32>
    %cst_171 = arith.constant 0.000000e+00 : f32
    %454 = vector.broadcast %cst_171 : f32 to vector<8x32xf32>
    %455 = vector.extract_strided_slice %427 {offsets = [8, 0], sizes = [24, 32], strides = [1, 1]} : vector<32x32xf32> to vector<24x32xf32>
    %456 = tpu.concatenate %455, %454 in 0 : vector<24x32xf32>, vector<8x32xf32> -> vector<32x32xf32>
    %cst_172 = arith.constant 0.000000e+00 : f32
    %457 = vector.broadcast %cst_172 : f32 to vector<32x32xf32>
    %458 = arith.select %453, %457, %456 : vector<32x32xi1>, vector<32x32xf32>
    %459 = tpu.concatenate %451, %427, %458 in 1 : vector<32x32xf32>, vector<32x32xf32>, vector<32x32xf32> -> vector<32x96xf32>
    %460 = arith.truncf %459 : vector<32x96xf32> to vector<32x96xbf16>
    %c3072 = arith.constant 3072 : index
    %c0_173 = arith.constant 0 : index
    %461 = vector.load %arg1[%c3072, %c0_173] : memref<3360x128xbf16, #tpu.memory_space<vmem>>, vector<96x32xbf16>
    %c10 = arith.constant 10 : index
    %c0_174 = arith.constant 0 : index
    %462 = vector.load %arg2[%c10, %c0_174] : memref<32x128xf32, #tpu.memory_space<vmem>>, vector<1x32xf32>
    %cst_175 = arith.constant dense<0.000000e+00> : vector<32x32xf32>
    %463 = tpu.matmul %460, %461, %cst_175 {dimension_numbers = #tpu.dot_dimension_numbers<[1], [0], [0], [1], [0, 0, 1, 1], [], []>} : vector<32x96xbf16>, vector<96x32xbf16>, vector<32x32xf32> -> vector<32x32xf32>
    %464 = vector.broadcast %462 : vector<1x32xf32> to vector<32x32xf32>
    %465 = arith.addf %463, %464 : vector<32x32xf32>
    %cst_176 = arith.constant 0.000000e+00 : f32
    %466 = vector.broadcast %cst_176 : f32 to vector<32x32xf32>
    %467 = arith.maximumf %465, %466 : vector<32x32xf32>
    %468 = tpu.iota {dimensions = array<i32: 0>} : vector<32x64xi32>
    %c16_i32_177 = arith.constant 16 : i32
    %c0_i32_178 = arith.constant 0 : i32
    %469 = arith.cmpi eq, %c16_i32_177, %c0_i32_178 : i32
    %c1_i32_179 = arith.constant 1 : i32
    %470 = arith.select %469, %c1_i32_179, %c16_i32_177 : i32
    %471 = vector.broadcast %470 : i32 to vector<32x64xi32>
    %472 = arith.remsi %468, %471 : vector<32x64xi32>
    %c0_i32_180 = arith.constant 0 : i32
    %473 = vector.broadcast %c0_i32_180 : i32 to vector<32x64xi32>
    %474 = arith.cmpi ne, %472, %473 : vector<32x64xi32>
    %c0_i32_181 = arith.constant 0 : i32
    %475 = vector.broadcast %c0_i32_181 : i32 to vector<32x64xi32>
    %476 = arith.cmpi slt, %472, %475 : vector<32x64xi32>
    %c0_i32_182 = arith.constant 0 : i32
    %477 = arith.cmpi slt, %470, %c0_i32_182 : i32
    %478 = vector.broadcast %477 : i1 to vector<32x64xi1>
    %479 = vector.broadcast %478 : vector<32x64xi1> to vector<32x64xi1>
    %480 = arith.xori %476, %479 : vector<32x64xi1>
    %481 = arith.andi %480, %474 : vector<32x64xi1>
    %482 = vector.broadcast %470 : i32 to vector<32x64xi32>
    %483 = arith.addi %472, %482 : vector<32x64xi32>
    %484 = arith.select %481, %483, %472 : vector<32x64xi1>, vector<32x64xi32>
    %c0_i32_183 = arith.constant 0 : i32
    %485 = vector.broadcast %c0_i32_183 : i32 to vector<32x64xi32>
    %486 = arith.cmpi eq, %484, %485 : vector<32x64xi32>
    %cst_184 = arith.constant 0.000000e+00 : f32
    %487 = vector.broadcast %cst_184 : f32 to vector<8x64xf32>
    %488 = vector.extract_strided_slice %387 {offsets = [0, 0], sizes = [24, 64], strides = [1, 1]} : vector<32x64xf32> to vector<24x64xf32>
    %489 = tpu.concatenate %487, %488 in 0 : vector<8x64xf32>, vector<24x64xf32> -> vector<32x64xf32>
    %cst_185 = arith.constant 0.000000e+00 : f32
    %490 = vector.broadcast %cst_185 : f32 to vector<32x64xf32>
    %491 = arith.select %486, %490, %489 : vector<32x64xi1>, vector<32x64xf32>
    %c8_i32_186 = arith.constant 8 : i32
    %492 = vector.broadcast %c8_i32_186 : i32 to vector<32x64xi32>
    %493 = arith.cmpi eq, %484, %492 : vector<32x64xi32>
    %cst_187 = arith.constant 0.000000e+00 : f32
    %494 = vector.broadcast %cst_187 : f32 to vector<8x64xf32>
    %495 = vector.extract_strided_slice %387 {offsets = [8, 0], sizes = [24, 64], strides = [1, 1]} : vector<32x64xf32> to vector<24x64xf32>
    %496 = tpu.concatenate %495, %494 in 0 : vector<24x64xf32>, vector<8x64xf32> -> vector<32x64xf32>
    %cst_188 = arith.constant 0.000000e+00 : f32
    %497 = vector.broadcast %cst_188 : f32 to vector<32x64xf32>
    %498 = arith.select %493, %497, %496 : vector<32x64xi1>, vector<32x64xf32>
    %499 = tpu.concatenate %491, %387, %498 in 1 : vector<32x64xf32>, vector<32x64xf32>, vector<32x64xf32> -> vector<32x192xf32>
    %500 = arith.truncf %499 : vector<32x192xf32> to vector<32x192xbf16>
    %c3168 = arith.constant 3168 : index
    %c0_189 = arith.constant 0 : index
    %501 = vector.load %arg1[%c3168, %c0_189] : memref<3360x128xbf16, #tpu.memory_space<vmem>>, vector<192x32xbf16>
    %c11 = arith.constant 11 : index
    %c0_190 = arith.constant 0 : index
    %502 = vector.load %arg2[%c11, %c0_190] : memref<32x128xf32, #tpu.memory_space<vmem>>, vector<1x32xf32>
    %cst_191 = arith.constant dense<0.000000e+00> : vector<32x32xf32>
    %503 = tpu.matmul %500, %501, %cst_191 {dimension_numbers = #tpu.dot_dimension_numbers<[1], [0], [0], [1], [0, 0, 1, 1], [], []>} : vector<32x192xbf16>, vector<192x32xbf16>, vector<32x32xf32> -> vector<32x32xf32>
    %504 = vector.broadcast %502 : vector<1x32xf32> to vector<32x32xf32>
    %505 = arith.addf %503, %504 : vector<32x32xf32>
    %cst_192 = arith.constant 0.000000e+00 : f32
    %506 = vector.broadcast %cst_192 : f32 to vector<32x32xf32>
    %507 = arith.maximumf %505, %506 : vector<32x32xf32>
    %508 = arith.addf %467, %507 : vector<32x32xf32>
    %cst_193 = arith.constant 0.000000e+00 : f32
    %509 = vector.broadcast %cst_193 : f32 to vector<8x32xf32>
    %510 = vector.extract_strided_slice %508 {offsets = [8, 0], sizes = [24, 32], strides = [1, 1]} : vector<32x32xf32> to vector<24x32xf32>
    %511 = tpu.concatenate %510, %509 in 0 : vector<24x32xf32>, vector<8x32xf32> -> vector<32x32xf32>
    %512 = arith.maximumf %508, %511 : vector<32x32xf32>
    %cst_194 = arith.constant 0.000000e+00 : f32
    %513 = vector.broadcast %cst_194 : f32 to vector<32x16xf32>
    %514 = vector.extract_strided_slice %512 {offsets = [0, 16], sizes = [32, 16], strides = [1, 1]} : vector<32x32xf32> to vector<32x16xf32>
    %515 = tpu.concatenate %514, %513 in 1 : vector<32x16xf32>, vector<32x16xf32> -> vector<32x32xf32>
    %516 = arith.maximumf %512, %515 : vector<32x32xf32>
    %517 = vector.extract_strided_slice %516 {offsets = [0, 0], sizes = [32, 16], strides = [1, 1]} : vector<32x32xf32> to vector<32x16xf32>
    %518 = arith.truncf %517 : vector<32x16xf32> to vector<32x16xbf16>
    %c16 = arith.constant 16 : index
    %c0_195 = arith.constant 0 : index
    %519 = vector.load %arg2[%c16, %c0_195] : memref<32x128xf32, #tpu.memory_space<vmem>>, vector<16x128xf32>
    %520 = arith.truncf %519 : vector<16x128xf32> to vector<16x128xbf16>
    %c12 = arith.constant 12 : index
    %c0_196 = arith.constant 0 : index
    %521 = vector.load %arg2[%c12, %c0_196] : memref<32x128xf32, #tpu.memory_space<vmem>>, vector<1x128xf32>
    %cst_197 = arith.constant dense<0.000000e+00> : vector<32x128xf32>
    %522 = tpu.matmul %518, %520, %cst_197 {dimension_numbers = #tpu.dot_dimension_numbers<[1], [0], [0], [1], [0, 0, 1, 1], [], []>} : vector<32x16xbf16>, vector<16x128xbf16>, vector<32x128xf32> -> vector<32x128xf32>
    %523 = vector.broadcast %521 : vector<1x128xf32> to vector<32x128xf32>
    %524 = arith.addf %522, %523 : vector<32x128xf32>
    %c0_198 = arith.constant 0 : index
    %c0_199 = arith.constant 0 : index
    %525 = vector.load %arg3[%c0_198, %c0_199] : memref<32x128xf32, #tpu.memory_space<vmem>>, vector<32x128xf32>
    tpu.vector_store %arg3[%c0_198, %c0_199], %524 {strides = array<i32>} : memref<32x128xf32, #tpu.memory_space<vmem>>, vector<32x128xf32>,
    return
  }
}

</mosaic_0001>

<bundles_post_ra>
// kernel: forward.1
= control target key start
LH: loop header
LB: loop body
LE: loop exit
PB: predicated region body
PF: predicated region fallthrough
CT: control target
= control target key end

     0   :  { %8 = vsyncpa [#allocation3], 0  ;;  %s4456_s12 = smov [#allocation2]   ;;  %s4976_s0 = inlined_call_operand.vmem [shape: f32[32,64], index: 0, kind: input, shape index: {}]   ;;  %s4977_s1 = inlined_call_operand.hbm [shape: bf16[3360,128], index: 1, kind: input, shape index: {}]   ;;  %s4978_s2 = inlined_call_operand.vmem [shape: f32[32,128], index: 2, kind: input, shape index: {}]   ;;  %s4979_s3 = inlined_call_operand.vmem [shape: f32[32,128], index: 3, kind: output, shape index: {}]  }
   0x1   :  { %s16_s13 = sshll.u32 %s4456_s12, 4  ;;  %s4432_s16 = scalar_lea.hbm %s4977_s1, 26880  ;;  %s17_s13 = int_to_ptr.vmem [resolvable:$true] %s16_s13 }
   0x2   :  { %p4433_p0 = scmp.ne.s32.totalorder %s4977_s1, %s4432_s16  ;;  %p4436_p1 = scmp.lt.u32.totalorder %s4432_s16, %s4977_s1 }
   0x4   :  { %p4438_p2 = pnand %p4436_p1, %p4433_p0 }
   0x6   :  { %4441 = shalt.err (!%p4438_p2)
}
   0x7   :  { %s4442_s21 = scalar_lea.vmem %s17_s13, 26880  ;;  %p4447_p4 = scmp.lt.s32.totalorder %s17_s13, %s17_s13 }
   0x8   :  { %p4443_p3 = scmp.ne.s32.totalorder %s17_s13, %s4442_s21  ;;  %p4448_p5 = scmp.lt.s32.totalorder %s4442_s21, %s4442_s21 }
   0xa   :  { %p4449_p6 = por %p4448_p5, %p4447_p4 }
   0xc   :  { %p4450_p7 = pnand %p4449_p6, %p4443_p3 }
   0xe   :  { %4453 = shalt.err (!%p4450_p7)
}
   0xf   :  { %s4457_s22 = smov 64   ;;  %s4458_s23 = smov 4  }
  0x10   :  { %22 = dma.hbm_to_vmem [thread:$0]  %s4977_s1, 26880, %s17_s13, [#allocation3], %s4457_s22, %s4457_s22, %s4458_s23  }
  0x11   :  { %4454 = dma.done.wait [#allocation3], 26880  }
  0x12   :  { %4455 = vsyncadd [#allocation3], 4294940416  ;;  %v33_v0 = vlaneseq  ;;  %v4459_v1 = vmov 0   ;;  %vm94_vm0 = vcmask 1040384   ;;  %v4506_v4 = vld [vmem:[%s4976_s0] sm:$0xff]  ;;  %v30_v5 = vld [vmem:[%s4976_s0 + $0x8] sm:$0xff] }
  0x13   :  { %260 = vmatprep.subr.bf16.mxu0 %v4459_v1  ;;  %v31_v6 = vld [vmem:[%s4976_s0 + $0x10] sm:$0xff]  ;;  %vm115_vm1 = vcmask 1046528   ;;  %v96_v9 = vrot.slane %v30_v5, 7  ;;  %v117_v10 = vrot.slane %v30_v5, 1  ;;  %v4132_v11 = vpack.i.bf16 %v30_v5, %v4506_v4  ;;  %v32_v13 = vld [vmem:[%s4976_s0 + $0x18] sm:$0xff]  ;;  %v4222_v17 = vld [vmem:[#allocation2] sm:$0xff]  }
  0x14   :  { %v4500_v2 = vshrl.u32 %v33_v0, 7  ;;  %v95_v12 = vrot.slane %v4506_v4, 7  ;;  %v116_v14 = vrot.slane %v4506_v4, 1  ;;  %v100_v15 = vrot.slane %v32_v13, 7  ;;  %261 = vmatpush1.bf16.msra.mxu0 %v4222_v17  ;;  %v4223_v22 = vld [vmem:[#allocation2 + $0x8] sm:$0xff]   ;;  %v4224_v31 = vld [vmem:[#allocation2 + $0x10] sm:$0xff]  }
  0x15   :  { %v121_v16 = vrot.slane %v32_v13, 1  ;;  %4133 = vrot.lane.b32.xlu0 %v4132_v11, %s4457_s22  ;;  %v4137_v18 = vpack.i.bf16 %v32_v13, %v31_v6  ;;  %v98_v19 = vrot.slane %v31_v6, 7  ;;  %v119_v20 = vrot.slane %v31_v6, 1  ;;  %262 = vmatprep.subr.bf16.mxu0 %v4459_v1  ;;  %v4225_v35 = vld [vmem:[#allocation2 + $0x18] sm:$0xff]   ;;  %v4226_v36 = vld [vmem:[#allocation2 + $0x20] sm:$0xff]   ;;  %v4227_v37 = vld [vmem:[#allocation2 + $0x28] sm:$0xff]  }
  0x16   :  { %v35_v3 = vadd.s32 8, %v4500_v2  ;;  %v37_v8 = vadd.s32 24, %v4500_v2  ;;  %v4527_v21 = vsel %vm94_vm0, %v95_v12, %v96_v9  ;;  %v118_v23 = vsel %vm115_vm1, %v116_v14, %v117_v10  ;;  %v4228_v38 = vld [vmem:[#allocation2 + $0x30] sm:$0xff]   ;;  %v4229_v39 = vld [vmem:[#allocation2 + $0x38] sm:$0xff]   ;;  %v4230_v40 = vld [vmem:[#allocation2 + $0x40] sm:$0xff]   ;;  %s4461_s11 = smov 120  }
  0x17   :  { %v120_v25 = vsel %vm115_vm1, %v117_v10, %v119_v20  ;;  %v122_v26 = vsel %vm115_vm1, %v119_v20, %v121_v16  ;;  %v4536_v27 = vsel %vm94_vm0, %v96_v9, %v98_v19  ;;  %v4539_v28 = vsel %vm94_vm0, %v98_v19, %v100_v15  ;;  %v4231_v42 = vld [vmem:[#allocation2 + $0x48] sm:$0xff]   ;;  %v4232_v45 = vld [vmem:[#allocation2 + $0x50] sm:$0xff]   ;;  %v4233_v46 = vld [vmem:[#allocation2 + $0x58] sm:$0xff]   ;;  %s4462_s18 = smov 112   ;;  %s4464_s28 = smov 32  }
  0x18   :  { %v4514_v7 = vand.u32 15, %v35_v3  ;;  %v4530_v24 = vand.u32 15, %v37_v8  ;;  %v127_v29 = vsel %vm115_vm1, %v121_v16, 0.0  ;;  %263 = vmatpush1.bf16.msra.mxu0 %v4223_v22  ;;  %vm144_vm3 = vcmask 523264   ;;  %v4246_v50 = vld [vmem:[#allocation2 + $0xa0] sm:$0xff]   ;;  %v4248_v52 = vld [vmem:[#allocation2 + $0xa8] sm:$0xff]  }
  0x19   :  { %4138 = vrot.lane.b32.xlu0 %v4137_v18, %s4457_s22  ;;  %264 = vmatprep.subr.bf16.mxu0 %v4459_v1  ;;  %v36_v41 = vadd.s32 16, %v4500_v2  ;;  %v42_v43 = vand.u32 15, %v4500_v2  ;;  %v106_v47 = vsel %vm94_vm0, 0.0, %v95_v12  ;;  %v4247_v51 = vld [vmem:[#allocation2 + $0x60] sm:$0xff]   ;;  %v4249_v55 = vld [vmem:[#allocation2 + $0x68] sm:$0xff]   ;;  %v4250_v56 = vld [vmem:[#allocation2 + $0xb0] sm:$0xff]  }
  0x1a   :  { %vm112_vm2 = vcmp.eq.s32.totalorder %v4514_v7, 15  ;;  %vm114_vm4 = vcmp.eq.s32.totalorder %v4530_v24, 15  ;;  %3742 = vmatprep.subr.bf16.mxu1 %v4246_v50  ;;  %v4251_v57 = vld [vmem:[#allocation2 + $0x70] sm:$0xff]   ;;  %v4252_v58 = vld [vmem:[#allocation2 + $0xb8] sm:$0xff]   ;;  %v4254_v60 = vld [vmem:[#allocation2 + $0xc0] sm:$0xff]   ;;  %vm4460_vm8 = vmmov 1  }
  0x1b   :  { %v129_v30 = vsel %vm112_vm2, 0.0, %v120_v25  ;;  %v131_v33 = vsel %vm114_vm4, 0.0, %v127_v29  ;;  %v56_v44 = vand.u32 15, %v36_v41  ;;  %vm4571_vm5 = vcmp.eq.s32.totalorder %v42_v43, 0  ;;  %3743 = vmatpush3.bf16.msra.mxu1 %v4247_v51  ;;  %v4253_v59 = vld [vmem:[#allocation2 + $0x78] sm:$0xff]   ;;  %v4255_v61 = vld [vmem:[#allocation2 + $0x80] sm:$0xff]   ;;  %vm3447_vm11 = vmneg %vm112_vm2 }
  0x1c   :  { %v4546_v32 = vpack.c.bf16 %v129_v30, %v118_v23  ;;  %v4554_v34 = vpack.c.bf16 %v131_v33, %v122_v26  ;;  %265 = vmatpush1.bf16.msra.mxu0 %v4224_v31  ;;  %v107_v53 = vsel %vm4571_vm5, 0.0, %v106_v47  ;;  %3744 = vmatprep.subr.bf16.mxu1 %v4248_v52  ;;  %v4256_v62 = vld [vmem:[#allocation2 + $0xc8] sm:$0xff]   ;;  %v4234_v3 = vld [vmem:[#allocation2 + $0x120] sm:$0xff]   ;;  %v4236_v15 = vld [vmem:[#allocation2 + $0x130] sm:$0xff]   ;;  %vm882_vm2 = vcmask 1045504  }
  0x1d   :  { %266 = vmatprep.subr.bf16.mxu0 %v4459_v1  ;;  %vm4575_vm6 = vcmp.eq.s32.totalorder %v56_v44, 0  ;;  %v4235_v11 = vld [vmem:[#allocation2 + $0x128] sm:$0xff]   ;;  %v4237_v16 = vld [vmem:[#allocation2 + $0x138] sm:$0xff]   ;;  %v4238_v17 = vld [vmem:[#allocation2 + $0x140] sm:$0xff]  }
  0x1e   :  { %3412 = vmatprep.mubr.msk.bf16.mxu0 %vm144_vm3, %v4546_v32  ;;  %v109_v54 = vsel %vm4575_vm6, 0.0, %v4536_v27  ;;  %v4239_v18 = vld [vmem:[#allocation2 + $0x148] sm:$0xff]   ;;  %v4240_v19 = vld [vmem:[#allocation2 + $0x150] sm:$0xff]   ;;  %v4241_v20 = vld [vmem:[#allocation2 + $0x158] sm:$0xff]  }
  0x1f   :  { %3745 = vmatpush3.bf16.msra.mxu1 %v4249_v55  ;;  %v4243_v22 = vld [vmem:[#allocation2 + $0x168] sm:$0xff]   ;;  %v4244_v23 = vld [vmem:[#allocation2 + $0x170] sm:$0xff]   ;;  %v4245_v25 = vld [vmem:[#allocation2 + $0x178] sm:$0xff]  }
  0x20   :  { %267 = vmatpush1.bf16.msra.mxu0 %v4225_v35  ;;  %3746 = vmatprep.subr.bf16.mxu1 %v4250_v56  ;;  %v4257_v26 = vld [vmem:[#allocation2 + $0x88] sm:$0xff]   ;;  %v4258_v27 = vld [vmem:[#allocation2 + $0xd0] sm:$0xff]   ;;  %v4260_v29 = vld [vmem:[#allocation2 + $0xd8] sm:$0xff]  }
  0x21   :  { %268 = vmatprep.subr.bf16.mxu0 %v4459_v1  ;;  %v4261_v30 = vld [vmem:[#allocation2 + $0x98] sm:$0xff]   ;;  %v4262_v31 = vld [vmem:[#allocation2 + $0xe0] sm:$0xff]   ;;  %vm3439_vm7 = vmneg %vm4571_vm5 }
  0x22   :  { %vm4615_vm9 = vmpackc.low %vm4460_vm8, %vm3439_vm7  ;;  %vm3741_vm7 = vcmp.ne.s32.totalorder %v4530_v24, 14  ;;  %v3718_v49 = vld [vmem:[%s4978_s2 + $0xb] ss:$0 sm:$0xff] }
  0x23   :  { %3747 = vmatpush3.bf16.msra.mxu1 %v4251_v57  ;;  %v4263_v57 = vld [vmem:[#allocation2 + $0xe8] sm:$0xff]   ;;  %vm3443_vm10 = vmneg %vm4575_vm6 }
  0x24   :  { %269 = vmatpush1.bf16.msra.mxu0 %v4226_v36  ;;  %3748 = vmatprep.subr.bf16.mxu1 %v4252_v58  ;;  %vm4632_vm12 = vmpackc.low %vm4460_vm8, %vm3443_vm10 }
  0x25   :  { %270 = vmatprep.subr.bf16.mxu0 %v4459_v1  ;;  %vm3448_vm13 = vmpackc.low %vm3447_vm11, %vm4460_vm8 }
  0x26   :  { %vm3451_vm14 = vmneg %vm114_vm4  ;;  %vm3740_vm4 = vcmp.ne.s32.totalorder %v4514_v7, 14 }
  0x27   :  { %3749 = vmatpush3.bf16.msra.mxu1 %v4253_v59  ;;  %vm3452_vm15 = vmpackc.low %vm3451_vm14, %vm4460_vm8  ;;  %vm1915_vm14 = vcmp.eq.s32.totalorder %v4514_v7, 12 }
  0x28   :  { %271 = vmatpush1.bf16.msra.mxu0 %v4227_v37  ;;  %3750 = vmatprep.subr.bf16.mxu1 %v4254_v60  ;;  %vm4681_vm10 = vmpackc.low %vm3740_vm4, %vm4460_vm8 }
  0x29   :  { %272 = vmatprep.subr.bf16.mxu0 %v4459_v1  ;;  %vm4693_vm11 = vmpackc.low %vm3741_vm7, %vm4460_vm8 }
  0x2b   :  { %3751 = vmatpush3.bf16.msra.mxu1 %v4255_v61 }
  0x2c   :  { %273 = vmatpush1.bf16.msra.mxu0 %v4228_v38  ;;  %3752 = vmatprep.subr.bf16.mxu1 %v4256_v62 }
  0x2d   :  { %274 = vmatprep.subr.bf16.mxu0 %v4459_v1 }
  0x2f   :  { %3753 = vmatpush3.bf16.msra.mxu1 %v4257_v26 }
  0x30   :  { %275 = vmatpush1.bf16.msra.mxu0 %v4229_v39  ;;  %3754 = vmatprep.subr.bf16.mxu1 %v4258_v27 }
  0x31   :  { %276 = vmatprep.subr.bf16.mxu0 %v4459_v1 }
  0x34   :  { %277 = vmatpush1.bf16.msra.mxu0 %v4230_v40 }
  0x35   :  { %278 = vmatprep.subr.bf16.mxu0 %v4459_v1 }
  0x38   :  { %279 = vmatpush1.bf16.msra.mxu0 %v4231_v42 }
  0x39   :  { %280 = vmatprep.subr.bf16.mxu0 %v4459_v1 }
  0x3c   :  { %281 = vmatpush1.bf16.msra.mxu0 %v4232_v45 }
  0x3d   :  { %282 = vmatprep.subr.bf16.mxu0 %v4459_v1 }
  0x40   :  { %283 = vmatpush1.bf16.msra.mxu0 %v4233_v46 }
  0x41   :  { %755 = vmatprep.subr.bf16.mxu0 %v4459_v1 }
  0x87   :  { %v4134_v63 = vpop.permute.xlu0 %4133 }
  0x88   :  { %v4136_v0 = vunpack.i.h.bf16 %v4134_v63  ;;  %v4135_v2 = vunpack.i.l.bf16 %v4134_v63 }
  0x8a   :  { %v145_v4 = vsel %vm144_vm3, %v107_v53, %v4135_v2  ;;  %v146_v5 = vsel %vm144_vm3, %v4527_v21, %v4136_v0  ;;  %v4242_v21 = vld [vmem:[#allocation2 + $0x160] sm:$0xff]   ;;  %v4264_v0 = vld [vmem:[#allocation2 + $0xf0] sm:$0xff]  }
  0x8b   :  { %v149_v6 = vpack.c.bf16 %v146_v5, %v145_v4  ;;  %v4139_v8 = vpop.permute.xlu0 %4138  ;;  %v4386_v53 = vld [vmem:[#allocation2 + $0x4a0] sm:$0xff]  }
  0x8c   :  { %v4141_v9 = vunpack.i.h.bf16 %v4139_v8  ;;  %v4140_v10 = vunpack.i.l.bf16 %v4139_v8 }
  0x8d   :  { %293 = vmatmul.mubr.bf16.vlgmr.msra.gmra.mrb[0].mxu0 %v149_v6 }
  0x8e   :  { %756 = vmatpush1.bf16.msra.mxu0 %v4234_v3  ;;  %3413 = vmatprep.mubr.msk.bf16.mxu0 %vm144_vm3, %v4554_v34  ;;  %v147_v12 = vsel %vm144_vm3, %v109_v54, %v4140_v10  ;;  %v148_v13 = vsel %vm144_vm3, %v4539_v28, %v4141_v9  ;;  %v4259_v28 = vld [vmem:[#allocation2 + $0x90] sm:$0xff]  }
  0x8f   :  { %757 = vmatprep.subr.bf16.mxu0 %v4459_v1  ;;  %v151_v14 = vpack.c.bf16 %v148_v13, %v147_v12  ;;  %3755 = vmatpush3.bf16.msra.mxu1 %v4259_v28 }
  0x90   :  { %3756 = vmatprep.subr.bf16.mxu1 %v4260_v29  ;;  %v4270_v29 = vld [vmem:[#allocation2 + $0x1c0] sm:$0xff]  }
  0x92   :  { %758 = vmatpush1.bf16.msra.mxu0 %v4235_v11  ;;  %v4387_v11 = vld [vmem:[#allocation2 + $0x4a8] sm:$0xff]  }
  0x93   :  { %759 = vmatprep.subr.bf16.mxu0 %v4459_v1  ;;  %3757 = vmatpush3.bf16.msra.mxu1 %v4261_v30  ;;  %v4271_v30 = vld [vmem:[#allocation2 + $0x180] sm:$0xff]  }
  0x94   :  { %3981 = vmatprep.subr.bf16.mxu1 %v4262_v31 }
  0x95   :  { %301 = vmatmul.mubr.bf16.gmra.mrb[4].mxu0 %v151_v14 }
  0x96   :  { %760 = vmatpush1.bf16.msra.mxu0 %v4236_v15  ;;  %3468 = vmatprep.mubr.msk.bf16.mxu0 %vm144_vm3, %v4546_v32  ;;  %v3399_v32 = vld [vmem:[%s4978_s2] ss:$0 sm:$0xff]  ;;  %v4265_v15 = vld [vmem:[#allocation2 + $0xf8] sm:$0xff]  }
  0x97   :  { %761 = vmatprep.subr.bf16.mxu0 %v4459_v1 }
  0x9a   :  { %762 = vmatpush1.bf16.msra.mxu0 %v4237_v16  ;;  %v4266_v16 = vld [vmem:[#allocation2 + $0x100] sm:$0xff]  }
  0x9b   :  { %763 = vmatprep.subr.bf16.mxu0 %v4459_v1 }
  0x9e   :  { %764 = vmatpush1.bf16.msra.mxu0 %v4238_v17  ;;  %v4267_v17 = vld [vmem:[#allocation2 + $0x108] sm:$0xff]  }
  0x9f   :  { %765 = vmatprep.subr.bf16.mxu0 %v4459_v1 }
  0xa2   :  { %766 = vmatpush1.bf16.msra.mxu0 %v4239_v18  ;;  %v4268_v18 = vld [vmem:[#allocation2 + $0x110] sm:$0xff]  }
  0xa3   :  { %767 = vmatprep.subr.bf16.mxu0 %v4459_v1 }
  0xa6   :  { %768 = vmatpush1.bf16.msra.mxu0 %v4240_v19  ;;  %v4269_v19 = vld [vmem:[#allocation2 + $0x118] sm:$0xff]  }
  0xa7   :  { %769 = vmatprep.subr.bf16.mxu0 %v4459_v1 }
  0xaa   :  { %770 = vmatpush1.bf16.msra.mxu0 %v4241_v20 }
  0xab   :  { %771 = vmatprep.subr.bf16.mxu0 %v4459_v1 }
  0xae   :  { %772 = vmatpush1.bf16.msra.mxu0 %v4242_v21 }
  0xaf   :  { %773 = vmatprep.subr.bf16.mxu0 %v4459_v1 }
  0xb2   :  { %774 = vmatpush1.bf16.msra.mxu0 %v4243_v22 }
  0xb3   :  { %775 = vmatprep.subr.bf16.mxu0 %v4459_v1 }
  0xb6   :  { %776 = vmatpush1.bf16.msra.mxu0 %v4244_v23 }
  0xb7   :  { %777 = vmatprep.subr.bf16.mxu0 %v4459_v1 }
  0xba   :  { %778 = vmatpush1.bf16.msra.mxu0 %v4245_v25 }
  0xbd   :  { %788 = vmatmul.mubr.bf16.vlgmr.msra.gmra.mrb[8].mxu0 %v149_v6 }
  0xbe   :  { %3469 = vmatprep.mubr.msk.bf16.mxu0 %vm144_vm3, %v4554_v34 }
  0xc5   :  { %796 = vmatmul.mubr.bf16.gmra.mrb[12].mxu0 %v151_v14 }
 0x160   :  { %v294_v33 = vpop.f32.mrb[0].mxu0 }
 0x161   :  { %v295_v35 = vadd.f32 %v3399_v32, %v294_v33  ;;  %v296_v34 = vpop.f32.mrb[1].mxu0  ;;  %v4277_v33 = vld [vmem:[#allocation2 + $0x208] sm:$0xff]  }
 0x162   :  { %v297_v36 = vpop.f32.mrb[2].mxu0  ;;  %v4275_v34 = vld [vmem:[#allocation2 + $0x1d0] sm:$0xff]  }
 0x163   :  { %v309_v37 = vmax.f32 %v295_v35, 0.0  ;;  %v298_v38 = vadd.f32 %v3399_v32, %v297_v36  ;;  %v299_v39 = vpop.f32.mrb[3].mxu0  ;;  %v4273_v35 = vld [vmem:[#allocation2 + $0x188] sm:$0xff]   ;;  %v4280_v36 = vld [vmem:[#allocation2 + $0x210] sm:$0xff]  }
 0x164   :  { %v4283_v39 = vld [vmem:[#allocation2 + $0x218] sm:$0xff]  }
 0x165   :  { %v317_v40 = vrot.slane %v309_v37, 7  ;;  %v310_v41 = vmax.f32 %v298_v38, 0.0  ;;  %v333_v42 = vrot.slane %v309_v37, 1  ;;  %v4278_v38 = vld [vmem:[#allocation2 + $0x1d8] sm:$0xff]  }
 0x167   :  { %v318_v43 = vrot.slane %v310_v41, 7  ;;  %v334_v44 = vrot.slane %v310_v41, 1  ;;  %v350_v45 = vpack.c.bf16 %v310_v41, %v309_v37  ;;  %v328_v47 = vsel %vm94_vm0, 0.0, %v317_v40  ;;  %v4276_v37 = vld [vmem:[#allocation2 + $0x190] sm:$0xff]   ;;  %v4281_v41 = vld [vmem:[#allocation2 + $0x1e0] sm:$0xff]  }
 0x168   :  { %v302_v46 = vpop.f32.mrb[4].mxu0 }
 0x169   :  { %v303_v50 = vadd.f32 %v3399_v32, %v302_v46  ;;  %v304_v51 = vpop.f32.mrb[5].mxu0  ;;  %584 = vmatprep.mubr.bf16.mxu1 %v350_v45  ;;  %v319_v52 = vsel %vm94_vm0, %v317_v40, %v318_v43  ;;  %v335_v54 = vsel %vm115_vm1, %v333_v42, %v334_v44  ;;  %v4279_v40 = vld [vmem:[#allocation2 + $0x198] sm:$0xff]   ;;  %v4286_v42 = vld [vmem:[#allocation2 + $0x220] sm:$0xff]   ;;  %v4285_v45 = vld [vmem:[#allocation2 + $0x1a8] sm:$0xff]  }
 0x16a   :  { %v305_v55 = vpop.f32.mrb[6].mxu0  ;;  %v3441_v56 = vpack.c.bf16 %v319_v52, %v328_v47 }
 0x16b   :  { %v311_v58 = vmax.f32 %v303_v50, 0.0  ;;  %v306_v59 = vadd.f32 %v3399_v32, %v305_v55  ;;  %v307_v60 = vpop.f32.mrb[7].mxu0  ;;  %v4274_v32 = vld [vmem:[#allocation2 + $0x200] sm:$0xff]  }
 0x16c   :  { %3442 = vmatmul.mubr.msk.bf16.vlgmr.msra.gmra.mrb[0].mxu1 %vm4615_vm9, %v3441_v56  ;;  %4001 = vmatprep.subr.bf16.mxu0 %v4274_v32 }
 0x16d   :  { %v320_v61 = vrot.slane %v311_v58, 7  ;;  %v336_v62 = vrot.slane %v311_v58, 1  ;;  %v312_v63 = vmax.f32 %v306_v59, 0.0  ;;  %3982 = vmatpush3.bf16.msra.mxu1 %v4262_v31  ;;  %v4272_v31 = vld [vmem:[#allocation2 + $0x1c8] sm:$0xff]   ;;  %4002 = vmatpush3.bf16.msra.mxu0 %v4274_v32 }
 0x16e   :  { %3983 = vmatprep.subr.bf16.mxu1 %v4263_v57  ;;  %4003 = vmatprep.subr.bf16.mxu0 %v4277_v33 }
 0x16f   :  { %v322_v2 = vrot.slane %v312_v63, 7  ;;  %v338_v3 = vrot.slane %v312_v63, 1  ;;  %v353_v4 = vpack.c.bf16 %v312_v63, %v311_v58  ;;  %v321_v5 = vsel %vm94_vm0, %v318_v43, %v320_v61  ;;  %v4282_v43 = vld [vmem:[#allocation2 + $0x1a0] sm:$0xff]  }
 0x170   :  { %v337_v6 = vsel %vm115_vm1, %v334_v44, %v336_v62  ;;  %v4284_v44 = vld [vmem:[#allocation2 + $0x1e8] sm:$0xff]  }
 0x171   :  { %v339_v8 = vsel %vm115_vm1, %v336_v62, %v338_v3  ;;  %v344_v9 = vsel %vm115_vm1, %v338_v3, 0.0  ;;  %3984 = vmatpush3.bf16.msra.mxu1 %v4263_v57  ;;  %592 = vmatprep.mubr.bf16.mxu1 %v353_v4  ;;  %v323_v10 = vsel %vm94_vm0, %v320_v61, %v322_v2  ;;  %v3449_v12 = vpack.c.bf16 %v337_v6, %v335_v54  ;;  %v3455_v61 = vld [vmem:[%s4978_s2 + $0x2] ss:$0 sm:$0xff]  ;;  %v3414_v62 = vld [vmem:[%s4978_s2 + $0x1] ss:$0 sm:$0xff] }
 0x172   :  { %v3453_v13 = vpack.c.bf16 %v344_v9, %v339_v8  ;;  %3985 = vmatprep.subr.bf16.mxu1 %v4264_v0  ;;  %v3445_v14 = vpack.c.bf16 %v323_v10, %v321_v5  ;;  %4004 = vmatpush3.bf16.msra.mxu0 %v4277_v33  ;;  %vm848_vm0 = vcmask 982016  }
 0x173   :  { %4005 = vmatprep.subr.bf16.mxu0 %v4280_v36 }
 0x174   :  { %3446 = vmatmul.mubr.msk.bf16.gmra.mrb[4].mxu1 %vm4632_vm12, %v3445_v14 }
 0x175   :  { %3986 = vmatpush3.bf16.msra.mxu1 %v4264_v0  ;;  %3997 = vmatprep.mubr.msk.bf16.mxu1 %vm3448_vm13, %v3449_v12  ;;  %vm1884_vm13 = vcmask 916480  }
 0x176   :  { %3987 = vmatprep.subr.bf16.mxu1 %v4265_v15  ;;  %4006 = vmatpush3.bf16.msra.mxu0 %v4280_v36 }
 0x177   :  { %4007 = vmatprep.subr.bf16.mxu0 %v4283_v39 }
 0x179   :  { %3988 = vmatpush3.bf16.msra.mxu1 %v4265_v15 }
 0x17a   :  { %3989 = vmatprep.subr.bf16.mxu1 %v4266_v16  ;;  %4008 = vmatpush3.bf16.msra.mxu0 %v4283_v39 }
 0x17b   :  { %4009 = vmatprep.subr.bf16.mxu0 %v4286_v42 }
 0x17d   :  { %3990 = vmatpush3.bf16.msra.mxu1 %v4266_v16 }
 0x17e   :  { %3991 = vmatprep.subr.bf16.mxu1 %v4267_v17  ;;  %4010 = vmatpush3.bf16.msra.mxu0 %v4286_v42 }
 0x181   :  { %3992 = vmatpush3.bf16.msra.mxu1 %v4267_v17 }
 0x182   :  { %3993 = vmatprep.subr.bf16.mxu1 %v4268_v18 }
 0x185   :  { %3994 = vmatpush3.bf16.msra.mxu1 %v4268_v18 }
 0x186   :  { %3995 = vmatprep.subr.bf16.mxu1 %v4269_v19 }
 0x189   :  { %3996 = vmatpush3.bf16.msra.mxu1 %v4269_v19 }
 0x18a   :  { %3780 = vmatprep.subr.bf16.mxu1 %v4270_v29  ;;  %v4289_v29 = vld [vmem:[#allocation2 + $0x228] sm:$0xff]  }
 0x18b   :  { %4011 = vmatprep.subr.bf16.mxu0 %v4289_v29 }
 0x18c   :  { %3998 = vmatmul.mubr.msk.bf16.vlgmr.msra.gmra.mrb[8].mxu1 %vm3452_vm15, %v3453_v13  ;;  %4012 = vmatpush3.bf16.msra.mxu0 %v4289_v29  ;;  %vm1897_vm15 = vcmask 1043456  }
 0x18d   :  { %3781 = vmatpush3.bf16.msra.mxu1 %v4271_v30 }
 0x18e   :  { %3782 = vmatprep.subr.bf16.mxu1 %v4272_v31 }
 0x190   :  { %v4642_v20 = vpop.f32.mrb[8].mxu0 }
 0x191   :  { %v791_v21 = vpop.f32.mrb[9].mxu0  ;;  %3783 = vmatpush3.bf16.msra.mxu1 %v4273_v35  ;;  %v790_v2 = vadd.f32 %v3455_v61, %v4642_v20  ;;  %v4290_v35 = vld [vmem:[#allocation2 + $0x1f8] sm:$0xff]  }
 0x192   :  { %v4644_v22 = vpop.f32.mrb[10].mxu0  ;;  %3784 = vmatprep.subr.bf16.mxu1 %v4275_v34 }
 0x193   :  { %v794_v23 = vpop.f32.mrb[11].mxu0  ;;  %v793_v10 = vadd.f32 %v3455_v61, %v4644_v22  ;;  %v804_v19 = vmax.f32 %v790_v2, 0.0 }
 0x195   :  { %3785 = vmatpush3.bf16.msra.mxu1 %v4276_v37  ;;  %v805_v30 = vmax.f32 %v793_v10, 0.0  ;;  %v4291_v37 = vld [vmem:[#allocation2 + $0x1b8] sm:$0xff]  }
 0x196   :  { %3786 = vmatprep.subr.bf16.mxu1 %v4278_v38 }
 0x198   :  { %v797_v25 = vpop.f32.mrb[12].mxu0 }
 0x199   :  { %v799_v26 = vpop.f32.mrb[13].mxu0  ;;  %3787 = vmatpush3.bf16.msra.mxu1 %v4279_v40  ;;  %v798_v63 = vadd.f32 %v3455_v61, %v797_v25  ;;  %v4287_v25 = vld [vmem:[#allocation2 + $0x1f0] sm:$0xff]  }
 0x19a   :  { %v800_v27 = vpop.f32.mrb[14].mxu0  ;;  %3788 = vmatprep.subr.bf16.mxu1 %v4281_v41  ;;  %v4292_v40 = vld [vmem:[#allocation2 + $0x230] sm:$0xff]  }
 0x19b   :  { %v802_v28 = vpop.f32.mrb[15].mxu0  ;;  %v801_v5 = vadd.f32 %v3455_v61, %v800_v27  ;;  %v806_v15 = vmax.f32 %v798_v63, 0.0  ;;  %v4288_v27 = vld [vmem:[#allocation2 + $0x1b0] sm:$0xff]   ;;  %4013 = vmatprep.subr.bf16.mxu0 %v4292_v40 }
 0x19c   :  { %4014 = vmatpush3.bf16.msra.mxu0 %v4292_v40 }
 0x19d   :  { %3789 = vmatpush3.bf16.msra.mxu1 %v4282_v43  ;;  %v807_v20 = vmax.f32 %v801_v5, 0.0 }
 0x19e   :  { %3790 = vmatprep.subr.bf16.mxu1 %v4284_v44 }
 0x1a1   :  { %3791 = vmatpush3.bf16.msra.mxu1 %v4285_v45 }
 0x1a2   :  { %3792 = vmatprep.subr.bf16.mxu1 %v4287_v25 }
 0x1a5   :  { %3793 = vmatpush3.bf16.msra.mxu1 %v4288_v27 }
 0x1a6   :  { %3794 = vmatprep.subr.bf16.mxu1 %v4290_v35  ;;  %v4351_v35 = vld [vmem:[#allocation2 + $0x418] sm:$0xff]  }
 0x1a9   :  { %3795 = vmatpush3.bf16.msra.mxu1 %v4291_v37 }
 0x23f   :  { %v3758_v46 = vpop.f32.mrb[0].mxu1 }
 0x240   :  { %v3759_v47 = vpop.f32.mrb[1].mxu1 }
 0x241   :  { %v3760_v50 = vadd.f32 %v3759_v47, %v3758_v46  ;;  %v3761_v51 = vpop.f32.mrb[2].mxu1 }
 0x242   :  { %v3762_v52 = vpop.f32.mrb[3].mxu1 }
 0x243   :  { %v3763_v54 = vadd.f32 %v3762_v52, %v3761_v51  ;;  %v587_v4 = vadd.f32 %v3760_v50, %v3414_v62  ;;  %v4293_v50 = vld [vmem:[#allocation2 + $0x238] sm:$0xff]  }
 0x244   :  { %4015 = vmatprep.subr.bf16.mxu0 %v4293_v50 }
 0x245   :  { %v590_v14 = vadd.f32 %v3763_v54, %v3414_v62  ;;  %4016 = vmatpush3.bf16.msra.mxu0 %v4293_v50  ;;  %v4309_v50 = vld [vmem:[#allocation2 + $0x268] sm:$0xff]  }
 0x247   :  { %v3764_v55 = vpop.f32.mrb[4].mxu1 }
 0x248   :  { %v3765_v56 = vpop.f32.mrb[5].mxu1 }
 0x249   :  { %v3766_v57 = vadd.f32 %v3765_v56, %v3764_v55  ;;  %v3767_v58 = vpop.f32.mrb[6].mxu1  ;;  %v4294_v55 = vld [vmem:[#allocation2 + $0x280] sm:$0xff]  }
 0x24a   :  { %v3768_v59 = vpop.f32.mrb[7].mxu1  ;;  %v4298_v56 = vld [vmem:[#allocation2 + $0x2c0] sm:$0xff]   ;;  %3818 = vmatprep.subr.bf16.mxu1 %v4294_v55  ;;  %v4313_v55 = vld [vmem:[#allocation2 + $0x2e8] sm:$0xff]  }
 0x24b   :  { %v3769_v60 = vadd.f32 %v3768_v59, %v3767_v58  ;;  %v595_v0 = vadd.f32 %v3766_v57, %v3414_v62  ;;  %4021 = vmatprep.subr.bf16.mxu0 %v4298_v56 }
 0x24d   :  { %v598_v9 = vadd.f32 %v3769_v60, %v3414_v62 }
 0x25f   :  { %v3999_v3 = vpop.f32.mrb[8].mxu1 }
 0x260   :  { %v644_v6 = vadd.f32 %v3999_v3, %v595_v0  ;;  %v635_v8 = vpop.f32.mrb[9].mxu1 }
 0x261   :  { %v636_v12 = vadd.f32 %v635_v8, %v587_v4  ;;  %v4000_v13 = vpop.f32.mrb[10].mxu1 }
 0x262   :  { %v652_v16 = vmax.f32 %v644_v6, 0.0  ;;  %v647_v17 = vadd.f32 %v4000_v13, %v598_v9  ;;  %v638_v18 = vpop.f32.mrb[11].mxu1 }
 0x263   :  { %v650_v21 = vmax.f32 %v636_v12, 0.0  ;;  %v639_v23 = vadd.f32 %v638_v18, %v590_v14 }
 0x264   :  { %v810_v26 = vadd.f32 %v806_v15, %v652_v16  ;;  %v653_v28 = vmax.f32 %v647_v17, 0.0  ;;  %v4295_v17 = vld [vmem:[#allocation2 + $0x240] sm:$0xff]  }
 0x265   :  { %v808_v31 = vadd.f32 %v804_v19, %v650_v21  ;;  %v651_v32 = vmax.f32 %v639_v23, 0.0  ;;  %v4296_v19 = vld [vmem:[#allocation2 + $0x288] sm:$0xff]  }
 0x266   :  { %v811_v22 = vadd.f32 %v807_v20, %v653_v28  ;;  %v819_v34 = vrot.slane %v810_v26, 1 }
 0x267   :  { %v809_v33 = vadd.f32 %v805_v30, %v651_v32  ;;  %v816_v38 = vrot.slane %v808_v31, 1  ;;  %v4297_v32 = vld [vmem:[#allocation2 + $0x248] sm:$0xff]  }
 0x268   :  { %v821_v36 = vrot.slane %v811_v22, 1 }
 0x269   :  { %v817_v39 = vrot.slane %v809_v33, 1 }
 0x26a   :  { %v822_v41 = vsel %vm115_vm1, %v819_v34, %v821_v36  ;;  %v827_v42 = vsel %vm115_vm1, %v821_v36, 0.0 }
 0x26b   :  { %v818_v43 = vsel %vm115_vm1, %v816_v38, %v817_v39  ;;  %v820_v44 = vsel %vm115_vm1, %v817_v39, %v819_v34  ;;  %v830_v45 = vmax.f32 %v810_v26, %v822_v41  ;;  %v831_v51 = vmax.f32 %v811_v22, %v827_v42  ;;  %v4299_v34 = vld [vmem:[#allocation2 + $0x290] sm:$0xff]   ;;  %v4301_v38 = vld [vmem:[#allocation2 + $0x2c8] sm:$0xff]   ;;  %v4302_v41 = vld [vmem:[#allocation2 + $0x298] sm:$0xff]  }
 0x26c   :  { %v828_v46 = vmax.f32 %v808_v31, %v818_v43  ;;  %v829_v47 = vmax.f32 %v809_v33, %v820_v44  ;;  %vm861_vm1 = vcmask 1041408   ;;  %v4300_v39 = vld [vmem:[#allocation2 + $0x250] sm:$0xff]   ;;  %v4303_v42 = vld [vmem:[#allocation2 + $0x258] sm:$0xff]   ;;  %v4305_v44 = vld [vmem:[#allocation2 + $0x2a0] sm:$0xff]  }
 0x26d   :  { %v4147_v54 = vpack.i.bf16 %v831_v51, %v830_v45  ;;  %v4304_v43 = vld [vmem:[#allocation2 + $0x2d0] sm:$0xff]   ;;  %v4334_v31 = vld [vmem:[#allocation2 + $0x3a0] sm:$0xff]  }
 0x26e   :  { %v4142_v52 = vpack.i.bf16 %v829_v47, %v828_v46 }
 0x270   :  { %4143 = vrot.lane.b32.xlu1 %v4142_v52, %s4461_s11  ;;  %v4311_v52 = vld [vmem:[#allocation2 + $0x2b0] sm:$0xff]  }
 0x274   :  { %4148 = vrot.lane.b32.xlu1 %v4147_v54, %s4461_s11  ;;  %v4312_v54 = vld [vmem:[#allocation2 + $0x270] sm:$0xff]  }
 0x2e2   :  { %v4144_v57 = vpop.permute.xlu1 %4143 }
 0x2e3   :  { %v4146_v58 = vunpack.i.h.bf16 %v4144_v57  ;;  %v4145_v59 = vunpack.i.l.bf16 %v4144_v57  ;;  %v4315_v57 = vld [vmem:[#allocation2 + $0x278] sm:$0xff]  }
 0x2e5   :  { %v850_v60 = vsel %vm848_vm0, %v4146_v58, 0.0  ;;  %v849_v61 = vsel %vm848_vm0, %v4145_v59, 0.0  ;;  %v4316_v58 = vld [vmem:[#allocation2 + $0x2f0] sm:$0xff]   ;;  %v4317_v59 = vld [vmem:[#allocation2 + $0x340] sm:$0xff]  }
 0x2e6   :  { %v854_v62 = vmax.f32 %v829_v47, %v850_v60  ;;  %v853_v63 = vmax.f32 %v828_v46, %v849_v61  ;;  %v4149_v0 = vpop.permute.xlu1 %4148  ;;  %v4307_v46 = vld [vmem:[#allocation2 + $0x2d8] sm:$0xff]   ;;  %v4308_v47 = vld [vmem:[#allocation2 + $0x2a8] sm:$0xff]   ;;  %v4710_v61 = vld [vmem:[#allocation2 + $0x380] sm:$0xff]  }
 0x2e7   :  { %v4151_v2 = vunpack.i.h.bf16 %v4149_v0  ;;  %v4150_v3 = vunpack.i.l.bf16 %v4149_v0  ;;  %v4319_v60 = vld [vmem:[#allocation2 + $0x2f8] sm:$0xff]   ;;  %v3470_v0 = vld [vmem:[%s4978_s2 + $0x3] ss:$0 sm:$0xff] }
 0x2e8   :  { %v863_v4 = vrot.slane %v854_v62, 6  ;;  %v884_v5 = vrot.slane %v854_v62, 2  ;;  %v862_v6 = vrot.slane %v853_v63, 6  ;;  %v883_v8 = vrot.slane %v853_v63, 2 }
 0x2e9   :  { %v852_v9 = vsel %vm848_vm0, %v4151_v2, 0.0  ;;  %v851_v10 = vsel %vm848_vm0, %v4150_v3, 0.0  ;;  %v4662_v12 = vpack.c.bf16 %v854_v62, %v853_v63  ;;  %vm1917_vm0 = vcmp.eq.s32.totalorder %v4530_v24, 12 }
 0x2ea   :  { %v873_v13 = vsel %vm861_vm1, 0.0, %v862_v6  ;;  %v856_v14 = vmax.f32 %v831_v51, %v852_v9  ;;  %v855_v15 = vmax.f32 %v830_v45, %v851_v10  ;;  %v864_v16 = vsel %vm861_vm1, %v862_v6, %v863_v4  ;;  %v4306_v45 = vld [vmem:[#allocation2 + $0x260] sm:$0xff]  }
 0x2eb   :  { %1134 = vmatprep.mubr.bf16.mxu1 %v4662_v12  ;;  %v4667_v18 = vpack.c.bf16 %v864_v16, %v873_v13  ;;  %v885_v29 = vsel %vm882_vm2, %v883_v8, %v884_v5  ;;  %v4310_v51 = vld [vmem:[#allocation2 + $0x2e0] sm:$0xff]  }
 0x2ec   :  { %v867_v21 = vrot.slane %v856_v14, 6  ;;  %v888_v23 = vrot.slane %v856_v14, 2  ;;  %v865_v25 = vrot.slane %v855_v15, 6  ;;  %v886_v20 = vrot.slane %v855_v15, 2 }
 0x2ed   :  { %3498 = vmatmul.mubr.msk.bf16.vlgmr.msra.gmra.mrb[12].mxu1 %vm4615_vm9, %v4667_v18  ;;  %v4674_v26 = vpack.c.bf16 %v856_v14, %v855_v15 }
 0x2ee   :  { %v894_v28 = vsel %vm882_vm2, %v888_v23, 0.0  ;;  %v889_v27 = vsel %vm882_vm2, %v886_v20, %v888_v23  ;;  %v887_v30 = vsel %vm882_vm2, %v884_v5, %v886_v20  ;;  %3819 = vmatpush3.bf16.msra.mxu1 %v4295_v17  ;;  %v866_v36 = vsel %vm861_vm1, %v863_v4, %v865_v25 }
 0x2ef   :  { %v4685_v22 = vpack.c.bf16 %v894_v28, %v889_v27  ;;  %1142 = vmatprep.mubr.bf16.mxu1 %v4674_v26  ;;  %v4688_v33 = vpack.c.bf16 %v887_v30, %v885_v29  ;;  %3820 = vmatprep.subr.bf16.mxu1 %v4296_v19  ;;  %v868_v37 = vsel %vm861_vm1, %v865_v25, %v867_v21 }
 0x2f0   :  { %v4705_v40 = vpack.c.bf16 %v868_v37, %v866_v36 }
 0x2f1   :  { %4017 = vmatprep.mubr.msk.bf16.mxu0 %vm4681_vm10, %v4688_v33 }
 0x2f2   :  { %4018 = vmatmul.mubr.msk.bf16.vlgmr.msra.gmra.mrb[16].mxu0 %vm4693_vm11, %v4685_v22  ;;  %3821 = vmatpush3.bf16.msra.mxu1 %v4297_v32 }
 0x2f3   :  { %3822 = vmatprep.subr.bf16.mxu1 %v4299_v34  ;;  %4022 = vmatpush3.bf16.msra.mxu0 %v4298_v56  ;;  %v4314_v56 = vld [vmem:[#allocation2 + $0x2b8] sm:$0xff]  }
 0x2f4   :  { %4023 = vmatprep.subr.bf16.mxu0 %v4301_v38 }
 0x2f5   :  { %3502 = vmatmul.mubr.msk.bf16.gmra.mrb[16].mxu1 %vm4632_vm12, %v4705_v40 }
 0x2f6   :  { %3823 = vmatpush3.bf16.msra.mxu1 %v4300_v39 }
 0x2f7   :  { %3824 = vmatprep.subr.bf16.mxu1 %v4302_v41  ;;  %4024 = vmatpush3.bf16.msra.mxu0 %v4301_v38 }
 0x2f8   :  { %4025 = vmatprep.subr.bf16.mxu0 %v4304_v43 }
 0x2fa   :  { %3825 = vmatpush3.bf16.msra.mxu1 %v4303_v42 }
 0x2fb   :  { %3826 = vmatprep.subr.bf16.mxu1 %v4305_v44  ;;  %4026 = vmatpush3.bf16.msra.mxu0 %v4304_v43  ;;  %v4318_v43 = vld [vmem:[#allocation2 + $0x300] sm:$0xff]  }
 0x2fc   :  { %4027 = vmatprep.subr.bf16.mxu0 %v4307_v46 }
 0x2fe   :  { %3827 = vmatpush3.bf16.msra.mxu1 %v4306_v45 }
 0x2ff   :  { %3828 = vmatprep.subr.bf16.mxu1 %v4308_v47  ;;  %4028 = vmatpush3.bf16.msra.mxu0 %v4307_v46 }
 0x300   :  { %4029 = vmatprep.subr.bf16.mxu0 %v4310_v51 }
 0x302   :  { %3829 = vmatpush3.bf16.msra.mxu1 %v4309_v50  ;;  %v4320_v50 = vld [vmem:[#allocation2 + $0x348] sm:$0xff]  }
 0x303   :  { %3830 = vmatprep.subr.bf16.mxu1 %v4311_v52  ;;  %4030 = vmatpush3.bf16.msra.mxu0 %v4310_v51 }
 0x304   :  { %4031 = vmatprep.subr.bf16.mxu0 %v4313_v55 }
 0x306   :  { %3831 = vmatpush3.bf16.msra.mxu1 %v4312_v54 }
 0x307   :  { %3832 = vmatprep.subr.bf16.mxu1 %v4314_v56  ;;  %4032 = vmatpush3.bf16.msra.mxu0 %v4313_v55  ;;  %v4321_v55 = vld [vmem:[#allocation2 + $0x308] sm:$0xff]  }
 0x308   :  { %4033 = vmatprep.subr.bf16.mxu0 %v4316_v58 }
 0x30a   :  { %3833 = vmatpush3.bf16.msra.mxu1 %v4315_v57 }
 0x30b   :  { %4034 = vmatpush3.bf16.msra.mxu0 %v4316_v58  ;;  %3856 = vmatprep.subr.bf16.mxu1 %v4317_v59 }
 0x30c   :  { %4035 = vmatprep.subr.bf16.mxu0 %v4319_v60 }
 0x30f   :  { %4036 = vmatpush3.bf16.msra.mxu0 %v4319_v60  ;;  %v4323_v60 = vld [vmem:[#allocation2 + $0x350] sm:$0xff]  }
 0x310   :  { %4041 = vmatprep.subr.bf16.mxu0 %v4710_v61 }
 0x3c0   :  { %v3796_v62 = vpop.f32.mrb[12].mxu1 }
 0x3c1   :  { %v3797_v63 = vpop.f32.mrb[13].mxu1 }
 0x3c2   :  { %v3798_v2 = vadd.f32 %v3797_v63, %v3796_v62  ;;  %v3799_v3 = vpop.f32.mrb[14].mxu1 }
 0x3c3   :  { %v3800_v4 = vpop.f32.mrb[15].mxu1 }
 0x3c4   :  { %v3801_v5 = vadd.f32 %v3800_v4, %v3799_v3  ;;  %v1137_v6 = vadd.f32 %v3798_v2, %v3470_v0 }
 0x3c5   :  { %v4019_v8 = vpop.f32.mrb[16].mxu0 }
 0x3c6   :  { %v1185_v9 = vpop.f32.mrb[17].mxu0  ;;  %v1140_v10 = vadd.f32 %v3801_v5, %v3470_v0 }
 0x3c7   :  { %v1186_v13 = vadd.f32 %v1185_v9, %v1137_v6  ;;  %v4020_v14 = vpop.f32.mrb[18].mxu0  ;;  %v4324_v6 = vld [vmem:[#allocation2 + $0x310] sm:$0xff]   ;;  %v4326_v9 = vld [vmem:[#allocation2 + $0x358] sm:$0xff]  }
 0x3c8   :  { %v3802_v15 = vpop.f32.mrb[16].mxu1  ;;  %v1188_v16 = vpop.f32.mrb[19].mxu0 }
 0x3c9   :  { %v1200_v17 = vmax.f32 %v1186_v13, 0.0  ;;  %v1189_v19 = vadd.f32 %v1188_v16, %v1140_v10  ;;  %v3803_v21 = vpop.f32.mrb[17].mxu1  ;;  %v4327_v10 = vld [vmem:[#allocation2 + $0x318] sm:$0xff]   ;;  %v4328_v13 = vld [vmem:[#allocation2 + $0x390] sm:$0xff]   ;;  %v4332_v16 = vld [vmem:[#allocation2 + $0x368] sm:$0xff]  }
 0x3ca   :  { %v3804_v23 = vadd.f32 %v3803_v21, %v3802_v15  ;;  %v3805_v25 = vpop.f32.mrb[18].mxu1  ;;  %v4330_v15 = vld [vmem:[#allocation2 + $0x320] sm:$0xff]   ;;  %v4338_v21 = vld [vmem:[#allocation2 + $0x378] sm:$0xff]  }
 0x3cb   :  { %v1208_v20 = vrot.slane %v1200_v17, 6  ;;  %v1201_v28 = vmax.f32 %v1189_v19, 0.0  ;;  %v3806_v27 = vpop.f32.mrb[19].mxu1  ;;  %v1224_v32 = vrot.slane %v1200_v17, 2  ;;  %v4337_v19 = vld [vmem:[#allocation2 + $0x3a8] sm:$0xff]  }
 0x3cc   :  { %v1145_v29 = vadd.f32 %v3804_v23, %v3470_v0  ;;  %v3807_v30 = vadd.f32 %v3806_v27, %v3805_v25  ;;  %v4339_v23 = vld [vmem:[#allocation2 + $0x338] sm:$0xff]   ;;  %v4340_v25 = vld [vmem:[#allocation2 + $0x3b0] sm:$0xff]   ;;  %v4343_v27 = vld [vmem:[#allocation2 + $0x3c0] sm:$0xff]  }
 0x3cd   :  { %v1209_v34 = vrot.slane %v1201_v28, 6  ;;  %v1225_v36 = vrot.slane %v1201_v28, 2  ;;  %v1241_v37 = vpack.c.bf16 %v1201_v28, %v1200_v17  ;;  %v1219_v41 = vsel %vm861_vm1, 0.0, %v1208_v20  ;;  %v4333_v17 = vld [vmem:[#allocation2 + $0x328] sm:$0xff]   ;;  %v4342_v28 = vld [vmem:[#allocation2 + $0x400] sm:$0xff]  }
 0x3ce   :  { %v1194_v38 = vadd.f32 %v4019_v8, %v1145_v29  ;;  %v1148_v39 = vadd.f32 %v3807_v30, %v3470_v0  ;;  %v4325_v8 = vld [vmem:[#allocation2 + $0x388] sm:$0xff]   ;;  %v4344_v29 = vld [vmem:[#allocation2 + $0x440] sm:$0xff]  }
 0x3cf   :  { %v1210_v42 = vsel %vm861_vm1, %v1208_v20, %v1209_v34  ;;  %1475 = vmatprep.mubr.bf16.mxu1 %v1241_v37  ;;  %v1226_v44 = vsel %vm882_vm2, %v1224_v32, %v1225_v36  ;;  %v4341_v20 = vld [vmem:[#allocation2 + $0x3b8] sm:$0xff]   ;;  %v4345_v30 = vld [vmem:[#allocation2 + $0x408] sm:$0xff]   ;;  %v4354_v37 = vld [vmem:[#allocation2 + $0x420] sm:$0xff]  }
 0x3d0   :  { %v3538_v45 = vpack.c.bf16 %v1210_v42, %v1219_v41  ;;  %v1202_v46 = vmax.f32 %v1194_v38, 0.0  ;;  %v1197_v47 = vadd.f32 %v4020_v14, %v1148_v39  ;;  %v4329_v14 = vld [vmem:[#allocation2 + $0x360] sm:$0xff]   ;;  %v4347_v32 = vld [vmem:[#allocation2 + $0x448] sm:$0xff]  }
 0x3d1   :  { %v4356_v38 = vld [vmem:[#allocation2 + $0x460] sm:$0xff]   ;;  %v4357_v41 = vld [vmem:[#allocation2 + $0x428] sm:$0xff]  }
 0x3d2   :  { %v1211_v51 = vrot.slane %v1202_v46, 6  ;;  %v1227_v52 = vrot.slane %v1202_v46, 2  ;;  %v1203_v54 = vmax.f32 %v1197_v47, 0.0  ;;  %3539 = vmatmul.mubr.msk.bf16.vlgmr.msra.gmra.mrb[20].mxu1 %vm4615_vm9, %v3538_v45  ;;  %v4355_v39 = vld [vmem:[#allocation2 + $0x3e0] sm:$0xff]   ;;  %v4358_v42 = vld [vmem:[#allocation2 + $0x3e8] sm:$0xff]  }
 0x3d3   :  { %3857 = vmatpush3.bf16.msra.mxu1 %v4318_v43 }
 0x3d4   :  { %v1213_v56 = vrot.slane %v1203_v54, 6  ;;  %v1229_v57 = vrot.slane %v1203_v54, 2  ;;  %3858 = vmatprep.subr.bf16.mxu1 %v4320_v50  ;;  %v1244_v58 = vpack.c.bf16 %v1203_v54, %v1202_v46  ;;  %v1228_v59 = vsel %vm882_vm2, %v1225_v36, %v1227_v52  ;;  %v4352_v36 = vld [vmem:[#allocation2 + $0x3d8] sm:$0xff]  }
 0x3d5   :  { %v3546_v62 = vpack.c.bf16 %v1228_v59, %v1226_v44  ;;  %v1212_v63 = vsel %vm861_vm1, %v1209_v34, %v1211_v51  ;;  %v4350_v34 = vld [vmem:[#allocation2 + $0x450] sm:$0xff]  }
 0x3d6   :  { %v1235_v0 = vsel %vm882_vm2, %v1229_v57, 0.0  ;;  %1483 = vmatprep.mubr.bf16.mxu1 %v1244_v58  ;;  %v1230_v2 = vsel %vm882_vm2, %v1227_v52, %v1229_v57  ;;  %v1214_v3 = vsel %vm861_vm1, %v1211_v51, %v1213_v56  ;;  %v3511_v51 = vld [vmem:[%s4978_s2 + $0x4] ss:$0 sm:$0xff]  ;;  %vm3626_vm1 = vmneg %vm1915_vm14 }
 0x3d7   :  { %3859 = vmatpush3.bf16.msra.mxu1 %v4321_v55  ;;  %4037 = vmatprep.mubr.msk.bf16.mxu0 %vm4681_vm10, %v3546_v62  ;;  %v3550_v4 = vpack.c.bf16 %v1235_v0, %v1230_v2  ;;  %v3542_v5 = vpack.c.bf16 %v1214_v3, %v1212_v63  ;;  %vm4772_vm4 = vmpackc.low %vm3626_vm1, %vm4460_vm8 }
 0x3d8   :  { %3860 = vmatprep.subr.bf16.mxu1 %v4323_v60 }
 0x3d9   :  { %4038 = vmatmul.mubr.msk.bf16.vlgmr.msra.gmra.mrb[20].mxu0 %vm4693_vm11, %v3550_v4 }
 0x3da   :  { %4042 = vmatpush3.bf16.msra.mxu0 %v4710_v61  ;;  %3543 = vmatmul.mubr.msk.bf16.gmra.mrb[24].mxu1 %vm4632_vm12, %v3542_v5  ;;  %v4331_v61 = vld [vmem:[#allocation2 + $0x398] sm:$0xff]  }
 0x3db   :  { %3861 = vmatpush3.bf16.msra.mxu1 %v4324_v6  ;;  %4057 = vmatprep.mubr.msk.bf16.mxu0 %vm4681_vm10, %v4688_v33  ;;  %v4335_v33 = vld [vmem:[#allocation2 + $0x370] sm:$0xff]  }
 0x3dc   :  { %1774 = vmatprep.mubr.bf16.mxu1 %v4662_v12  ;;  %4043 = vmatprep.subr.bf16.mxu0 %v4325_v8  ;;  %v4336_v12 = vld [vmem:[#allocation2 + $0x330] sm:$0xff]  }
 0x3dd   :  { %3862 = vmatprep.subr.bf16.mxu1 %v4326_v9 }
 0x3de   :  { %4044 = vmatpush3.bf16.msra.mxu0 %v4325_v8 }
 0x3df   :  { %3863 = vmatpush3.bf16.msra.mxu1 %v4327_v10  ;;  %4045 = vmatprep.subr.bf16.mxu0 %v4328_v13 }
 0x3e0   :  { %3864 = vmatprep.subr.bf16.mxu1 %v4329_v14 }
 0x3e2   :  { %4046 = vmatpush3.bf16.msra.mxu0 %v4328_v13 }
 0x3e3   :  { %3865 = vmatpush3.bf16.msra.mxu1 %v4330_v15  ;;  %4047 = vmatprep.subr.bf16.mxu0 %v4331_v61 }
 0x3e4   :  { %3866 = vmatprep.subr.bf16.mxu1 %v4332_v16 }
 0x3e6   :  { %4048 = vmatpush3.bf16.msra.mxu0 %v4331_v61 }
 0x3e7   :  { %3867 = vmatpush3.bf16.msra.mxu1 %v4333_v17  ;;  %4049 = vmatprep.subr.bf16.mxu0 %v4334_v31  ;;  %v3552_v17 = vld [vmem:[%s4978_s2 + $0x5] ss:$0 sm:$0xff] }
 0x3e8   :  { %3868 = vmatprep.subr.bf16.mxu1 %v4335_v33 }
 0x3ea   :  { %4050 = vmatpush3.bf16.msra.mxu0 %v4334_v31 }
 0x3eb   :  { %3869 = vmatpush3.bf16.msra.mxu1 %v4336_v12  ;;  %4051 = vmatprep.subr.bf16.mxu0 %v4337_v19 }
 0x3ec   :  { %3870 = vmatprep.subr.bf16.mxu1 %v4338_v21 }
 0x3ee   :  { %4052 = vmatpush3.bf16.msra.mxu0 %v4337_v19 }
 0x3ef   :  { %3871 = vmatpush3.bf16.msra.mxu1 %v4339_v23  ;;  %4053 = vmatprep.subr.bf16.mxu0 %v4340_v25 }
 0x3f0   :  { %3894 = vmatprep.subr.bf16.mxu1 %v4342_v28 }
 0x3f2   :  { %3580 = vmatmul.mubr.msk.bf16.vlgmr.msra.gmra.mrb[28].mxu1 %vm4615_vm9, %v4667_v18  ;;  %4054 = vmatpush3.bf16.msra.mxu0 %v4340_v25  ;;  %v4346_v18 = vld [vmem:[#allocation2 + $0x3c8] sm:$0xff]  }
 0x3f3   :  { %1782 = vmatprep.mubr.bf16.mxu1 %v4674_v26  ;;  %4055 = vmatprep.subr.bf16.mxu0 %v4341_v20  ;;  %v4348_v26 = vld [vmem:[#allocation2 + $0x410] sm:$0xff]  }
 0x3f4   :  { %3895 = vmatpush3.bf16.msra.mxu1 %v4343_v27 }
 0x3f5   :  { %3896 = vmatprep.subr.bf16.mxu1 %v4345_v30 }
 0x3f6   :  { %4056 = vmatpush3.bf16.msra.mxu0 %v4341_v20 }
 0x3f7   :  { %4061 = vmatprep.subr.bf16.mxu0 %v4344_v29 }
 0x3f8   :  { %3897 = vmatpush3.bf16.msra.mxu1 %v4346_v18 }
 0x3f9   :  { %4058 = vmatmul.mubr.msk.bf16.vlgmr.msra.gmra.mrb[24].mxu0 %vm4693_vm11, %v4685_v22  ;;  %v4349_v22 = vld [vmem:[#allocation2 + $0x3d0] sm:$0xff]   ;;  %3898 = vmatprep.subr.bf16.mxu1 %v4348_v26  ;;  %vm3078_vm11 = vcmask 785408  }
 0x3fa   :  { %3584 = vmatmul.mubr.msk.bf16.gmra.mrb[32].mxu1 %vm4632_vm12, %v4705_v40  ;;  %4062 = vmatpush3.bf16.msra.mxu0 %v4344_v29  ;;  %v4353_v40 = vld [vmem:[#allocation2 + $0x458] sm:$0xff]  }
 0x3fb   :  { %4063 = vmatprep.subr.bf16.mxu0 %v4347_v32 }
 0x3fc   :  { %3899 = vmatpush3.bf16.msra.mxu1 %v4349_v22 }
 0x3fd   :  { %3900 = vmatprep.subr.bf16.mxu1 %v4351_v35  ;;  %v4359_v35 = vld [vmem:[#allocation2 + $0x468] sm:$0xff]  }
 0x3fe   :  { %4064 = vmatpush3.bf16.msra.mxu0 %v4347_v32 }
 0x3ff   :  { %4065 = vmatprep.subr.bf16.mxu0 %v4350_v34 }
 0x400   :  { %3901 = vmatpush3.bf16.msra.mxu1 %v4352_v36 }
 0x401   :  { %3902 = vmatprep.subr.bf16.mxu1 %v4354_v37 }
 0x402   :  { %4066 = vmatpush3.bf16.msra.mxu0 %v4350_v34 }
 0x403   :  { %4067 = vmatprep.subr.bf16.mxu0 %v4353_v40 }
 0x404   :  { %3903 = vmatpush3.bf16.msra.mxu1 %v4355_v39 }
 0x405   :  { %3904 = vmatprep.subr.bf16.mxu1 %v4357_v41  ;;  %v4360_v41 = vld [vmem:[#allocation2 + $0x430] sm:$0xff]  }
 0x406   :  { %4068 = vmatpush3.bf16.msra.mxu0 %v4353_v40 }
 0x407   :  { %4069 = vmatprep.subr.bf16.mxu0 %v4356_v38 }
 0x408   :  { %3905 = vmatpush3.bf16.msra.mxu1 %v4358_v42 }
 0x409   :  { %3906 = vmatprep.subr.bf16.mxu1 %v4360_v41 }
 0x40a   :  { %4070 = vmatpush3.bf16.msra.mxu0 %v4356_v38 }
 0x40b   :  { %4071 = vmatprep.subr.bf16.mxu0 %v4359_v35 }
 0x40e   :  { %4072 = vmatpush3.bf16.msra.mxu0 %v4359_v35 }
 0x4a5   :  { %v3834_v43 = vpop.f32.mrb[20].mxu1 }
 0x4a6   :  { %v3835_v44 = vpop.f32.mrb[21].mxu1 }
 0x4a7   :  { %v3836_v45 = vadd.f32 %v3835_v44, %v3834_v43  ;;  %v3837_v46 = vpop.f32.mrb[22].mxu1  ;;  %v4361_v43 = vld [vmem:[#allocation2 + $0x3f0] sm:$0xff]  }
 0x4a8   :  { %v3838_v47 = vpop.f32.mrb[23].mxu1  ;;  %3907 = vmatpush3.bf16.msra.mxu1 %v4361_v43  ;;  %v4367_v43 = vld [vmem:[#allocation2 + $0x4e0] sm:$0xff]  }
 0x4a9   :  { %v3839_v50 = vadd.f32 %v3838_v47, %v3837_v46  ;;  %v1478_v54 = vadd.f32 %v3836_v45, %v3511_v51  ;;  %v4362_v47 = vld [vmem:[#allocation2 + $0x470] sm:$0xff]  }
 0x4aa   :  { %4073 = vmatprep.subr.bf16.mxu0 %v4362_v47 }
 0x4ab   :  { %v1481_v60 = vadd.f32 %v3839_v50, %v3511_v51  ;;  %4074 = vmatpush3.bf16.msra.mxu0 %v4362_v47 }
 0x4ac   :  { %v4039_v52 = vpop.f32.mrb[20].mxu0 }
 0x4ad   :  { %v3840_v55 = vpop.f32.mrb[24].mxu1  ;;  %v1526_v56 = vpop.f32.mrb[21].mxu0 }
 0x4ae   :  { %v1527_v57 = vadd.f32 %v1526_v56, %v1478_v54  ;;  %v3841_v58 = vpop.f32.mrb[25].mxu1  ;;  %v4040_v59 = vpop.f32.mrb[22].mxu0  ;;  %v4363_v56 = vld [vmem:[#allocation2 + $0x438] sm:$0xff]  }
 0x4af   :  { %v3842_v62 = vadd.f32 %v3841_v58, %v3840_v55  ;;  %v3843_v63 = vpop.f32.mrb[26].mxu1  ;;  %v1529_v0 = vpop.f32.mrb[23].mxu0  ;;  %v4364_v58 = vld [vmem:[#allocation2 + $0x3f8] sm:$0xff]   ;;  %3908 = vmatprep.subr.bf16.mxu1 %v4363_v56  ;;  %v4376_v56 = vld [vmem:[#allocation2 + $0x548] sm:$0xff]  }
 0x4b0   :  { %v1530_v2 = vadd.f32 %v1529_v0, %v1481_v60  ;;  %v3844_v3 = vpop.f32.mrb[27].mxu1  ;;  %v1541_v30 = vmax.f32 %v1527_v57, 0.0  ;;  %3909 = vmatpush3.bf16.msra.mxu1 %v4364_v58  ;;  %v4378_v58 = vld [vmem:[#allocation2 + $0x550] sm:$0xff]  }
 0x4b1   :  { %v1486_v4 = vadd.f32 %v3842_v62, %v3511_v51  ;;  %v3845_v5 = vadd.f32 %v3844_v3, %v3843_v63  ;;  %v4365_v63 = vld [vmem:[#allocation2 + $0x478] sm:$0xff]   ;;  %2382 = vmatprep.subr.bf16.mxu1 %v4459_v1 }
 0x4b2   :  { %v1542_v40 = vmax.f32 %v1530_v2, 0.0  ;;  %4075 = vmatprep.subr.bf16.mxu0 %v4365_v63 }
 0x4b3   :  { %v1535_v6 = vadd.f32 %v4039_v52, %v1486_v4  ;;  %v1489_v8 = vadd.f32 %v3845_v5, %v3511_v51  ;;  %4076 = vmatpush3.bf16.msra.mxu0 %v4365_v63  ;;  %v4382_v63 = vld [vmem:[#allocation2 + $0x480] sm:$0xff]  }
 0x4b5   :  { %v1538_v9 = vadd.f32 %v4040_v59, %v1489_v8  ;;  %v1543_v44 = vmax.f32 %v1535_v6, 0.0 }
 0x4b7   :  { %v1544_v52 = vmax.f32 %v1538_v9, 0.0 }
 0x4c5   :  { %v3872_v10 = vpop.f32.mrb[28].mxu1 }
 0x4c6   :  { %v3873_v13 = vpop.f32.mrb[29].mxu1 }
 0x4c7   :  { %v3874_v14 = vadd.f32 %v3873_v13, %v3872_v10  ;;  %v3875_v15 = vpop.f32.mrb[30].mxu1  ;;  %v4366_v10 = vld [vmem:[#allocation2 + $0x520] sm:$0xff]  }
 0x4c8   :  { %v3876_v61 = vpop.f32.mrb[31].mxu1  ;;  %3932 = vmatprep.subr.bf16.mxu0 %v4366_v10 }
 0x4c9   :  { %v3877_v16 = vadd.f32 %v3876_v61, %v3875_v15  ;;  %v1777_v33 = vadd.f32 %v3874_v14, %v3552_v17 }
 0x4cb   :  { %v1780_v20 = vadd.f32 %v3877_v16, %v3552_v17 }
 0x4cc   :  { %v4059_v31 = vpop.f32.mrb[24].mxu0 }
 0x4cd   :  { %v3878_v12 = vpop.f32.mrb[32].mxu1  ;;  %v1825_v19 = vpop.f32.mrb[25].mxu0 }
 0x4ce   :  { %v1826_v21 = vadd.f32 %v1825_v19, %v1777_v33  ;;  %v3879_v23 = vpop.f32.mrb[33].mxu1  ;;  %v4060_v25 = vpop.f32.mrb[26].mxu0 }
 0x4cf   :  { %v3880_v28 = vadd.f32 %v3879_v23, %v3878_v12  ;;  %v3881_v27 = vpop.f32.mrb[34].mxu1  ;;  %v1828_v29 = vpop.f32.mrb[27].mxu0 }
 0x4d0   :  { %v1840_v32 = vmax.f32 %v1826_v21, 0.0  ;;  %v1829_v18 = vadd.f32 %v1828_v29, %v1780_v20  ;;  %v3882_v26 = vpop.f32.mrb[35].mxu1 }
 0x4d1   :  { %v1785_v34 = vadd.f32 %v3880_v28, %v3552_v17  ;;  %v3883_v22 = vadd.f32 %v3882_v26, %v3881_v27 }
 0x4d2   :  { %v1844_v36 = vadd.f32 %v1840_v32, %v1541_v30  ;;  %v1841_v37 = vmax.f32 %v1829_v18, 0.0 }
 0x4d3   :  { %v1834_v38 = vadd.f32 %v4059_v31, %v1785_v34  ;;  %v1788_v39 = vadd.f32 %v3883_v22, %v3552_v17 }
 0x4d4   :  { %v1845_v42 = vadd.f32 %v1841_v37, %v1542_v40  ;;  %v1852_v50 = vrot.slane %v1844_v36, 2 }
 0x4d5   :  { %v1842_v45 = vmax.f32 %v1834_v38, 0.0  ;;  %v1837_v46 = vadd.f32 %v4060_v25, %v1788_v39 }
 0x4d6   :  { %v1853_v51 = vrot.slane %v1845_v42, 2 }
 0x4d7   :  { %v1846_v54 = vadd.f32 %v1842_v45, %v1543_v44  ;;  %v1843_v55 = vmax.f32 %v1837_v46, 0.0  ;;  %v4368_v44 = vld [vmem:[#allocation2 + $0x528] sm:$0xff]   ;;  %v4370_v46 = vld [vmem:[#allocation2 + $0x530] sm:$0xff]  }
 0x4d8   :  { %v1854_v57 = vsel %vm882_vm2, %v1852_v50, %v1853_v51  ;;  %v4369_v45 = vld [vmem:[#allocation2 + $0x4e8] sm:$0xff]   ;;  %v4371_v50 = vld [vmem:[#allocation2 + $0x4f0] sm:$0xff]  }
 0x4d9   :  { %v1855_v59 = vrot.slane %v1846_v54, 2  ;;  %v1847_v60 = vadd.f32 %v1843_v55, %v1544_v52  ;;  %v1864_v62 = vmax.f32 %v1844_v36, %v1854_v57  ;;  %v4373_v52 = vld [vmem:[#allocation2 + $0x4f8] sm:$0xff]   ;;  %v4375_v55 = vld [vmem:[#allocation2 + $0x500] sm:$0xff]   ;;  %v4377_v57 = vld [vmem:[#allocation2 + $0x508] sm:$0xff]  }
 0x4db   :  { %v1856_v0 = vsel %vm882_vm2, %v1853_v51, %v1855_v59  ;;  %v1857_v2 = vrot.slane %v1847_v60, 2  ;;  %v4372_v51 = vld [vmem:[#allocation2 + $0x538] sm:$0xff]  }
 0x4dc   :  { %v1865_v3 = vmax.f32 %v1845_v42, %v1856_v0  ;;  %v4383_v0 = vld [vmem:[#allocation2 + $0x488] sm:$0xff]  }
 0x4dd   :  { %v1858_v4 = vsel %vm882_vm2, %v1855_v59, %v1857_v2  ;;  %v1863_v5 = vsel %vm882_vm2, %v1857_v2, 0.0  ;;  %vm3630_vm2 = vmneg %vm1917_vm0  ;;  %v4379_v59 = vld [vmem:[#allocation2 + $0x510] sm:$0xff]  }
 0x4de   :  { %v4152_v6 = vpack.i.bf16 %v1865_v3, %v1864_v62  ;;  %v1866_v8 = vmax.f32 %v1846_v54, %v1858_v4  ;;  %v1867_v9 = vmax.f32 %v1847_v60, %v1863_v5  ;;  %vm4783_vm7 = vmpackc.low %vm3630_vm2, %vm4460_vm8  ;;  %v4374_v54 = vld [vmem:[#allocation2 + $0x540] sm:$0xff]   ;;  %v4380_v60 = vld [vmem:[#allocation2 + $0x558] sm:$0xff]  }
 0x4df   :  { %v4384_v2 = vld [vmem:[#allocation2 + $0x490] sm:$0xff]   ;;  %v4389_v5 = vld [vmem:[#allocation2 + $0x4b8] sm:$0xff]  }
 0x4e0   :  { %4153 = vrot.lane.b32.xlu0 %v4152_v6, %s4462_s18  ;;  %v4157_v13 = vpack.i.bf16 %v1867_v9, %v1866_v8  ;;  %v4388_v4 = vld [vmem:[#allocation2 + $0x4b0] sm:$0xff]   ;;  %v4390_v6 = vld [vmem:[#allocation2 + $0x4c0] sm:$0xff]  }
 0x4e2   :  { %4158 = vrot.lane.b32.xlu1 %v4157_v13, %s4462_s18 }
 0x552   :  { %v4154_v14 = vpop.permute.xlu0 %4153 }
 0x553   :  { %v4156_v15 = vunpack.i.h.bf16 %v4154_v14  ;;  %v4155_v61 = vunpack.i.l.bf16 %v4154_v14  ;;  %v3593_v14 = vld [vmem:[%s4978_s2 + $0x6] ss:$0 sm:$0xff] }
 0x554   :  { %v4159_v16 = vpop.permute.xlu1 %4158 }
 0x555   :  { %v1886_v17 = vsel %vm1884_vm13, %v4156_v15, 0.0  ;;  %v1885_v31 = vsel %vm1884_vm13, %v4155_v61, 0.0  ;;  %v4161_v33 = vunpack.i.h.bf16 %v4159_v16  ;;  %v4160_v12 = vunpack.i.l.bf16 %v4159_v16  ;;  %v4393_v15 = vld [vmem:[#allocation2 + $0x4d8] sm:$0xff]  }
 0x556   :  { %v1890_v19 = vmax.f32 %v1865_v3, %v1886_v17  ;;  %v1889_v21 = vmax.f32 %v1864_v62, %v1885_v31  ;;  %v4381_v62 = vld [vmem:[#allocation2 + $0x518] sm:$0xff]  }
 0x557   :  { %v1888_v23 = vsel %vm1884_vm13, %v4161_v33, 0.0  ;;  %v1887_v25 = vsel %vm1884_vm13, %v4160_v12, 0.0  ;;  %v4385_v3 = vld [vmem:[#allocation2 + $0x498] sm:$0xff]  }
 0x558   :  { %v1899_v20 = vrot.slane %v1890_v19, 4  ;;  %v1898_v28 = vrot.slane %v1889_v21, 4  ;;  %v1892_v27 = vmax.f32 %v1867_v9, %v1888_v23  ;;  %v1891_v29 = vmax.f32 %v1866_v8, %v1887_v25  ;;  %v4391_v8 = vld [vmem:[#allocation2 + $0x4c8] sm:$0xff]   ;;  %v4392_v9 = vld [vmem:[#allocation2 + $0x4d0] sm:$0xff]  }
 0x559   :  { %v1925_v30 = vpack.c.bf16 %v1890_v19, %v1889_v21  ;;  %v4394_v21 = vld [vmem:[#allocation2 + $0x560] sm:$0xff]  }
 0x55a   :  { %v1900_v32 = vsel %vm1897_vm15, %v1898_v28, %v1899_v20  ;;  %v1909_v18 = vsel %vm1897_vm15, 0.0, %v1898_v28  ;;  %v1903_v26 = vrot.slane %v1892_v27, 4  ;;  %v1901_v34 = vrot.slane %v1891_v29, 4 }
 0x55b   :  { %v3620_v22 = vpack.c.bf16 %v1900_v32, %v1909_v18  ;;  %2159 = vmatprep.mubr.bf16.mxu1 %v1925_v30  ;;  %v1928_v36 = vpack.c.bf16 %v1892_v27, %v1891_v29 }
 0x55c   :  { %v1919_v35 = vsel %vm1897_vm15, %v1903_v26, 0.0  ;;  %v1904_v40 = vsel %vm1897_vm15, %v1901_v34, %v1903_v26  ;;  %v1902_v37 = vsel %vm1897_vm15, %v1899_v20, %v1901_v34 }
 0x55d   :  { %v4776_v39 = vpack.c.bf16 %v1919_v35, %v1904_v40  ;;  %3621 = vmatmul.mubr.msk.bf16.vlgmr.msra.gmra.mrb[36].mxu1 %vm4615_vm9, %v3620_v22  ;;  %v4780_v41 = vpack.c.bf16 %v1902_v37, %v1900_v32  ;;  %v3624_v47 = vpack.c.bf16 %v1904_v40, %v1902_v37 }
 0x55e   :  { %2167 = vmatprep.mubr.bf16.mxu1 %v1928_v36  ;;  %2383 = vmatpush1.bf16.msra.mxu1 %v4382_v63 }
 0x55f   :  { %4077 = vmatprep.mubr.msk.bf16.mxu0 %vm4772_vm4, %v4780_v41  ;;  %2384 = vmatprep.subr.bf16.mxu1 %v4459_v1 }
 0x560   :  { %4078 = vmatmul.mubr.msk.bf16.vlgmr.msra.gmra.mrb[28].mxu0 %vm4783_vm7, %v4776_v39 }
 0x561   :  { %3933 = vmatpush3.bf16.msra.mxu0 %v4367_v43  ;;  %2664 = vmatprep.mubr.bf16.mxu0 %v1925_v30 }
 0x562   :  { %3934 = vmatprep.subr.bf16.mxu0 %v4368_v44  ;;  %2385 = vmatpush1.bf16.msra.mxu1 %v4383_v0 }
 0x563   :  { %2386 = vmatprep.subr.bf16.mxu1 %v4459_v1 }
 0x565   :  { %3935 = vmatpush3.bf16.msra.mxu0 %v4369_v45  ;;  %3625 = vmatmul.mubr.msk.bf16.gmra.mrb[40].mxu1 %vm4632_vm12, %v3624_v47 }
 0x566   :  { %3936 = vmatprep.subr.bf16.mxu0 %v4370_v46  ;;  %2387 = vmatpush1.bf16.msra.mxu1 %v4384_v2 }
 0x567   :  { %2388 = vmatprep.subr.bf16.mxu1 %v4459_v1 }
 0x569   :  { %3937 = vmatpush3.bf16.msra.mxu0 %v4371_v50 }
 0x56a   :  { %3938 = vmatprep.subr.bf16.mxu0 %v4372_v51  ;;  %2389 = vmatpush1.bf16.msra.mxu1 %v4385_v3 }
 0x56b   :  { %2390 = vmatprep.subr.bf16.mxu1 %v4459_v1 }
 0x56d   :  { %3939 = vmatpush3.bf16.msra.mxu0 %v4373_v52 }
 0x56e   :  { %3940 = vmatprep.subr.bf16.mxu0 %v4374_v54  ;;  %2391 = vmatpush1.bf16.msra.mxu1 %v4386_v53 }
 0x56f   :  { %2392 = vmatprep.subr.bf16.mxu1 %v4459_v1 }
 0x571   :  { %3941 = vmatpush3.bf16.msra.mxu0 %v4375_v55 }
 0x572   :  { %3942 = vmatprep.subr.bf16.mxu0 %v4376_v56  ;;  %2393 = vmatpush1.bf16.msra.mxu1 %v4387_v11 }
 0x573   :  { %2394 = vmatprep.subr.bf16.mxu1 %v4459_v1 }
 0x575   :  { %3943 = vmatpush3.bf16.msra.mxu0 %v4377_v57 }
 0x576   :  { %3944 = vmatprep.subr.bf16.mxu0 %v4378_v58  ;;  %2395 = vmatpush1.bf16.msra.mxu1 %v4388_v4 }
 0x577   :  { %2396 = vmatprep.subr.bf16.mxu1 %v4459_v1 }
 0x579   :  { %3945 = vmatpush3.bf16.msra.mxu0 %v4379_v59 }
 0x57a   :  { %3946 = vmatprep.subr.bf16.mxu0 %v4380_v60  ;;  %2397 = vmatpush1.bf16.msra.mxu1 %v4389_v5 }
 0x57b   :  { %2398 = vmatprep.subr.bf16.mxu1 %v4459_v1 }
 0x57d   :  { %3947 = vmatpush3.bf16.msra.mxu0 %v4381_v62 }
 0x57e   :  { %2923 = vmatprep.subr.bf16.mxu0 %v4459_v1  ;;  %2399 = vmatpush1.bf16.msra.mxu1 %v4390_v6 }
 0x57f   :  { %2400 = vmatprep.subr.bf16.mxu1 %v4459_v1 }
 0x580   :  { %3677 = vmatmul.mubr.msk.bf16.vlgmr.msra.gmra.mrb[32].mxu0 %vm4615_vm9, %v3620_v22  ;;  %vm2787_vm9 = vcmp.eq.s32.totalorder %v4514_v7, 8 }
 0x581   :  { %2672 = vmatprep.mubr.bf16.mxu0 %v1928_v36 }
 0x582   :  { %2401 = vmatpush1.bf16.msra.mxu1 %v4391_v8 }
 0x583   :  { %2402 = vmatprep.subr.bf16.mxu1 %v4459_v1 }
 0x586   :  { %2403 = vmatpush1.bf16.msra.mxu1 %v4392_v9 }
 0x587   :  { %2404 = vmatprep.subr.bf16.mxu1 %v4459_v1 }
 0x588   :  { %3681 = vmatmul.mubr.msk.bf16.gmra.mrb[36].mxu0 %vm4632_vm12, %v3624_v47  ;;  %vm3704_vm12 = vmneg %vm144_vm3 }
 0x589   :  { %vm3705_vm10 = vmpackc.low %vm4460_vm8, %vm3704_vm12  ;;  %vm3014_vm8 = vcmask 261120  }
 0x58a   :  { %2405 = vmatpush1.bf16.msra.mxu1 %v4393_v15 }
 0x58b   :  { %4081 = vmatprep.subr.bf16.mxu1 %v4394_v21 }
 0x630   :  { %v3910_v10 = vpop.f32.mrb[36].mxu1 }
 0x631   :  { %v3911_v13 = vpop.f32.mrb[37].mxu1 }
 0x632   :  { %v3912_v61 = vadd.f32 %v3911_v13, %v3910_v10  ;;  %v3913_v16 = vpop.f32.mrb[38].mxu1 }
 0x633   :  { %v3914_v17 = vpop.f32.mrb[39].mxu1  ;;  %v4079_v31 = vpop.f32.mrb[28].mxu0 }
 0x634   :  { %v3915_v33 = vadd.f32 %v3914_v17, %v3913_v16  ;;  %v2162_v12 = vadd.f32 %v3912_v61, %v3593_v14  ;;  %v2210_v19 = vpop.f32.mrb[29].mxu0 }
 0x635   :  { %v4080_v23 = vpop.f32.mrb[30].mxu0 }
 0x636   :  { %v2211_v25 = vadd.f32 %v2210_v19, %v2162_v12  ;;  %v2165_v20 = vadd.f32 %v3915_v33, %v3593_v14  ;;  %v2213_v28 = vpop.f32.mrb[31].mxu0  ;;  %v4395_v12 = vld [vmem:[#allocation2 + $0x568] sm:$0xff]  }
 0x638   :  { %v2225_v27 = vmax.f32 %v2211_v25, 0.0  ;;  %v2214_v29 = vadd.f32 %v2213_v28, %v2165_v20  ;;  %v3916_v30 = vpop.f32.mrb[40].mxu1  ;;  %v4396_v20 = vld [vmem:[#allocation2 + $0x570] sm:$0xff]  }
 0x639   :  { %v3917_v32 = vpop.f32.mrb[41].mxu1 }
 0x63a   :  { %v2226_v18 = vmax.f32 %v2214_v29, 0.0  ;;  %v3918_v26 = vadd.f32 %v3917_v32, %v3916_v30  ;;  %v3919_v34 = vpop.f32.mrb[42].mxu1  ;;  %v2233_v35 = vrot.slane %v2225_v27, 4  ;;  %v4397_v30 = vld [vmem:[#allocation2 + $0x578] sm:$0xff]   ;;  %v4399_v32 = vld [vmem:[#allocation2 + $0x588] sm:$0xff]  }
 0x63b   :  { %v3920_v22 = vpop.f32.mrb[43].mxu1 }
 0x63c   :  { %v2234_v40 = vrot.slane %v2226_v18, 4  ;;  %v2170_v36 = vadd.f32 %v3918_v26, %v3593_v14  ;;  %v3921_v37 = vadd.f32 %v3920_v22, %v3919_v34  ;;  %v4162_v43 = vpack.i.bf16 %v2226_v18, %v2225_v27  ;;  %v4400_v18 = vld [vmem:[#allocation2 + $0x590] sm:$0xff]   ;;  %v4401_v26 = vld [vmem:[#allocation2 + $0x598] sm:$0xff]  }
 0x63d   :  { %v2244_v24 = vsel %vm1897_vm15, 0.0, %v2233_v35 }
 0x63e   :  { %v2235_v44 = vsel %vm1897_vm15, %v2233_v35, %v2234_v40  ;;  %v2173_v45 = vadd.f32 %v3921_v37, %v3593_v14  ;;  %v2219_v46 = vadd.f32 %v4079_v31, %v2170_v36  ;;  %4163 = vrot.lane.b32.xlu0 %v4162_v43, %s4457_s22  ;;  %v2245_v16 = vsel %vm4571_vm5, 0.0, %v2244_v24  ;;  %v3634_v43 = vld [vmem:[%s4978_s2 + $0x7] ss:$0 sm:$0xff] }
 0x63f   :  { %vm2774_vm5 = vcmask 392192  }
 0x640   :  { %v2222_v47 = vadd.f32 %v4080_v23, %v2173_v45  ;;  %v2227_v50 = vmax.f32 %v2219_v46, 0.0 }
 0x642   :  { %v2228_v51 = vmax.f32 %v2222_v47, 0.0  ;;  %v2236_v52 = vrot.slane %v2227_v50, 4 }
 0x644   :  { %v2238_v54 = vrot.slane %v2228_v51, 4  ;;  %v4167_v55 = vpack.i.bf16 %v2228_v51, %v2227_v50  ;;  %v2237_v56 = vsel %vm1897_vm15, %v2234_v40, %v2236_v52 }
 0x645   :  { %v2252_v57 = vsel %vm1915_vm14, 0.0, %v2237_v56  ;;  %v2247_v28 = vsel %vm4575_vm6, 0.0, %v2237_v56 }
 0x646   :  { %v2250_v58 = vsel %vm1897_vm15, %v2238_v54, 0.0  ;;  %4168 = vrot.lane.b32.xlu1 %v4167_v55, %s4457_s22  ;;  %v2272_v59 = vpack.c.bf16 %v2252_v57, %v2235_v44  ;;  %v2239_v60 = vsel %vm1897_vm15, %v2236_v52, %v2238_v54 }
 0x647   :  { %v2254_v62 = vsel %vm1917_vm0, 0.0, %v2250_v58 }
 0x648   :  { %3647 = vmatprep.mubr.msk.bf16.mxu1 %vm144_vm3, %v2272_v59  ;;  %v2274_v63 = vpack.c.bf16 %v2254_v62, %v2239_v60 }
 0x653   :  { %v3948_v0 = vpop.f32.mrb[32].mxu0 }
 0x654   :  { %v3949_v2 = vpop.f32.mrb[33].mxu0 }
 0x655   :  { %v4825_v3 = vadd.f32 %v3949_v2, %v3948_v0  ;;  %v3951_v53 = vpop.f32.mrb[34].mxu0 }
 0x656   :  { %v3952_v11 = vpop.f32.mrb[35].mxu0 }
 0x657   :  { %v4827_v4 = vadd.f32 %v3952_v11, %v3951_v53 }
 0x65b   :  { %v3954_v5 = vpop.f32.mrb[36].mxu0 }
 0x65c   :  { %v3955_v6 = vpop.f32.mrb[37].mxu0 }
 0x65d   :  { %v3956_v8 = vadd.f32 %v3955_v6, %v3954_v5  ;;  %v3957_v9 = vpop.f32.mrb[38].mxu0 }
 0x65e   :  { %v3958_v10 = vpop.f32.mrb[39].mxu0 }
 0x65f   :  { %v3959_v13 = vadd.f32 %v3958_v10, %v3957_v9 }
 0x6b0   :  { %v4164_v14 = vpop.permute.xlu0 %4163 }
 0x6b1   :  { %v4166_v15 = vunpack.i.h.bf16 %v4164_v14  ;;  %v4165_v61 = vunpack.i.l.bf16 %v4164_v14 }
 0x6b3   :  { %v2267_v17 = vsel %vm144_vm3, %v2245_v16, %v4165_v61  ;;  %v2268_v31 = vsel %vm144_vm3, %v2235_v44, %v4166_v15  ;;  %v3649_v44 = vld [vmem:[%s4978_s2 + $0x8] ss:$0 sm:$0xff] }
 0x6b4   :  { %v2271_v33 = vpack.c.bf16 %v2268_v31, %v2267_v17  ;;  %v2675_v46 = vadd.f32 %v3956_v8, %v3649_v44  ;;  %v2667_v47 = vadd.f32 %v4825_v3, %v3649_v44  ;;  %v2678_v54 = vadd.f32 %v3959_v13, %v3649_v44 }
 0x6b5   :  { %v2670_v58 = vadd.f32 %v4827_v4, %v3649_v44  ;;  %v4420_v44 = vld [vmem:[#allocation2 + $0x5e8] sm:$0xff]  }
 0x6b6   :  { %2415 = vmatmul.mubr.bf16.vlgmr.msra.gmra.mrb[44].mxu1 %v2271_v33 }
 0x6b7   :  { %4082 = vmatpush3.bf16.msra.mxu1 %v4394_v21  ;;  %3648 = vmatprep.mubr.msk.bf16.mxu1 %vm144_vm3, %v2274_v63  ;;  %v4398_v21 = vld [vmem:[#allocation2 + $0x580] sm:$0xff]  }
 0x6b8   :  { %v4169_v19 = vpop.permute.xlu1 %4168  ;;  %4083 = vmatprep.subr.bf16.mxu1 %v4395_v12 }
 0x6b9   :  { %v4171_v23 = vunpack.i.h.bf16 %v4169_v19  ;;  %v4170_v25 = vunpack.i.l.bf16 %v4169_v19  ;;  %v4402_v19 = vld [vmem:[#allocation2 + $0x5a0] sm:$0xff]  }
 0x6ba   :  { %2924 = vmatpush1.bf16.msra.mxu0 %v4402_v19  ;;  %v4428_v19 = vld [vmem:[#allocation2 + $0x610] sm:$0xff]  }
 0x6bb   :  { %v2269_v48 = vsel %vm144_vm3, %v2247_v28, %v4170_v25  ;;  %v2270_v27 = vsel %vm144_vm3, %v2239_v60, %v4171_v23  ;;  %4084 = vmatpush3.bf16.msra.mxu1 %v4395_v12  ;;  %v4403_v23 = vld [vmem:[#allocation2 + $0x630] sm:$0xff]   ;;  %2925 = vmatprep.subr.bf16.mxu0 %v4459_v1 }
 0x6bc   :  { %v2273_v29 = vpack.c.bf16 %v2270_v27, %v2269_v48  ;;  %4085 = vmatprep.subr.bf16.mxu1 %v4396_v20  ;;  %v4404_v48 = vld [vmem:[#allocation2 + $0x5a8] sm:$0xff]   ;;  %v4405_v27 = vld [vmem:[#allocation2 + $0x638] sm:$0xff]  }
 0x6be   :  { %2423 = vmatmul.mubr.bf16.gmra.mrb[48].mxu1 %v2273_v29  ;;  %2926 = vmatpush1.bf16.msra.mxu0 %v4404_v48 }
 0x6bf   :  { %4086 = vmatpush3.bf16.msra.mxu1 %v4396_v20  ;;  %4097 = vmatprep.mubr.msk.bf16.mxu1 %vm4772_vm4, %v4780_v41 }
 0x6c0   :  { %4087 = vmatprep.subr.bf16.mxu1 %v4397_v30  ;;  %2927 = vmatprep.subr.bf16.mxu0 %v4459_v1 }
 0x6c3   :  { %4088 = vmatpush3.bf16.msra.mxu1 %v4397_v30  ;;  %v4406_v30 = vld [vmem:[#allocation2 + $0x5b0] sm:$0xff]  }
 0x6c4   :  { %4089 = vmatprep.subr.bf16.mxu1 %v4398_v21  ;;  %2928 = vmatpush1.bf16.msra.mxu0 %v4406_v30 }
 0x6c5   :  { %2929 = vmatprep.subr.bf16.mxu0 %v4459_v1 }
 0x6c7   :  { %4090 = vmatpush3.bf16.msra.mxu1 %v4398_v21  ;;  %v4407_v21 = vld [vmem:[#allocation2 + $0x640] sm:$0xff]  }
 0x6c8   :  { %4091 = vmatprep.subr.bf16.mxu1 %v4399_v32 }
 0x6cb   :  { %4092 = vmatpush3.bf16.msra.mxu1 %v4399_v32  ;;  %v4408_v32 = vld [vmem:[#allocation2 + $0x5b8] sm:$0xff]  }
 0x6cc   :  { %4093 = vmatprep.subr.bf16.mxu1 %v4400_v18  ;;  %2930 = vmatpush1.bf16.msra.mxu0 %v4408_v32 }
 0x6cd   :  { %2931 = vmatprep.subr.bf16.mxu0 %v4459_v1 }
 0x6cf   :  { %4094 = vmatpush3.bf16.msra.mxu1 %v4400_v18  ;;  %v4409_v18 = vld [vmem:[#allocation2 + $0x648] sm:$0xff]  }
 0x6d0   :  { %4095 = vmatprep.subr.bf16.mxu1 %v4401_v26 }
 0x6d3   :  { %4096 = vmatpush3.bf16.msra.mxu1 %v4401_v26  ;;  %v4410_v26 = vld [vmem:[#allocation2 + $0x5c0] sm:$0xff]  }
 0x6d4   :  { %3239 = vmatprep.subr.bf16.mxu1 %v4459_v1  ;;  %2932 = vmatpush1.bf16.msra.mxu0 %v4410_v26 }
 0x6d5   :  { %2933 = vmatprep.subr.bf16.mxu0 %v4459_v1 }
 0x6d6   :  { %4098 = vmatmul.mubr.msk.bf16.vlgmr.msra.gmra.mrb[52].mxu1 %vm4783_vm7, %v4776_v39 }
 0x6d7   :  { %3240 = vmatpush1.bf16.msra.mxu1 %v4403_v23  ;;  %v3690_v23 = vld [vmem:[%s4978_s2 + $0x9] ss:$0 sm:$0xff] }
 0x6d8   :  { %3241 = vmatprep.subr.bf16.mxu1 %v4459_v1 }
 0x6db   :  { %3242 = vmatpush1.bf16.msra.mxu1 %v4405_v27 }
 0x6dc   :  { %3243 = vmatprep.subr.bf16.mxu1 %v4459_v1 }
 0x6df   :  { %3244 = vmatpush1.bf16.msra.mxu1 %v4407_v21 }
 0x6e0   :  { %3245 = vmatprep.subr.bf16.mxu1 %v4459_v1 }
 0x6e3   :  { %3246 = vmatpush1.bf16.msra.mxu1 %v4409_v18 }
 0x6e4   :  { %3247 = vmatprep.subr.bf16.mxu1 %v4459_v1 }
 0x789   :  { %v2416_v38 = vpop.f32.mrb[44].mxu1 }
 0x78a   :  { %v2418_v41 = vpop.f32.mrb[45].mxu1  ;;  %v2417_v42 = vadd.f32 %v3634_v43, %v2416_v38  ;;  %v4411_v38 = vld [vmem:[#allocation2 + $0x650] sm:$0xff]  }
 0x78b   :  { %v2419_v34 = vpop.f32.mrb[46].mxu1  ;;  %3248 = vmatpush1.bf16.msra.mxu1 %v4411_v38  ;;  %v4412_v41 = vld [vmem:[#allocation2 + $0x5c8] sm:$0xff]   ;;  %v4430_v38 = vld [vmem:[#allocation2 + $0x620] sm:$0xff]  }
 0x78c   :  { %v2421_v22 = vpop.f32.mrb[47].mxu1  ;;  %v2420_v55 = vadd.f32 %v3634_v43, %v2419_v34  ;;  %v2431_v0 = vmax.f32 %v2417_v42, 0.0  ;;  %v4413_v34 = vld [vmem:[#allocation2 + $0x658] sm:$0xff]   ;;  %3249 = vmatprep.subr.bf16.mxu1 %v4459_v1  ;;  %2934 = vmatpush1.bf16.msra.mxu0 %v4412_v41  ;;  %v4423_v42 = vld [vmem:[#allocation2 + $0x680] sm:$0xff]  }
 0x78d   :  { %v4414_v22 = vld [vmem:[#allocation2 + $0x5d0] sm:$0xff]   ;;  %2935 = vmatprep.subr.bf16.mxu0 %v4459_v1 }
 0x78e   :  { %v2432_v3 = vmax.f32 %v2420_v55, 0.0 }
 0x78f   :  { %3250 = vmatpush1.bf16.msra.mxu1 %v4413_v34 }
 0x790   :  { %3251 = vmatprep.subr.bf16.mxu1 %v4459_v1  ;;  %2936 = vmatpush1.bf16.msra.mxu0 %v4414_v22 }
 0x791   :  { %v2424_v35 = vpop.f32.mrb[48].mxu1  ;;  %2937 = vmatprep.subr.bf16.mxu0 %v4459_v1 }
 0x792   :  { %v2426_v40 = vpop.f32.mrb[49].mxu1  ;;  %v2425_v45 = vadd.f32 %v3634_v43, %v2424_v35  ;;  %v4415_v35 = vld [vmem:[#allocation2 + $0x660] sm:$0xff]  }
 0x793   :  { %v2427_v36 = vpop.f32.mrb[50].mxu1  ;;  %3252 = vmatpush1.bf16.msra.mxu1 %v4415_v35  ;;  %v4416_v40 = vld [vmem:[#allocation2 + $0x5d8] sm:$0xff]  }
 0x794   :  { %v2429_v37 = vpop.f32.mrb[51].mxu1  ;;  %v2428_v50 = vadd.f32 %v3634_v43, %v2427_v36  ;;  %v2433_v59 = vmax.f32 %v2425_v45, 0.0  ;;  %v4417_v36 = vld [vmem:[#allocation2 + $0x668] sm:$0xff]   ;;  %3253 = vmatprep.subr.bf16.mxu1 %v4459_v1  ;;  %2938 = vmatpush1.bf16.msra.mxu0 %v4416_v40  ;;  %v4419_v43 = vld [vmem:[#allocation2 + $0x670] sm:$0xff]   ;;  %v4421_v45 = vld [vmem:[#allocation2 + $0x678] sm:$0xff]  }
 0x795   :  { %v4418_v37 = vld [vmem:[#allocation2 + $0x5e0] sm:$0xff]   ;;  %2939 = vmatprep.subr.bf16.mxu0 %v4459_v1 }
 0x796   :  { %v2434_v11 = vmax.f32 %v2428_v50, 0.0 }
 0x797   :  { %3254 = vmatpush1.bf16.msra.mxu1 %v4417_v36  ;;  %v4431_v36 = vld [vmem:[#allocation2 + $0x628] sm:$0xff]  }
 0x798   :  { %3255 = vmatprep.subr.bf16.mxu1 %v4459_v1  ;;  %2940 = vmatpush1.bf16.msra.mxu0 %v4418_v37 }
 0x799   :  { %2941 = vmatprep.subr.bf16.mxu0 %v4459_v1 }
 0x79b   :  { %3256 = vmatpush1.bf16.msra.mxu1 %v4419_v43 }
 0x79c   :  { %3257 = vmatprep.subr.bf16.mxu1 %v4459_v1  ;;  %2942 = vmatpush1.bf16.msra.mxu0 %v4420_v44 }
 0x79d   :  { %2943 = vmatprep.subr.bf16.mxu0 %v4459_v1 }
 0x79f   :  { %3258 = vmatpush1.bf16.msra.mxu1 %v4421_v45 }
 0x7a0   :  { %3259 = vmatprep.subr.bf16.mxu1 %v4459_v1 }
 0x7a3   :  { %3260 = vmatpush1.bf16.msra.mxu1 %v4423_v42 }
 0x7a4   :  { %3261 = vmatprep.subr.bf16.mxu1 %v4459_v1 }
 0x7a9   :  { %v4099_v39 = vpop.f32.mrb[52].mxu1 }
 0x7aa   :  { %v2724_v51 = vadd.f32 %v4099_v39, %v2675_v46  ;;  %v2715_v52 = vpop.f32.mrb[53].mxu1  ;;  %v4422_v46 = vld [vmem:[#allocation2 + $0x5f0] sm:$0xff]   ;;  %v4424_v39 = vld [vmem:[#allocation2 + $0x5f8] sm:$0xff]  }
 0x7ab   :  { %v2716_v56 = vadd.f32 %v2715_v52, %v2667_v47  ;;  %v4100_v57 = vpop.f32.mrb[54].mxu1  ;;  %2944 = vmatpush1.bf16.msra.mxu0 %v4422_v46  ;;  %v4425_v47 = vld [vmem:[#allocation2 + $0x688] sm:$0xff]  }
 0x7ac   :  { %v2732_v60 = vmax.f32 %v2724_v51, 0.0  ;;  %v2727_v62 = vadd.f32 %v4100_v57, %v2678_v54  ;;  %v2718_v63 = vpop.f32.mrb[55].mxu1  ;;  %2945 = vmatprep.subr.bf16.mxu0 %v4459_v1  ;;  %3262 = vmatpush1.bf16.msra.mxu1 %v4425_v47 }
 0x7ad   :  { %v2730_v2 = vmax.f32 %v2716_v56, 0.0  ;;  %v2719_v53 = vadd.f32 %v2718_v63, %v2670_v58 }
 0x7ae   :  { %v2736_v5 = vadd.f32 %v2732_v60, %v2433_v59  ;;  %v2733_v6 = vmax.f32 %v2727_v62, 0.0 }
 0x7af   :  { %v2734_v8 = vadd.f32 %v2730_v2, %v2431_v0  ;;  %v2731_v9 = vmax.f32 %v2719_v53, 0.0  ;;  %2946 = vmatpush1.bf16.msra.mxu0 %v4424_v39 }
 0x7b0   :  { %v2737_v10 = vadd.f32 %v2733_v6, %v2434_v11  ;;  %v2745_v24 = vrot.slane %v2736_v5, 4 }
 0x7b1   :  { %v2735_v13 = vadd.f32 %v2731_v9, %v2432_v3  ;;  %v2742_v15 = vrot.slane %v2734_v8, 4 }
 0x7b2   :  { %v2747_v14 = vrot.slane %v2737_v10, 4 }
 0x7b3   :  { %v2743_v61 = vrot.slane %v2735_v13, 4 }
 0x7b4   :  { %v2753_v4 = vsel %vm1897_vm15, %v2747_v14, 0.0  ;;  %v2748_v16 = vsel %vm1897_vm15, %v2745_v24, %v2747_v14 }
 0x7b5   :  { %v4856_v17 = vmax.f32 %v2737_v10, %v2753_v4  ;;  %v2746_v31 = vsel %vm1897_vm15, %v2743_v61, %v2745_v24  ;;  %v4859_v33 = vmax.f32 %v2736_v5, %v2748_v16  ;;  %v2744_v12 = vsel %vm1897_vm15, %v2742_v15, %v2743_v61 }
 0x7b6   :  { %v4862_v25 = vmax.f32 %v2735_v13, %v2746_v31  ;;  %v4864_v20 = vmax.f32 %v2734_v8, %v2744_v12  ;;  %v4463_v24 = vmov 0.0   ;;  %v4427_v12 = vld [vmem:[#allocation2 + $0x608] sm:$0xff]  }
 0x7b7   :  { %v4177_v28 = vpack.i.bf16 %v4856_v17, %v4859_v33 }
 0x7b8   :  { %v4172_v29 = vpack.i.bf16 %v4864_v20, %v4862_v25 }
 0x7b9   :  { %4178 = vrot.lane.b32.xlu1 %v4177_v28, %s4462_s18 }
 0x7ba   :  { %4173 = vrot.lane.b32.xlu0 %v4172_v29, %s4462_s18 }
 0x82b   :  { %v4179_v50 = vpop.permute.xlu1 %4178 }
 0x82c   :  { %v4181_v51 = vunpack.i.h.bf16 %v4179_v50  ;;  %v4180_v52 = vunpack.i.l.bf16 %v4179_v50  ;;  %v4174_v54 = vpop.permute.xlu0 %4173 }
 0x82d   :  { %v4176_v55 = vunpack.i.h.bf16 %v4174_v54  ;;  %v4175_v56 = vunpack.i.l.bf16 %v4174_v54 }
 0x82e   :  { %v2778_v57 = vsel %vm2774_vm5, %v4181_v51, 0.0  ;;  %v2777_v58 = vsel %vm2774_vm5, %v4180_v52, 0.0 }
 0x82f   :  { %v2781_v59 = vmax.f32 %v4859_v33, %v2777_v58  ;;  %v2775_v60 = vsel %vm2774_vm5, %v4176_v55, 0.0  ;;  %v2776_v62 = vsel %vm2774_vm5, %v4175_v56, 0.0  ;;  %v2782_v1 = vmax.f32 %v4856_v17, %v2778_v57  ;;  %v4426_v33 = vld [vmem:[#allocation2 + $0x600] sm:$0xff]  }
 0x830   :  { %v2780_v63 = vmax.f32 %v4862_v25, %v2776_v62  ;;  %v2779_v0 = vmax.f32 %v4864_v20, %v2775_v60  ;;  %4101 = vmatprep.subr.bf16.mxu0 %v4426_v33  ;;  %v4429_v25 = vld [vmem:[#allocation2 + $0x618] sm:$0xff]  }
 0x831   :  { %v4187_v2 = vpack.i.bf16 %v2782_v1, %v2781_v59  ;;  %v2790_v53 = vsel %vm2787_vm9, 0.0, %v2781_v59  ;;  %v2815_v14 = vpack.c.bf16 %v4463_v24, %v2782_v1 }
 0x832   :  { %v4182_v11 = vpack.i.bf16 %v2779_v0, %v2780_v63  ;;  %v2813_v5 = vpack.c.bf16 %v2790_v53, %v2780_v63  ;;  %v2784_v4 = vsel %vm4575_vm6, 0.0, %v2780_v63 }
 0x833   :  { %4188 = vrot.lane.b32.xlu1 %v4187_v2, %s4457_s22 }
 0x834   :  { %4183 = vrot.lane.b32.xlu0 %v4182_v11, %s4457_s22  ;;  %3703 = vmatprep.mubr.msk.bf16.mxu0 %vm144_vm3, %v2813_v5 }
 0x835   :  { %3731 = vmatprep.mubr.msk.bf16.mxu1 %vm144_vm3, %v2813_v5 }
 0x8a5   :  { %v4189_v9 = vpop.permute.xlu1 %4188 }
 0x8a6   :  { %v4184_v6 = vpop.permute.xlu0 %4183  ;;  %v4191_v15 = vunpack.i.h.bf16 %v4189_v9  ;;  %v4190_v61 = vunpack.i.l.bf16 %v4189_v9 }
 0x8a7   :  { %v4186_v3 = vunpack.i.h.bf16 %v4184_v6  ;;  %v4185_v8 = vunpack.i.l.bf16 %v4184_v6 }
 0x8a8   :  { %v2810_v16 = vsel %vm144_vm3, %v2784_v4, %v4190_v61  ;;  %v2811_v17 = vsel %vm144_vm3, %v2781_v59, %v4191_v15  ;;  %v3709_v4 = vld [vmem:[%s4978_s2 + $0xa] ss:$0 sm:$0xff] }
 0x8a9   :  { %v2809_v10 = vsel %vm144_vm3, %v2779_v0, %v4185_v8  ;;  %v2814_v31 = vpack.c.bf16 %v2811_v17, %v2810_v16 }
 0x8aa   :  { %v3706_v13 = vpack.c.bf16 %v2809_v10, %v4186_v3 }
 0x8ac   :  { %3707 = vmatmul.mubr.msk.bf16.vlgmr.msra.gmra.mrb[40].mxu0 %vm3705_vm10, %v3706_v13  ;;  %3735 = vmatmul.mubr.msk.bf16.vlgmr.msra.gmra.mrb[56].mxu1 %vm3705_vm10, %v3706_v13 }
 0x8ad   :  { %3708 = vmatprep.mubr.msk.bf16.mxu0 %vm144_vm3, %v2815_v14  ;;  %3736 = vmatprep.mubr.msk.bf16.mxu1 %vm144_vm3, %v2815_v14 }
 0x8ae   :  { %4102 = vmatpush3.bf16.msra.mxu0 %v4426_v33 }
 0x8af   :  { %4103 = vmatprep.subr.bf16.mxu0 %v4427_v12 }
 0x8b2   :  { %4104 = vmatpush3.bf16.msra.mxu0 %v4427_v12 }
 0x8b3   :  { %4105 = vmatprep.subr.bf16.mxu0 %v4428_v19 }
 0x8b4   :  { %2964 = vmatmul.mubr.bf16.gmra.mrb[44].mxu0 %v2814_v31  ;;  %3280 = vmatmul.mubr.bf16.gmra.mrb[60].mxu1 %v2814_v31 }
 0x8b6   :  { %4106 = vmatpush3.bf16.msra.mxu0 %v4428_v19 }
 0x8b7   :  { %4107 = vmatprep.subr.bf16.mxu0 %v4429_v25 }
 0x8ba   :  { %4108 = vmatpush3.bf16.msra.mxu0 %v4429_v25 }
 0x8bb   :  { %4109 = vmatprep.subr.bf16.mxu0 %v4430_v38 }
 0x8be   :  { %4110 = vmatpush3.bf16.msra.mxu0 %v4430_v38 }
 0x8bf   :  { %4111 = vmatprep.subr.bf16.mxu0 %v4431_v36 }
 0x8c2   :  { %4112 = vmatpush3.bf16.msra.mxu0 %v4431_v36 }
 0x97f   :  { %v2957_v20 = vpop.f32.mrb[40].mxu0  ;;  %v4918_v28 = vpop.f32.mrb[56].mxu1 }
 0x980   :  { %v2958_v48 = vadd.f32 %v3690_v23, %v2957_v20  ;;  %v2959_v27 = vpop.f32.mrb[41].mxu0  ;;  %v3275_v29 = vpop.f32.mrb[57].mxu1  ;;  %v3274_v17 = vadd.f32 %v3718_v49, %v4918_v28  ;;  %v3328_v28 = vld [vmem:[%s4978_s2 + $0x18] sm:$0xff] }
 0x981   :  { %v2960_v30 = vpop.f32.mrb[42].mxu0  ;;  %v4920_v21 = vpop.f32.mrb[58].mxu1 }
 0x982   :  { %v2961_v32 = vadd.f32 %v3690_v23, %v2960_v30  ;;  %v2962_v18 = vpop.f32.mrb[43].mxu0  ;;  %v3278_v26 = vpop.f32.mrb[59].mxu1  ;;  %v2972_v41 = vmax.f32 %v2958_v48, 0.0 }
 0x983   :  { %v3288_v18 = vmax.f32 %v3274_v17, 0.0 }
 0x984   :  { %v2973_v34 = vmax.f32 %v2961_v32, 0.0  ;;  %v3327_v32 = vld [vmem:[%s4978_s2 + $0x10] sm:$0xff] }
 0x986   :  { %v4192_v22 = vpack.i.bf16 %v2973_v34, %v2972_v41  ;;  %v2977_v8 = vsel %vm4575_vm6, 0.0, %v2973_v34 }
 0x987   :  { %v2965_v35 = vpop.f32.mrb[44].mxu0  ;;  %v3281_v40 = vpop.f32.mrb[60].mxu1 }
 0x988   :  { %v2966_v37 = vadd.f32 %v3690_v23, %v2965_v35  ;;  %4193 = vrot.lane.b32.xlu0 %v4192_v22, %s4464_s28  ;;  %v2967_v43 = vpop.f32.mrb[45].mxu0  ;;  %v3283_v44 = vpop.f32.mrb[61].mxu1  ;;  %v3282_v16 = vadd.f32 %v3718_v49, %v3281_v40 }
 0x989   :  { %v2968_v45 = vpop.f32.mrb[46].mxu0  ;;  %v3284_v46 = vpop.f32.mrb[62].mxu1 }
 0x98a   :  { %v2974_v42 = vmax.f32 %v2966_v37, 0.0  ;;  %v2969_v39 = vadd.f32 %v3690_v23, %v2968_v45  ;;  %v2970_v47 = vpop.f32.mrb[47].mxu0  ;;  %v3286_v50 = vpop.f32.mrb[63].mxu1  ;;  %v3285_v33 = vadd.f32 %v3718_v49, %v3284_v46  ;;  %v3277_v23 = vadd.f32 %v3718_v49, %v4920_v21 }
 0x98b   :  { %v3290_v48 = vmax.f32 %v3282_v16, 0.0 }
 0x98c   :  { %v2975_v51 = vmax.f32 %v2969_v39, 0.0  ;;  %v2980_v52 = vsel %vm2787_vm9, 0.0, %v2974_v42  ;;  %v3289_v35 = vmax.f32 %v3277_v23, 0.0 }
 0x98d   :  { %v4197_v54 = vpack.i.bf16 %v2980_v52, %v2973_v34  ;;  %v3291_v34 = vmax.f32 %v3285_v33, 0.0 }
 0x98e   :  { %v4202_v55 = vpack.i.bf16 %v2975_v51, %v2974_v42  ;;  %v4207_v56 = vpack.i.bf16 %v4463_v24, %v2975_v51 }
 0x98f   :  { %4198 = vrot.lane.b32.xlu0 %v4197_v54, %s4457_s22 }
 0x990   :  { %4203 = vrot.lane.b32.xlu1 %v4202_v55, %s4464_s28 }
 0x994   :  { %4208 = vrot.lane.b32.xlu1 %v4207_v56, %s4457_s22 }
 0x9fa   :  { %v4194_v57 = vpop.permute.xlu0 %4193 }
 0x9fb   :  { %v4196_v58 = vunpack.i.h.bf16 %v4194_v57  ;;  %v4195_v59 = vunpack.i.l.bf16 %v4194_v57 }
 0x9fd   :  { %v3016_v7 = vsel %vm3014_vm8, %v2972_v41, %v4196_v58  ;;  %v3015_v0 = vsel %vm3014_vm8, 0.0, %v4195_v59  ;;  %v3329_v41 = vpack.c.bf16 %v3328_v28, %v3327_v32 }
 0x9ff   :  { %4117 = vmatprep.subr.bf16.mxu0 %v3329_v41 }
 0xa01   :  { %v4199_v60 = vpop.permute.xlu0 %4198 }
 0xa02   :  { %v4201_v62 = vunpack.i.h.bf16 %v4199_v60  ;;  %v4200_v1 = vunpack.i.l.bf16 %v4199_v60  ;;  %v4204_v63 = vpop.permute.xlu1 %4203 }
 0xa03   :  { %v4206_v11 = vunpack.i.h.bf16 %v4204_v63  ;;  %v4205_v5 = vunpack.i.l.bf16 %v4204_v63 }
 0xa04   :  { %v3020_v2 = vsel %vm144_vm3, %v3016_v7, %v4201_v62  ;;  %v3019_v53 = vsel %vm144_vm3, %v3015_v0, %v4200_v1 }
 0xa05   :  { %v3023_v6 = vpack.c.bf16 %v3020_v2, %v3019_v53  ;;  %v3018_v13 = vsel %vm3014_vm8, %v2974_v42, %v4206_v11  ;;  %v3017_v24 = vsel %vm3014_vm8, %v2977_v8, %v4205_v5  ;;  %v3737_v53 = vld [vmem:[%s4978_s2 + $0xc] ss:$0 sm:$0xff] }
 0xa06   :  { %v4209_v3 = vpop.permute.xlu1 %4208 }
 0xa07   :  { %v4211_v9 = vunpack.i.h.bf16 %v4209_v3  ;;  %v4210_v10 = vunpack.i.l.bf16 %v4209_v3  ;;  %4113 = vmatprep.mubr.msk.bf16.mxu0 %vm3078_vm11, %v3023_v6 }
 0xa09   :  { %v3021_v14 = vsel %vm144_vm3, %v3017_v24, %v4210_v10  ;;  %v3022_v15 = vsel %vm144_vm3, %v3018_v13, %v4211_v9  ;;  %vm3316_vm3 = vcmask 130048  }
 0xa0a   :  { %v3024_v61 = vpack.c.bf16 %v3022_v15, %v3021_v14 }
 0xa0c   :  { %4114 = vmatmul.mubr.msk.bf16.vlgmr.msra.gmra.mrb[48].mxu0 %vm3078_vm11, %v3024_v61 }
 0xa0d   :  { %4118 = vmatpush3.bf16.msra.mxu0 %v3329_v41 }
 0xadf   :  { %v4115_v31 = vpop.f32.mrb[48].mxu0 }
 0xae0   :  { %v3128_v12 = vadd.f32 %v4115_v31, %v3709_v4  ;;  %v3119_v19 = vpop.f32.mrb[49].mxu0 }
 0xae1   :  { %v3120_v25 = vadd.f32 %v3709_v4, %v3119_v19  ;;  %v4116_v20 = vpop.f32.mrb[50].mxu0 }
 0xae2   :  { %v3136_v27 = vmax.f32 %v3128_v12, 0.0  ;;  %v3131_v29 = vadd.f32 %v4116_v20, %v3709_v4  ;;  %v3122_v30 = vpop.f32.mrb[51].mxu0 }
 0xae3   :  { %v3134_v26 = vmax.f32 %v3120_v25, 0.0  ;;  %v3123_v38 = vadd.f32 %v3709_v4, %v3122_v30 }
 0xae4   :  { %v3294_v21 = vadd.f32 %v3290_v48, %v3136_v27  ;;  %v3137_v22 = vmax.f32 %v3131_v29, 0.0 }
 0xae5   :  { %v3292_v40 = vadd.f32 %v3288_v18, %v3134_v26  ;;  %v3135_v36 = vmax.f32 %v3123_v38, 0.0 }
 0xae6   :  { %v3295_v37 = vadd.f32 %v3291_v34, %v3137_v22 }
 0xae7   :  { %v3293_v43 = vadd.f32 %v3289_v35, %v3135_v36 }
 0xae8   :  { %v3298_v44 = vmax.f32 %v3294_v21, %v3295_v37  ;;  %v3299_v45 = vmax.f32 %v3295_v37, 0.0 }
 0xae9   :  { %v3296_v46 = vmax.f32 %v3292_v40, %v3293_v43  ;;  %v3297_v42 = vmax.f32 %v3293_v43, %v3294_v21 }
 0xaea   :  { %v4217_v39 = vpack.i.bf16 %v3299_v45, %v3298_v44 }
 0xaeb   :  { %v4212_v47 = vpack.i.bf16 %v3297_v42, %v3296_v46 }
 0xaec   :  { %4218 = vrot.lane.b32.xlu1 %v4217_v39, %s4462_s18 }
 0xaed   :  { %4213 = vrot.lane.b32.xlu0 %v4212_v47, %s4462_s18 }
 0xb5e   :  { %v4219_v50 = vpop.permute.xlu1 %4218 }
 0xb5f   :  { %v4221_v51 = vunpack.i.h.bf16 %v4219_v50  ;;  %v4220_v52 = vunpack.i.l.bf16 %v4219_v50  ;;  %v4214_v54 = vpop.permute.xlu0 %4213 }
 0xb60   :  { %v4216_v55 = vunpack.i.h.bf16 %v4214_v54  ;;  %v4215_v56 = vunpack.i.l.bf16 %v4214_v54 }
 0xb61   :  { %v3320_v57 = vsel %vm3316_vm3, %v4221_v51, 0.0  ;;  %v3319_v58 = vsel %vm3316_vm3, %v4220_v52, 0.0 }
 0xb62   :  { %v3324_v59 = vmax.f32 %v3299_v45, %v3320_v57  ;;  %v3323_v60 = vmax.f32 %v3298_v44, %v3319_v58  ;;  %v3318_v62 = vsel %vm3316_vm3, %v4216_v55, 0.0  ;;  %v3317_v1 = vsel %vm3316_vm3, %v4215_v56, 0.0 }
 0xb63   :  { %v3322_v63 = vmax.f32 %v3297_v42, %v3318_v62  ;;  %v3321_v7 = vmax.f32 %v3296_v46, %v3317_v1 }
 0xb64   :  { %v3326_v2 = vpack.c.bf16 %v3324_v59, %v3323_v60 }
 0xb65   :  { %v3325_v0 = vpack.c.bf16 %v3322_v63, %v3321_v7 }
 0xb67   :  { %4119 = vmatprep.mubr.msk.bf16.mxu0 %vm3316_vm3, %v3325_v0 }
 0xb68   :  { %4120 = vmatmul.mubr.msk.bf16.vlgmr.msra.gmra.mrb[52].mxu0 %vm3316_vm3, %v3326_v2 }
 0xc3b   :  { %v4121_v11 = vpop.f32.mrb[52].mxu0 }
 0xc3c   :  { %v3384_v5 = vadd.f32 %v4121_v11, %v3737_v53  ;;  %v3375_v6 = vpop.f32.mrb[53].mxu0 }
 0xc3d   :  { %v3376_v3 = vadd.f32 %v3737_v53, %v3375_v6  ;;  %v4122_v8 = vpop.f32.mrb[54].mxu0 }
 0xc3e   :  { %3392 = vst [vmem:[%s4979_s3 + $0x10] sm:$0xff] %v3384_v5  ;;  %v3387_v9 = vadd.f32 %v4122_v8, %v3737_v53  ;;  %v3378_v10 = vpop.f32.mrb[55].mxu0 }
 0xc3f   :  { %3390 = vst [vmem:[%s4979_s3] sm:$0xff] %v3376_v3  ;;  %v3379_v13 = vadd.f32 %v3737_v53, %v3378_v10 }
 0xc40   :  { %3393 = vst [vmem:[%s4979_s3 + $0x18] sm:$0xff] %v3387_v9 }
 0xc41   :  { %3391 = vst [vmem:[%s4979_s3 + $0x8] sm:$0xff] %v3379_v13 }
 0xc42   :  { %3398 = vsyncpa [#allocation3], 1 }

</bundles_post_ra>
